<compile_context>
chip_gen: v7x
topology: tpu7x:2x2x1
jax: 0.10.0
libtpu: 0.0.40
codegen_flags: <defaults>
</compile_context>

<pallas_src>
import functools

import jax
import jax.numpy as jnp
from jax.experimental import pallas as pl
from jax.experimental.pallas import tpu as pltpu


# ----------------------------------------------------------------------------
# Fused kernel: conv1 + ReLU + conv2 + ReLU + Flatten + Linear (one image,
# one branch per grid step).
# ----------------------------------------------------------------------------
def _fused_branch_kernel(a2_ref, w1_ref, b1_ref, w2_ref, b2_ref, fcw_ref,
                         out_ref, *, tb):
    # a2_ref : (2, 4096, 54) bf16  packed im2col rows of one image, split by
    #          conv1-output-row parity (plane 0 = even rows 2p, plane 1 = odd
    #          rows 2p+1); row order inside a plane is (row-pair p, col-pair q),
    #          lane layout = [even-col 27 taps | odd-col 27 taps].
    # w1_ref : (1, 54, 128)  bf16  block-diagonal conv1 weight (col-pair packed)
    # b1_ref : (1, 1, 128)   f32
    # w2_ref : (1, 6, 128, 128) bf16  [kh=0..2 same col-pair, kh=0..2 prev pair]
    # b2_ref : (1, 1, 128)   f32
    # fcw_ref: (1, 4096, 128) bf16 FC weight rows in (h*64 + w) order, c lanes
    # out_ref: (1, 1, 8, 128) f32  partial FC sums (reduced + bias in glue)
    rows = tb * 64                      # conv2 output rows per band * 64 cols
    n_bands = 64 // tb

    w1 = w1_ref[0]                      # (54, 128)
    b1 = b1_ref[0]                      # (1, 128) f32
    b2 = b2_ref[0]                      # (1, 128) f32
    q0_mask = (jax.lax.broadcasted_iota(jnp.int32, (rows, 128), 0) % 64) == 0
    zero_row = jnp.zeros((1, 128), jnp.bfloat16)

    def shift_q(s):
        # s[m] -> s[m-1] within each conv output row (col-pair -1 is padding).
        sh = jnp.concatenate([zero_row, s[: rows - 1, :]], axis=0)
        return jnp.where(q0_mask, jnp.zeros_like(sh), sh)

    def conv1(a):
        y = jnp.dot(a, w1, preferred_element_type=jnp.float32)
        return jnp.maximum(y + b1, 0.0).astype(jnp.bfloat16)

    def band(step, carry):
        acc_fc, prev = carry
        r0 = pl.multiple_of(step * rows, rows)
        s1 = conv1(a2_ref[0, pl.ds(r0, rows), :])          # rows 2p   (kh=1)
        s2 = conv1(a2_ref[1, pl.ds(r0, rows), :])          # rows 2p+1 (kh=2)
        s0 = jnp.concatenate([prev, s2[: rows - 64, :]], axis=0)  # 2p-1 (kh=0)

        conv = jnp.dot(s0, w2_ref[0, 0], preferred_element_type=jnp.float32)
        conv += jnp.dot(s1, w2_ref[0, 1], preferred_element_type=jnp.float32)
        conv += jnp.dot(s2, w2_ref[0, 2], preferred_element_type=jnp.float32)
        conv += jnp.dot(shift_q(s0), w2_ref[0, 3], preferred_element_type=jnp.float32)
        conv += jnp.dot(shift_q(s1), w2_ref[0, 4], preferred_element_type=jnp.float32)
        conv += jnp.dot(shift_q(s2), w2_ref[0, 5], preferred_element_type=jnp.float32)

        act = jnp.maximum(conv + b2, 0.0)                   # (rows, 128) f32
        fcw = fcw_ref[0, pl.ds(r0, rows), :].astype(jnp.float32)
        part = (act * fcw).reshape(rows // 8, 8, 128).sum(axis=0)
        return acc_fc + part, s2[rows - 64:, :]

    acc0 = jnp.zeros((8, 128), jnp.float32)
    prev0 = jnp.zeros((64, 128), jnp.bfloat16)              # top zero padding
    acc_fc, _ = jax.lax.fori_loop(0, n_bands, band, (acc0, prev0))
    out_ref[0, 0] = acc_fc


def fused_discriminator_pallas(a2p, w1_all, b1_all, w2_all, b2_all, fcw_all,
                               *, tb=8):
    n_branch = w1_all.shape[0]
    n_batch = a2p.shape[0] // 2
    return pl.pallas_call(
        functools.partial(_fused_branch_kernel, tb=tb),
        out_shape=jax.ShapeDtypeStruct((n_branch, n_batch, 8, 128), jnp.float32),
        grid_spec=pltpu.PrefetchScalarGridSpec(
            num_scalar_prefetch=0,
            grid=(n_branch, n_batch),
            in_specs=[
                pl.BlockSpec((2, 4096, 54), lambda r, b: (b, 0, 0)),
                pl.BlockSpec((1, 54, 128), lambda r, b: (r, 0, 0)),
                pl.BlockSpec((1, 1, 128), lambda r, b: (r, 0, 0)),
                pl.BlockSpec((1, 6, 128, 128), lambda r, b: (r, 0, 0, 0)),
                pl.BlockSpec((1, 1, 128), lambda r, b: (r, 0, 0)),
                pl.BlockSpec((1, 4096, 128), lambda r, b: (r, 0, 0)),
            ],
            out_specs=pl.BlockSpec((1, 1, 8, 128), lambda r, b: (r, b, 0, 0)),
        ),
        compiler_params=pltpu.CompilerParams(
            dimension_semantics=("parallel", "parallel"),
        ),
    )(a2p, w1_all, b1_all, w2_all, b2_all, fcw_all)


# ----------------------------------------------------------------------------
# Glue: packed im2col for conv1 and PyTorch-layout -> kernel-layout weights
# ----------------------------------------------------------------------------
def _im2col_packed(x_nhwc):
    """3x3 / stride-2 / pad-1 im2col; adjacent output columns packed into one
    row and output rows split by parity: (N,H,W,C) -> (N*2, (H/4)*(W/4), 54)."""
    n, h, w, c = x_nhwc.shape
    oh, ow = h // 2, w // 2
    xpad = jnp.pad(x_nhwc, ((0, 0), (1, 1), (1, 1), (0, 0)))
    cols = []
    for kh in range(3):
        for kw in range(3):
            cols.append(xpad[:, kh:kh + 2 * oh:2, kw:kw + 2 * ow:2, :])
    a = jnp.concatenate(cols, axis=-1)                     # (N, OH, OW, 9*C)
    a = a.reshape(n, oh // 2, 2, ow // 2, 2 * 9 * c)       # (N, P, par, Q, 54)
    a = a.transpose(0, 2, 1, 3, 4)                         # (N, par, P, Q, 54)
    return a.reshape(n * 2, (oh // 2) * (ow // 2), 2 * 9 * c)


def _prep_branch_params(p):
    # conv1: block-diagonal (54,128) weight acting on packed column pairs.
    w1m = jnp.transpose(p["w1"], (2, 3, 1, 0)).reshape(27, 64)
    z = jnp.zeros_like(w1m)
    w1big = jnp.concatenate(
        [jnp.concatenate([w1m, z], axis=1),
         jnp.concatenate([z, w1m], axis=1)], axis=0).astype(jnp.bfloat16)
    b1p = jnp.concatenate([p["b1"], p["b1"]]).reshape(1, 128).astype(jnp.float32)

    # conv2: per-kh combined (128,128) weights for the packed col-pair layout.
    wt = jnp.transpose(p["w2"], (2, 3, 1, 0))              # (kh, kw, cin, cout)
    w_same = jnp.concatenate([wt[:, 1], wt[:, 2]], axis=1)           # (3,128,128)
    w_prev = jnp.concatenate([jnp.zeros_like(wt[:, 0]), wt[:, 0]], axis=1)
    w2p = jnp.concatenate([w_same, w_prev], axis=0).astype(jnp.bfloat16)
    b2 = p["b2"].reshape(1, 128).astype(jnp.float32)

    # FC weight rows permuted from PyTorch flatten(C,H,W) order to (H,W,C).
    fcw_hwc = (p["fcw"].reshape(128, 64, 64).transpose(1, 2, 0)
               .reshape(64 * 64, 128).astype(jnp.bfloat16))
    return w1big, b1p, w2p, b2, fcw_hwc, p["fcb"].astype(jnp.float32)


@jax.jit
def discriminator_forward(image_nchw, spatial_params, frequency_params):
    x_nhwc = jnp.transpose(image_nchw, (0, 2, 3, 1)).astype(jnp.bfloat16)
    a2p = _im2col_packed(x_nhwc)                           # shared by branches

    per_branch = [_prep_branch_params(spatial_params),
                  _prep_branch_params(frequency_params)]
    w1_all, b1_all, w2_all, b2_all, fcw_all, fcb_all = (
        jnp.stack(t) for t in zip(*per_branch))

    part = fused_discriminator_pallas(a2p, w1_all, b1_all, w2_all, b2_all,
                                      fcw_all, tb=8)       # (2, N, 8, 128) f32
    logits = part.sum(axis=(2, 3)) + fcb_all.reshape(2, 1)  # (2, N)
    return logits[0][:, None], logits[1][:, None]


# ----------------------------------------------------------------------------
# Deterministic synthetic parameters (PyTorch shapes: OIHW conv weights).
# ----------------------------------------------------------------------------
def init_branch(key):
    ks = jax.random.split(key, 6)
    return dict(
        w1=jax.random.normal(ks[0], (64, 3, 3, 3), jnp.float32) * 0.05,
        b1=jax.random.normal(ks[1], (64,), jnp.float32) * 0.05,
        w2=jax.random.normal(ks[2], (128, 64, 3, 3), jnp.float32) * 0.02,
        b2=jax.random.normal(ks[3], (128,), jnp.float32) * 0.02,
        fcw=jax.random.normal(ks[4], (128 * 64 * 64, 1), jnp.float32) * 1e-4,
        fcb=jax.random.normal(ks[5], (1,), jnp.float32) * 0.01,
    )


# ----------------------------------------------------------------------------
# Pure-JAX reference (lax.conv) for a silent numerical sanity check.
# ----------------------------------------------------------------------------
def _branch_ref(x_nhwc, p):
    def conv(x, w, b):
        y = jax.lax.conv_general_dilated(
            x,
            jnp.transpose(w, (2, 3, 1, 0)),  # OIHW -> HWIO
            window_strides=(2, 2),
            padding=((1, 1), (1, 1)),
            dimension_numbers=("NHWC", "HWIO", "NHWC"),
        )
        return jax.nn.relu(y + b)

    h = conv(x_nhwc, p["w1"], p["b1"])
    h = conv(h, p["w2"], p["b2"])
    feat = jnp.transpose(h, (0, 3, 1, 2)).reshape(h.shape[0], -1)
    return feat @ p["fcw"] + p["fcb"]


if __name__ == "__main__":
    key = jax.random.PRNGKey(0)
    k_img, k_sp, k_fr = jax.random.split(key, 3)

    # The module's Linear(128*64*64, 1) pins the input to (N, 3, 256, 256).
    image = jax.random.normal(k_img, (2, 3, 256, 256), jnp.float32)
    sp_params = init_branch(k_sp)
    fr_params = init_branch(k_fr)

    spatial, frequency = discriminator_forward(image, sp_params, fr_params)
    jax.block_until_ready((spatial, frequency))

    # Silent sanity check against a pure-JAX reference evaluated on the same
    # bf16-rounded image/params (kernels use bf16 storage, f32 accumulation).
    def _round_bf16(t):
        return jax.tree_util.tree_map(
            lambda a: a.astype(jnp.bfloat16).astype(jnp.float32), t)

    x_nhwc = _round_bf16(jnp.transpose(image, (0, 2, 3, 1)))
    ref_s = _branch_ref(x_nhwc, _round_bf16(sp_params))
    ref_f = _branch_ref(x_nhwc, _round_bf16(fr_params))
    tol = 1e-2 * (1.0 + float(jnp.max(jnp.abs(jnp.concatenate([ref_s, ref_f])))))
    assert spatial.shape == (2, 1) and frequency.shape == (2, 1)
    assert float(jnp.max(jnp.abs(spatial - ref_s))) < tol
    assert float(jnp.max(jnp.abs(frequency - ref_f))) < tol

    print("KERNEL_OK")
</pallas_src>

<mosaic_0001>
module attributes {stable_mosaic.version = 11 : i64} {
  func.func @_fused_branch_kernel(%arg0: i32, %arg1: i32, %arg2: memref<2x4096x54xbf16, #tpu.memory_space<vmem>>, %arg3: memref<1x54x128xbf16, #tpu.memory_space<vmem>>, %arg4: memref<1x1x128xf32, #tpu.memory_space<vmem>>, %arg5: memref<1x6x128x128xbf16, #tpu.memory_space<vmem>>, %arg6: memref<1x1x128xf32, #tpu.memory_space<vmem>>, %arg7: memref<1x4096x128xbf16, #tpu.memory_space<vmem>>, %arg8: memref<1x1x8x128xf32, #tpu.memory_space<vmem>>) attributes {dimension_semantics = [#tpu.dimension_semantics<parallel>, #tpu.dimension_semantics<parallel>], iteration_bounds = array<i64: 2, 2>, scalar_prefetch = 0 : i64, scratch_operands = 0 : i64, tpu.core_type = #tpu.core_type<tc>, window_params = [{transform_indices = @transform_0, window_bounds = array<i64: 2, 4096, 54>}, {transform_indices = @transform_1, window_bounds = array<i64: 1, 54, 128>}, {transform_indices = @transform_2, window_bounds = array<i64: 1, 1, 128>}, {transform_indices = @transform_3, window_bounds = array<i64: 1, 6, 128, 128>}, {transform_indices = @transform_4, window_bounds = array<i64: 1, 1, 128>}, {transform_indices = @transform_5, window_bounds = array<i64: 1, 4096, 128>}, {transform_indices = @transform_6, window_bounds = array<i64: 1, 1, 8, 128>}]} {
    %c0 = arith.constant 0 : index
    %c0_0 = arith.constant 0 : index
    %c0_1 = arith.constant 0 : index
    %0 = vector.load %arg3[%c0, %c0_0, %c0_1] : memref<1x54x128xbf16, #tpu.memory_space<vmem>>, vector<1x54x128xbf16>
    %1 = vector.shape_cast %0 : vector<1x54x128xbf16> to vector<54x128xbf16>
    %c0_2 = arith.constant 0 : index
    %c0_3 = arith.constant 0 : index
    %c0_4 = arith.constant 0 : index
    %2 = vector.load %arg4[%c0_2, %c0_3, %c0_4] : memref<1x1x128xf32, #tpu.memory_space<vmem>>, vector<1x1x128xf32>
    %3 = vector.shape_cast %2 : vector<1x1x128xf32> to vector<1x128xf32>
    %c0_5 = arith.constant 0 : index
    %c0_6 = arith.constant 0 : index
    %c0_7 = arith.constant 0 : index
    %4 = vector.load %arg6[%c0_5, %c0_6, %c0_7] : memref<1x1x128xf32, #tpu.memory_space<vmem>>, vector<1x1x128xf32>
    %5 = vector.shape_cast %4 : vector<1x1x128xf32> to vector<1x128xf32>
    %6 = tpu.iota {dimensions = array<i32: 0>} : vector<512x128xi32>
    %c64_i32 = arith.constant 64 : i32
    %c0_i32 = arith.constant 0 : i32
    %7 = arith.cmpi eq, %c64_i32, %c0_i32 : i32
    %c1_i32 = arith.constant 1 : i32
    %8 = arith.select %7, %c1_i32, %c64_i32 : i32
    %9 = vector.broadcast %8 : i32 to vector<512x128xi32>
    %10 = arith.remsi %6, %9 : vector<512x128xi32>
    %c0_i32_8 = arith.constant 0 : i32
    %11 = vector.broadcast %c0_i32_8 : i32 to vector<512x128xi32>
    %12 = arith.cmpi ne, %10, %11 : vector<512x128xi32>
    %c0_i32_9 = arith.constant 0 : i32
    %13 = vector.broadcast %c0_i32_9 : i32 to vector<512x128xi32>
    %14 = arith.cmpi slt, %10, %13 : vector<512x128xi32>
    %c0_i32_10 = arith.constant 0 : i32
    %15 = arith.cmpi slt, %8, %c0_i32_10 : i32
    %16 = vector.broadcast %15 : i1 to vector<512x128xi1>
    %17 = vector.broadcast %16 : vector<512x128xi1> to vector<512x128xi1>
    %18 = arith.xori %14, %17 : vector<512x128xi1>
    %19 = arith.andi %18, %12 : vector<512x128xi1>
    %20 = vector.broadcast %8 : i32 to vector<512x128xi32>
    %21 = arith.addi %10, %20 : vector<512x128xi32>
    %22 = arith.select %19, %21, %10 : vector<512x128xi1>, vector<512x128xi32>
    %c0_i32_11 = arith.constant 0 : i32
    %23 = vector.broadcast %c0_i32_11 : i32 to vector<512x128xi32>
    %24 = arith.cmpi eq, %22, %23 : vector<512x128xi32>
    %cst = arith.constant 0.000000e+00 : bf16
    %25 = vector.broadcast %cst : bf16 to vector<1x128xbf16>
    %cst_12 = arith.constant 0.000000e+00 : f32
    %26 = vector.broadcast %cst_12 : f32 to vector<8x128xf32>
    %cst_13 = arith.constant 0.000000e+00 : bf16
    %27 = vector.broadcast %cst_13 : bf16 to vector<64x128xbf16>
    %c0_i32_14 = arith.constant 0 : i32
    %c8_i32 = arith.constant 8 : i32
    %28 = arith.addi %c0_i32_14, %c8_i32 : i32
    %c1_i32_15 = arith.constant 1 : i32
    %29:2 = scf.for %arg9 = %c0_i32_14 to %28 step %c1_i32_15 iter_args(%arg10 = %26, %arg11 = %27) -> (vector<8x128xf32>, vector<64x128xbf16>)  : i32 {
      %c512_i32 = arith.constant 512 : i32
      %33 = arith.muli %arg9, %c512_i32 : i32
      %34 = tpu.assume_multiple %33, 512 : i32
      %c0_21 = arith.constant 0 : index
      %35 = arith.index_cast %34 : i32 to index
      %c0_22 = arith.constant 0 : index
      %36 = vector.load %arg2[%c0_21, %35, %c0_22] : memref<2x4096x54xbf16, #tpu.memory_space<vmem>>, vector<1x512x54xbf16>
      %37 = vector.shape_cast %36 : vector<1x512x54xbf16> to vector<512x54xbf16>
      %cst_23 = arith.constant dense<0.000000e+00> : vector<512x128xf32>
      %38 = tpu.matmul %37, %1, %cst_23 {dimension_numbers = #tpu.dot_dimension_numbers<[1], [0], [0], [1], [0, 0, 1, 1], [], []>} : vector<512x54xbf16>, vector<54x128xbf16>, vector<512x128xf32> -> vector<512x128xf32>
      %39 = vector.broadcast %3 : vector<1x128xf32> to vector<512x128xf32>
      %40 = arith.addf %38, %39 : vector<512x128xf32>
      %cst_24 = arith.constant 0.000000e+00 : f32
      %41 = vector.broadcast %cst_24 : f32 to vector<512x128xf32>
      %42 = arith.maximumf %40, %41 : vector<512x128xf32>
      %43 = arith.truncf %42 : vector<512x128xf32> to vector<512x128xbf16>
      %c1 = arith.constant 1 : index
      %44 = arith.index_cast %34 : i32 to index
      %c0_25 = arith.constant 0 : index
      %45 = vector.load %arg2[%c1, %44, %c0_25] : memref<2x4096x54xbf16, #tpu.memory_space<vmem>>, vector<1x512x54xbf16>
      %46 = vector.shape_cast %45 : vector<1x512x54xbf16> to vector<512x54xbf16>
      %cst_26 = arith.constant dense<0.000000e+00> : vector<512x128xf32>
      %47 = tpu.matmul %46, %1, %cst_26 {dimension_numbers = #tpu.dot_dimension_numbers<[1], [0], [0], [1], [0, 0, 1, 1], [], []>} : vector<512x54xbf16>, vector<54x128xbf16>, vector<512x128xf32> -> vector<512x128xf32>
      %48 = vector.broadcast %3 : vector<1x128xf32> to vector<512x128xf32>
      %49 = arith.addf %47, %48 : vector<512x128xf32>
      %cst_27 = arith.constant 0.000000e+00 : f32
      %50 = vector.broadcast %cst_27 : f32 to vector<512x128xf32>
      %51 = arith.maximumf %49, %50 : vector<512x128xf32>
      %52 = arith.truncf %51 : vector<512x128xf32> to vector<512x128xbf16>
      %53 = vector.extract_strided_slice %52 {offsets = [0, 0], sizes = [448, 128], strides = [1, 1]} : vector<512x128xbf16> to vector<448x128xbf16>
      %54 = tpu.concatenate %arg11, %53 in 0 : vector<64x128xbf16>, vector<448x128xbf16> -> vector<512x128xbf16>
      %c0_28 = arith.constant 0 : index
      %c0_29 = arith.constant 0 : index
      %c0_30 = arith.constant 0 : index
      %c0_31 = arith.constant 0 : index
      %55 = vector.load %arg5[%c0_28, %c0_29, %c0_30, %c0_31] : memref<1x6x128x128xbf16, #tpu.memory_space<vmem>>, vector<1x1x128x128xbf16>
      %56 = vector.shape_cast %55 : vector<1x1x128x128xbf16> to vector<128x128xbf16>
      %cst_32 = arith.constant dense<0.000000e+00> : vector<512x128xf32>
      %57 = tpu.matmul %54, %56, %cst_32 {dimension_numbers = #tpu.dot_dimension_numbers<[1], [0], [0], [1], [0, 0, 1, 1], [], []>} : vector<512x128xbf16>, vector<128x128xbf16>, vector<512x128xf32> -> vector<512x128xf32>
      %c0_33 = arith.constant 0 : index
      %c1_34 = arith.constant 1 : index
      %c0_35 = arith.constant 0 : index
      %c0_36 = arith.constant 0 : index
      %58 = vector.load %arg5[%c0_33, %c1_34, %c0_35, %c0_36] : memref<1x6x128x128xbf16, #tpu.memory_space<vmem>>, vector<1x1x128x128xbf16>
      %59 = vector.shape_cast %58 : vector<1x1x128x128xbf16> to vector<128x128xbf16>
      %cst_37 = arith.constant dense<0.000000e+00> : vector<512x128xf32>
      %60 = tpu.matmul %43, %59, %cst_37 {dimension_numbers = #tpu.dot_dimension_numbers<[1], [0], [0], [1], [0, 0, 1, 1], [], []>} : vector<512x128xbf16>, vector<128x128xbf16>, vector<512x128xf32> -> vector<512x128xf32>
      %61 = arith.addf %57, %60 : vector<512x128xf32>
      %c0_38 = arith.constant 0 : index
      %c2 = arith.constant 2 : index
      %c0_39 = arith.constant 0 : index
      %c0_40 = arith.constant 0 : index
      %62 = vector.load %arg5[%c0_38, %c2, %c0_39, %c0_40] : memref<1x6x128x128xbf16, #tpu.memory_space<vmem>>, vector<1x1x128x128xbf16>
      %63 = vector.shape_cast %62 : vector<1x1x128x128xbf16> to vector<128x128xbf16>
      %cst_41 = arith.constant dense<0.000000e+00> : vector<512x128xf32>
      %64 = tpu.matmul %52, %63, %cst_41 {dimension_numbers = #tpu.dot_dimension_numbers<[1], [0], [0], [1], [0, 0, 1, 1], [], []>} : vector<512x128xbf16>, vector<128x128xbf16>, vector<512x128xf32> -> vector<512x128xf32>
      %65 = arith.addf %61, %64 : vector<512x128xf32>
      %66 = vector.extract_strided_slice %54 {offsets = [0, 0], sizes = [511, 128], strides = [1, 1]} : vector<512x128xbf16> to vector<511x128xbf16>
      %67 = tpu.concatenate %25, %66 in 0 : vector<1x128xbf16>, vector<511x128xbf16> -> vector<512x128xbf16>
      %cst_42 = arith.constant 0.000000e+00 : bf16
      %68 = vector.broadcast %cst_42 : bf16 to vector<512x128xbf16>
      %69 = arith.select %24, %68, %67 : vector<512x128xi1>, vector<512x128xbf16>
      %c0_43 = arith.constant 0 : index
      %c3 = arith.constant 3 : index
      %c0_44 = arith.constant 0 : index
      %c0_45 = arith.constant 0 : index
      %70 = vector.load %arg5[%c0_43, %c3, %c0_44, %c0_45] : memref<1x6x128x128xbf16, #tpu.memory_space<vmem>>, vector<1x1x128x128xbf16>
      %71 = vector.shape_cast %70 : vector<1x1x128x128xbf16> to vector<128x128xbf16>
      %cst_46 = arith.constant dense<0.000000e+00> : vector<512x128xf32>
      %72 = tpu.matmul %69, %71, %cst_46 {dimension_numbers = #tpu.dot_dimension_numbers<[1], [0], [0], [1], [0, 0, 1, 1], [], []>} : vector<512x128xbf16>, vector<128x128xbf16>, vector<512x128xf32> -> vector<512x128xf32>
      %73 = arith.addf %65, %72 : vector<512x128xf32>
      %74 = vector.extract_strided_slice %43 {offsets = [0, 0], sizes = [511, 128], strides = [1, 1]} : vector<512x128xbf16> to vector<511x128xbf16>
      %75 = tpu.concatenate %25, %74 in 0 : vector<1x128xbf16>, vector<511x128xbf16> -> vector<512x128xbf16>
      %cst_47 = arith.constant 0.000000e+00 : bf16
      %76 = vector.broadcast %cst_47 : bf16 to vector<512x128xbf16>
      %77 = arith.select %24, %76, %75 : vector<512x128xi1>, vector<512x128xbf16>
      %c0_48 = arith.constant 0 : index
      %c4 = arith.constant 4 : index
      %c0_49 = arith.constant 0 : index
      %c0_50 = arith.constant 0 : index
      %78 = vector.load %arg5[%c0_48, %c4, %c0_49, %c0_50] : memref<1x6x128x128xbf16, #tpu.memory_space<vmem>>, vector<1x1x128x128xbf16>
      %79 = vector.shape_cast %78 : vector<1x1x128x128xbf16> to vector<128x128xbf16>
      %cst_51 = arith.constant dense<0.000000e+00> : vector<512x128xf32>
      %80 = tpu.matmul %77, %79, %cst_51 {dimension_numbers = #tpu.dot_dimension_numbers<[1], [0], [0], [1], [0, 0, 1, 1], [], []>} : vector<512x128xbf16>, vector<128x128xbf16>, vector<512x128xf32> -> vector<512x128xf32>
      %81 = arith.addf %73, %80 : vector<512x128xf32>
      %82 = vector.extract_strided_slice %52 {offsets = [0, 0], sizes = [511, 128], strides = [1, 1]} : vector<512x128xbf16> to vector<511x128xbf16>
      %83 = tpu.concatenate %25, %82 in 0 : vector<1x128xbf16>, vector<511x128xbf16> -> vector<512x128xbf16>
      %cst_52 = arith.constant 0.000000e+00 : bf16
      %84 = vector.broadcast %cst_52 : bf16 to vector<512x128xbf16>
      %85 = arith.select %24, %84, %83 : vector<512x128xi1>, vector<512x128xbf16>
      %c0_53 = arith.constant 0 : index
      %c5 = arith.constant 5 : index
      %c0_54 = arith.constant 0 : index
      %c0_55 = arith.constant 0 : index
      %86 = vector.load %arg5[%c0_53, %c5, %c0_54, %c0_55] : memref<1x6x128x128xbf16, #tpu.memory_space<vmem>>, vector<1x1x128x128xbf16>
      %87 = vector.shape_cast %86 : vector<1x1x128x128xbf16> to vector<128x128xbf16>
      %cst_56 = arith.constant dense<0.000000e+00> : vector<512x128xf32>
      %88 = tpu.matmul %85, %87, %cst_56 {dimension_numbers = #tpu.dot_dimension_numbers<[1], [0], [0], [1], [0, 0, 1, 1], [], []>} : vector<512x128xbf16>, vector<128x128xbf16>, vector<512x128xf32> -> vector<512x128xf32>
      %89 = arith.addf %81, %88 : vector<512x128xf32>
      %90 = vector.broadcast %5 : vector<1x128xf32> to vector<512x128xf32>
      %91 = arith.addf %89, %90 : vector<512x128xf32>
      %cst_57 = arith.constant 0.000000e+00 : f32
      %92 = vector.broadcast %cst_57 : f32 to vector<512x128xf32>
      %93 = arith.maximumf %91, %92 : vector<512x128xf32>
      %c0_58 = arith.constant 0 : index
      %94 = arith.index_cast %34 : i32 to index
      %c0_59 = arith.constant 0 : index
      %95 = vector.load %arg7[%c0_58, %94, %c0_59] : memref<1x4096x128xbf16, #tpu.memory_space<vmem>>, vector<1x512x128xbf16>
      %96 = vector.shape_cast %95 : vector<1x512x128xbf16> to vector<512x128xbf16>
      %97 = arith.extf %96 : vector<512x128xbf16> to vector<512x128xf32>
      %98 = arith.mulf %93, %97 : vector<512x128xf32>
      %99 = vector.shape_cast %98 : vector<512x128xf32> to vector<64x8x128xf32>
      %cst_60 = arith.constant dense<0.000000e+00> : vector<8x128xf32>
      %100 = vector.multi_reduction <add>, %99, %cst_60 [0] : vector<64x8x128xf32> to vector<8x128xf32>
      %101 = arith.addf %arg10, %100 : vector<8x128xf32>
      %102 = vector.extract_strided_slice %52 {offsets = [448, 0], sizes = [64, 128], strides = [1, 1]} : vector<512x128xbf16> to vector<64x128xbf16>
      scf.yield %101, %102 : vector<8x128xf32>, vector<64x128xbf16>
    }
    %c8_i32_16 = arith.constant 8 : i32
    %c0_17 = arith.constant 0 : index
    %c0_18 = arith.constant 0 : index
    %c0_19 = arith.constant 0 : index
    %c0_20 = arith.constant 0 : index
    %30 = vector.load %arg8[%c0_17, %c0_18, %c0_19, %c0_20] : memref<1x1x8x128xf32, #tpu.memory_space<vmem>>, vector<1x1x8x128xf32>
    %31 = vector.shape_cast %30 : vector<1x1x8x128xf32> to vector<8x128xf32>
    %32 = vector.shape_cast %29#0 : vector<8x128xf32> to vector<1x1x8x128xf32>
    tpu.vector_store %arg8[%c0_17, %c0_18, %c0_19, %c0_20], %32 {strides = array<i32>} : memref<1x1x8x128xf32, #tpu.memory_space<vmem>>, vector<1x1x8x128xf32>,
    return
  }
  func.func @transform_0(%arg0: i32, %arg1: i32) -> (i32, i32, i32) {
    %c0_i32 = arith.constant 0 : i32
    %c0_i32_0 = arith.constant 0 : i32
    %c0_i32_1 = arith.constant 0 : i32
    return %arg1, %c0_i32, %c0_i32_0 : i32, i32, i32
  }
  func.func @transform_1(%arg0: i32, %arg1: i32) -> (i32, i32, i32) {
    %c0_i32 = arith.constant 0 : i32
    %c0_i32_0 = arith.constant 0 : i32
    %c0_i32_1 = arith.constant 0 : i32
    return %arg0, %c0_i32, %c0_i32_0 : i32, i32, i32
  }
  func.func @transform_2(%arg0: i32, %arg1: i32) -> (i32, i32, i32) {
    %c0_i32 = arith.constant 0 : i32
    %c0_i32_0 = arith.constant 0 : i32
    %c0_i32_1 = arith.constant 0 : i32
    return %arg0, %c0_i32, %c0_i32_0 : i32, i32, i32
  }
  func.func @transform_3(%arg0: i32, %arg1: i32) -> (i32, i32, i32, i32) {
    %c0_i32 = arith.constant 0 : i32
    %c0_i32_0 = arith.constant 0 : i32
    %c0_i32_1 = arith.constant 0 : i32
    %c0_i32_2 = arith.constant 0 : i32
    return %arg0, %c0_i32, %c0_i32_0, %c0_i32_1 : i32, i32, i32, i32
  }
  func.func @transform_4(%arg0: i32, %arg1: i32) -> (i32, i32, i32) {
    %c0_i32 = arith.constant 0 : i32
    %c0_i32_0 = arith.constant 0 : i32
    %c0_i32_1 = arith.constant 0 : i32
    return %arg0, %c0_i32, %c0_i32_0 : i32, i32, i32
  }
  func.func @transform_5(%arg0: i32, %arg1: i32) -> (i32, i32, i32) {
    %c0_i32 = arith.constant 0 : i32
    %c0_i32_0 = arith.constant 0 : i32
    %c0_i32_1 = arith.constant 0 : i32
    return %arg0, %c0_i32, %c0_i32_0 : i32, i32, i32
  }
  func.func @transform_6(%arg0: i32, %arg1: i32) -> (i32, i32, i32, i32) {
    %c0_i32 = arith.constant 0 : i32
    %c0_i32_0 = arith.constant 0 : i32
    %c0_i32_1 = arith.constant 0 : i32
    return %arg0, %arg1, %c0_i32, %c0_i32_0 : i32, i32, i32, i32
  }
}

</mosaic_0001>

<bundles_post_ra>
// kernel: discriminator_forward.1
= control target key start
LH: loop header
LB: loop body
LE: loop exit
PB: predicated region body
PF: predicated region fallthrough
CT: control target
= control target key end

     0   :  { %s8966_s21 = smov 0   ;;  %s8968_s22 = smov 0   ;;  %s10818_s0 = inlined_call_operand.vmem [shape: bf16[4,4096,54], index: 0, kind: input, shape index: {}]   ;;  %s10819_s1 = inlined_call_operand.vmem [shape: bf16[2,54,128], index: 1, kind: input, shape index: {}]   ;;  %s10820_s2 = inlined_call_operand.vmem [shape: f32[2,1,128], index: 2, kind: input, shape index: {}]   ;;  %s10821_s3 = inlined_call_operand.vmem [shape: bf16[2,6,128,128], index: 3, kind: input, shape index: {}]   ;;  %s10822_s4 = inlined_call_operand.vmem [shape: f32[2,1,128], index: 4, kind: input, shape index: {}]   ;;  %s10823_s5 = inlined_call_operand.vmem [shape: bf16[2,4096,128], index: 5, kind: input, shape index: {}]   ;;  %s10824_s6 = inlined_call_operand.vmem [shape: f32[2,2,8,128], index: 6, kind: output, shape index: {}]  }
   0x1   :  { %s8970_s23 = smov 0   ;;  %s8972_s24 = smov 0  }
   0x2   :  { %s8974_s25 = smov 0  }
   0x3 LB: > { %s25_s26 = sadd.s32 1, %s8895_s23  ;;  %s28_s27 = sadd.s32 1, %s8899_s24  ;;  %s8903_s25 = sphi %s8974_s25, %s16_s25   ;;  %s8899_s24 = sphi %s8972_s24, %s11325_s24   ;;  %s8895_s23 = sphi %s8970_s23, %s11324_s23   ;;  %s8891_s22 = sphi %s8968_s22, %s11323_s22   ;;  %s8887_s21 = sphi %s8966_s21, %s11322_s21  }
   0x4   : > { %p26_p0 = scmp.ge.s32.totalorder %s25_s26, 2  ;;  %p6641_p1 = scmp.ge.s32.totalorder %s8903_s25, 1 }
   0x5   : > { %p274_p2 = scmp.lt.s32.totalorder %s8903_s25, 5 }
   0x6   : > { %s11327_s26 = smov (%p26_p0, %s25_s26), 0  ;;  %s11329_s27 = smov (!%p26_p0, %s28_s27), %s8899_s24 }
   0x7   : > { %p275_p3 = pnand %p6641_p1, %p274_p2  ;;  %p30_p4 = scmp.ge.s32.totalorder %s11329_s27, 2 }
   0x9   : > { %s11331_s27 = smov (%p30_p4, %s11329_s27), 0  ;;  %278 = sbr.rel (%p275_p3) target bundleno = 904 (0x388), region = 44 }
  0x10   : > { %s6642_s28 = sshll.u32 %s8887_s21, 1  ;;  %p336_p5 = scmp.lt.s32.totalorder %s8891_s22, 1  ;;  %v377_v0 = vlaneseq  ;;  %v10981_v26 = vmov 0  ;;  %v10984_v27 = vmov 0  ;;  %v10987_v28 = vmov 0 }
  0x11   : > { %p330_p6 = scmp.lt.s32.totalorder %s6642_s28, 3  ;;  %p359_p7 = scmp.lt.s32.totalorder %s8887_s21, 1  ;;  %v10990_v29 = vmov 0  ;;  %v10993_v30 = vmov 0  ;;  %v10996_v31 = vmov 0  ;;  %v10999_v32 = vmov 0 }
  0x12   : > { %s11333_s22 = smov (!%p336_p5, %s8891_s22), 1  ;;  %v378_v1 = vshrl.u32 %v377_v0, 7  ;;  %v11002_v33 = vmov 0  ;;  %v9090_v34 = vmov 0   ;;  %v9092_v35 = vmov 0   ;;  %s9100_s15 = smov 0  }
  0x13   : > { %s11335_s28 = smov (!%p330_p6, %s6642_s28), 3  ;;  %s8635_s29 = smul.u32 28, %s11333_s22  ;;  %v9094_v36 = vmov 0   ;;  %v9096_v37 = vmov 0   ;;  %v9098_v38 = vmov 0.0  }
  0x14   : > { %s343_s8 = scalar_lea.vmem %s10820_s2, %s11333_s22  ;;  %v386_v2 = vadd.s32 64, %v378_v1  ;;  %v394_v3 = vadd.s32 128, %v378_v1  ;;  %v402_v4 = vadd.s32 192, %v378_v1  ;;  %v410_v5 = vadd.s32 256, %v378_v1  ;;  %s7207_s9 = sshll.u32 %s11335_s28, 11 }
  0x15   : > { %s8636_s10 = smul.u32 384, %s11333_s22  ;;  %v9008_v6 = vld [vmem:[%s343_s8] ss:$0 sm:$0xff]  ;;  %v418_v7 = vadd.s32 320, %v378_v1  ;;  %v426_v8 = vadd.s32 384, %v378_v1  ;;  %s9013_s13 = scalar_lea.vmem %s10818_s0, %s7207_s9  ;;  %v434_v9 = vadd.s32 448, %v378_v1 }
  0x16   : > { %10972 = vst [vmem:[#allocation2_spill] sm:$0xff] %v9008_v6  ;;  %s340_s16 = scalar_lea.vmem %s10819_s1, %s8635_s29  ;;  %v446_v10 = vand.u32 63, %v378_v1  ;;  %v502_v11 = vand.u32 63, %v386_v2  ;;  %v558_v12 = vand.u32 63, %v394_v3  ;;  %s351_s30 = scalar_lea.vmem %s10822_s4, %s11333_s22  ;;  %v614_v21 = vand.u32 63, %v402_v4 }
  0x17   : > { %s9021_s19 = scalar_lea.vmem %s10821_s3, %s8636_s10  ;;  %v9027_v13 = vld [vmem:[%s340_s16] sm:$0xf]  ;;  %v9029_v14 = vld [vmem:[%s340_s16 + $0x4] sm:$0xf]  ;;  %v9031_v15 = vld [vmem:[%s340_s16 + $0x8] sm:$0xf] }
  0x18   : > { %10973 = vst [vmem:[#allocation3_spill] sm:$0xff] %v9027_v13  ;;  %10974 = vst [vmem:[#allocation4_spill] sm:$0xff] %v9029_v14  ;;  %s7208_s29 = sshll.u32 %s11333_s22, 11  ;;  %s6649_s7 = sshll.u32 %s11333_s22, 1  ;;  %v9035_v16 = vld [vmem:[%s340_s16 + $0xc] sm:$0xf] }
  0x19   : > { %10975 = vst [vmem:[#allocation5_spill] sm:$0xff] %v9031_v15  ;;  %10976 = vst [vmem:[#allocation6_spill] sm:$0xff] %v9035_v16  ;;  %v9037_v17 = vld [vmem:[%s340_s16 + $0x10] sm:$0xf]  ;;  %s9042_s10 = scalar_lea.vmem %s10823_s5, %s7208_s29  ;;  %v9044_v18 = vld [vmem:[%s340_s16 + $0x14] sm:$0xf] }
  0x1a   : > { %10977 = vst [vmem:[#allocation7_spill] sm:$0xff] %v9037_v17  ;;  %10978 = vst [vmem:[#allocation8_spill] sm:$0xff] %v9044_v18  ;;  %v9046_v19 = vld [vmem:[%s340_s16 + $0x18] sm:$0x7]  ;;  %v9048_v20 = vld [vmem:[%s351_s30] ss:$0 sm:$0xff] }
  0x1b   : > { %10979 = vst [vmem:[#allocation9_spill] sm:$0xff] %v9046_v19  ;;  %10980 = vst [vmem:[#allocation10_spill] sm:$0xff] %v9048_v20  ;;  %s11337_s21 = smov (!%p359_p7, %s8887_s21), 1  ;;  %v670_v22 = vand.u32 63, %v410_v5  ;;  %v726_v23 = vand.u32 63, %v418_v7  ;;  %v782_v24 = vand.u32 63, %v426_v8 }
  0x1c   : > { %v838_v25 = vand.u32 63, %v434_v9  ;;  %vm9053_vm0 = vcmp.eq.s32.totalorder %v446_v10, 0  ;;  %vm9057_vm1 = vcmp.eq.s32.totalorder %v502_v11, 0  ;;  %vm9061_vm2 = vcmp.eq.s32.totalorder %v558_v12, 0  ;;  %s362_s22 = sadd.s32 %s6649_s7, %s11337_s21 }
  0x1d   : > { %v10982_v26 = vsel %vm9053_vm0, 4294967295, %v10981_v26  ;;  %v10985_v27 = vsel %vm9057_vm1, 4294967295, %v10984_v27  ;;  %v10988_v28 = vsel %vm9061_vm2, 4294967295, %v10987_v28  ;;  %vm9065_vm3 = vcmp.eq.s32.totalorder %v614_v21, 0  ;;  %s6650_s11 = sshll.u32 %s362_s22, 3 }
  0x1e   : > { %10983 = vst [vmem:[#allocation11_spill] sm:$0xff] %v10982_v26  ;;  %10986 = vst [vmem:[#allocation12_spill] sm:$0xff] %v10985_v27  ;;  %v10991_v29 = vsel %vm9065_vm3, 4294967295, %v10990_v29  ;;  %vm9069_vm4 = vcmp.eq.s32.totalorder %v670_v22, 0  ;;  %vm9073_vm5 = vcmp.eq.s32.totalorder %v726_v23, 0  ;;  %vm9077_vm6 = vcmp.eq.s32.totalorder %v782_v24, 0  ;;  %s9088_s14 = scalar_lea.vmem %s10824_s6, %s6650_s11 }
  0x1f   : > { %10989 = vst [vmem:[#allocation13_spill] sm:$0xff] %v10988_v28  ;;  %10992 = vst [vmem:[#allocation14_spill] sm:$0xff] %v10991_v29  ;;  %v10994_v30 = vsel %vm9069_vm4, 4294967295, %v10993_v30  ;;  %v10997_v31 = vsel %vm9073_vm5, 4294967295, %v10996_v31  ;;  %v11000_v32 = vsel %vm9077_vm6, 4294967295, %v10999_v32  ;;  %vm9081_vm7 = vcmp.eq.s32.totalorder %v838_v25, 0 }
  0x20   : > { %10995 = vst [vmem:[#allocation15_spill] sm:$0xff] %v10994_v30  ;;  %10998 = vst [vmem:[#allocation16_spill] sm:$0xff] %v10997_v31  ;;  %v11003_v33 = vsel %vm9081_vm7, 4294967295, %v11002_v33 }
  0x21   : > { %11001 = vst [vmem:[#allocation17_spill] sm:$0xff] %v11000_v32  ;;  %11004 = vst [vmem:[#allocation18_spill] sm:$0xff] %v11003_v33 }
  0x22 LB: >> { %v11005_v6 = vld [vmem:[#allocation2_spill] sm:$0xff]  ;;  %11009 = vst [vmem:[#allocation19_spill] sm:$0xff] %v8907_v34  ;;  %11010 = vst [vmem:[#allocation20_spill] sm:$0xff] %v8911_v35  ;;  %v11014_v14 = vld [vmem:[#allocation4_spill] sm:$0xff]  ;;  %s6651_s16 = sshll.u32 %s8927_s15, 9  ;;  %vm1541_vm8 = vcmask 441344   ;;  %v8919_v37 = vphi %v9096_v37, %v10112_v37   ;;  %v8915_v36 = vphi %v9094_v36, %v11320_v36   ;;  %v8911_v35 = vphi %v9092_v35, %v11319_v35   ;;  %v8907_v34 = vphi %v9090_v34, %v11318_v34   ;;  %s8927_s15 = sphi %s9100_s15, %s1279_s15   ;;  %v8923_v38 = vphi %v9098_v38, %v11321_v38  }
  0x23   : >> { %11011 = vst [vmem:[#allocation21_spill] sm:$0xff] %v8915_v36  ;;  %11012 = vst [vmem:[#allocation22_spill] sm:$0xff] %v8919_v37  ;;  %v11015_v13 = vld [vmem:[#allocation3_spill] sm:$0xff]  ;;  %v11016_v16 = vld [vmem:[#allocation6_spill] sm:$0xff]  ;;  %s9125_s17 = sshra.s32 %s6651_s16, 3  ;;  %vm1638_vm9 = vcmask 1042432  }
  0x24   : >> { %11013 = vst [vmem:[#allocation23_spill] sm:$0xff] %v8923_v38  ;;  %v6686_v39 = vcombine.low %v11015_v13, %v11014_v14  ;;  %v11017_v15 = vld [vmem:[#allocation5_spill] sm:$0xff]  ;;  %v11018_v18 = vld [vmem:[#allocation8_spill] sm:$0xff]  ;;  %v11019_v17 = vld [vmem:[#allocation7_spill] sm:$0xff]  ;;  %s6652_s18 = sshll.u32 %s9125_s17, 2  ;;  %vm8929_vm11 = vmmov 0  }
  0x25   : >> { %v6687_v40 = vcombine.low %v11017_v15, %v11016_v16  ;;  %v6688_v41 = vcombine.low %v11019_v17, %v11018_v18  ;;  %s9133_s20 = scalar_lea.vmem %s9013_s13, %s6652_s18  ;;  %v11020_v19 = vld [vmem:[#allocation9_spill] sm:$0xff]  ;;  %v8775_v45 = vld [vmem:[%s9021_s19 + $0x40] sm:$0xff]   ;;  %v8785_v52 = vld [vmem:[%s9021_s19 + $0x48] sm:$0xff]   ;;  %vm10911_vm13 = vsmask.f32 256  ;;  %vm4148_vm14 = vcmask 1040384   ;;  %s10686_s28 = scalar_lea.vmem %s9042_s10, %s6652_s18 }
  0x26   : >> { %v11007_v29 = vld [vmem:[#allocation14_spill] sm:$0xff]  ;;  %v11008_v28 = vld [vmem:[#allocation13_spill] sm:$0xff]  ;;  %7689 = vmatprep.subr.bf16.mxu0 %v6686_v39  ;;  %7761 = vmatprep.subr.bf16.mxu1 %v6686_v39  ;;  %v6689_v44 = vcombine.low %v11020_v19, %v11020_v19  ;;  %v8729_v48 = vld [vmem:[%s9133_s20 + $0x8] sm:$0xff]   ;;  %s1279_s15 = sadd.s32 1, %s8927_s15  }
  0x27   : >> { %7690 = vmatpush3.bf16.msra.mxu0 %v6686_v39  ;;  %7762 = vmatpush3.bf16.msra.mxu1 %v6686_v39  ;;  %v8727_v42 = vld [vmem:[%s9133_s20] sm:$0xff]   ;;  %v8730_v49 = vld [vmem:[%s9133_s20 + $0x808] sm:$0xff]   ;;  %v8731_v50 = vld [vmem:[%s9133_s20 + $0x10] sm:$0xff]   ;;  %vm11033_vm2 = vnez %v11008_v28  ;;  %vm11034_vm3 = vnez %v11007_v29  ;;  %p1276_p8 = scmp.ge.s32.totalorder %s1279_s15, 8  }
  0x28   : >> { %v11006_v32 = vld [vmem:[#allocation17_spill] sm:$0xff]  ;;  %7691 = vmatprep.subr.bf16.mxu0 %v6687_v40  ;;  %7763 = vmatprep.subr.bf16.mxu1 %v6687_v40  ;;  %v8728_v43 = vld [vmem:[%s9133_s20 + $0x800] sm:$0xff]   ;;  %v1640_v47 = vsel %vm1638_vm9, %v6689_v44, 0  ;;  %v8732_v51 = vld [vmem:[%s9133_s20 + $0x810] sm:$0xff]  }
  0x29   : >> { %7697 = vmatprep.mubr.msk.bf16.mxu0 %vm1541_vm8, %v8727_v42  ;;  %7769 = vmatprep.mubr.msk.bf16.mxu1 %vm1541_vm8, %v8728_v43  ;;  %v8776_v46 = vld [vmem:[%s9021_s19 + $0xc0] sm:$0xff]   ;;  %v8786_v53 = vld [vmem:[%s9021_s19 + $0xc8] sm:$0xff]   ;;  %v8733_v54 = vld [vmem:[%s9133_s20 + $0x18] sm:$0xff]   ;;  %vm11040_vm6 = vnez %v11006_v32 }
  0x2a   : >> { %v8734_v55 = vld [vmem:[%s9133_s20 + $0x818] sm:$0xff]   ;;  %v8735_v56 = vld [vmem:[%s9133_s20 + $0x20] sm:$0xff]   ;;  %v8737_v58 = vld [vmem:[%s9133_s20 + $0x28] sm:$0xff]  }
  0x2b   : >> { %7692 = vmatpush3.bf16.msra.mxu0 %v6687_v40  ;;  %7764 = vmatpush3.bf16.msra.mxu1 %v6687_v40  ;;  %v8736_v57 = vld [vmem:[%s9133_s20 + $0x820] sm:$0xff]   ;;  %v8738_v59 = vld [vmem:[%s9133_s20 + $0x828] sm:$0xff]   ;;  %v8739_v60 = vld [vmem:[%s9133_s20 + $0x30] sm:$0xff]  }
  0x2c   : >> { %7693 = vmatprep.subr.bf16.mxu0 %v6688_v41  ;;  %7765 = vmatprep.subr.bf16.mxu1 %v6688_v41  ;;  %v8740_v61 = vld [vmem:[%s9133_s20 + $0x830] sm:$0xff]   ;;  %v8741_v62 = vld [vmem:[%s9133_s20 + $0x38] sm:$0xff]   ;;  %v8743_v0 = vld [vmem:[%s9133_s20 + $0x40] sm:$0xff]  }
  0x2d   : >> { %v8742_v63 = vld [vmem:[%s9133_s20 + $0x838] sm:$0xff]   ;;  %v8744_v1 = vld [vmem:[%s9133_s20 + $0x840] sm:$0xff]   ;;  %v8745_v2 = vld [vmem:[%s9133_s20 + $0x48] sm:$0xff]  }
  0x2e   : >> { %v8746_v3 = vld [vmem:[%s9133_s20 + $0x848] sm:$0xff]   ;;  %v8747_v4 = vld [vmem:[%s9133_s20 + $0x50] sm:$0xff]   ;;  %v8749_v7 = vld [vmem:[%s9133_s20 + $0x58] sm:$0xff]  }
  0x2f   : >> { %7694 = vmatpush3.bf16.msra.mxu0 %v6688_v41  ;;  %7766 = vmatpush3.bf16.msra.mxu1 %v6688_v41  ;;  %v8748_v5 = vld [vmem:[%s9133_s20 + $0x850] sm:$0xff]   ;;  %v8750_v8 = vld [vmem:[%s9133_s20 + $0x858] sm:$0xff]   ;;  %v8751_v9 = vld [vmem:[%s9133_s20 + $0x60] sm:$0xff]  }
  0x30   : >> { %8633 = vmatprep.subr.msk.bf16.mxu0 %vm1638_vm9, %v6689_v44  ;;  %8634 = vmatprep.subr.msk.bf16.mxu1 %vm1638_vm9, %v6689_v44  ;;  %v8752_v10 = vld [vmem:[%s9133_s20 + $0x860] sm:$0xff]   ;;  %v8753_v11 = vld [vmem:[%s9133_s20 + $0x68] sm:$0xff]   ;;  %v8755_v21 = vld [vmem:[%s9133_s20 + $0x70] sm:$0xff]  }
  0x31   : >> { %v8754_v12 = vld [vmem:[%s9133_s20 + $0x868] sm:$0xff]   ;;  %v8756_v22 = vld [vmem:[%s9133_s20 + $0x870] sm:$0xff]   ;;  %v8757_v23 = vld [vmem:[%s9133_s20 + $0x78] sm:$0xff]  }
  0x32   : >> { %v8758_v24 = vld [vmem:[%s9133_s20 + $0x878] sm:$0xff]   ;;  %v8793_v25 = vld [vmem:[%s9021_s19 + $0x50] sm:$0xff]   ;;  %v8759_v40 = vld [vmem:[%s9133_s20 + $0x80] sm:$0xff]  }
  0x33   : >> { %7696 = vmatpush3.bf16.msra.mxu0 %v1640_v47  ;;  %7768 = vmatpush3.bf16.msra.mxu1 %v1640_v47  ;;  %v8794_v39 = vld [vmem:[%s9021_s19 + $0xd0] sm:$0xff]   ;;  %v8795_v41 = vld [vmem:[%s9021_s19 + $0x58] sm:$0xff]   ;;  %v8760_v43 = vld [vmem:[%s9133_s20 + $0x880] sm:$0xff]  }
  0x34   : >> { %7833 = vmatprep.subr.bf16.mxu1 %v8775_v45  ;;  %8073 = vmatprep.subr.bf16.mxu0 %v8776_v46  ;;  %v8796_v42 = vld [vmem:[%s9021_s19 + $0xd8] sm:$0xff]   ;;  %v8797_v44 = vld [vmem:[%s9021_s19 + $0x60] sm:$0xff]   ;;  %v8762_v47 = vld [vmem:[%s9133_s20 + $0x888] sm:$0xff]  }
  0x35   : >> { %v11021_v26 = vld [vmem:[#allocation11_spill] sm:$0xff]  ;;  %vm4152_vm12 = vmpackc.low %vm8929_vm11, %vm8929_vm11  ;;  %v11031_v27 = vld [vmem:[#allocation12_spill] sm:$0xff] }
  0x36   : >> { %7698 = vmatmul.mubr.msk.bf16.vlgmr.msra.gmra.mrb[0].mxu0 %vm1541_vm8, %v8729_v48  ;;  %7770 = vmatmul.mubr.msk.bf16.vlgmr.msra.gmra.mrb[0].mxu1 %vm1541_vm8, %v8730_v49  ;;  %v8799_v48 = vld [vmem:[%s9021_s19 + $0x68] sm:$0xff]   ;;  %v8763_v49 = vld [vmem:[%s9133_s20 + $0x90] sm:$0xff]   ;;  %vm11022_vm0 = vnez %v11021_v26  ;;  %vm9293_vm15 = vmand %vm4148_vm14, %vm10911_vm13  ;;  %vm11032_vm1 = vnez %v11031_v27 }
  0x37   : >> { %7701 = vmatprep.mubr.msk.bf16.mxu0 %vm1541_vm8, %v8731_v50  ;;  %7773 = vmatprep.mubr.msk.bf16.mxu1 %vm1541_vm8, %v8732_v51  ;;  %v8800_v50 = vld [vmem:[%s9021_s19 + $0xe8] sm:$0xff]   ;;  %v8764_v51 = vld [vmem:[%s9133_s20 + $0x890] sm:$0xff]   ;;  %vm4151_vm10 = vmpackc.low %vm11022_vm0, %vm11022_vm0  ;;  %vm11112_vm0 = vsmask.f32 256 }
  0x38   : >> { %7834 = vmatpush3.bf16.msra.mxu1 %v8775_v45  ;;  %8074 = vmatpush3.bf16.msra.mxu0 %v8776_v46  ;;  %v8798_v45 = vld [vmem:[%s9021_s19 + $0xe0] sm:$0xff]   ;;  %v8761_v46 = vld [vmem:[%s9133_s20 + $0x88] sm:$0xff]   ;;  %vm4167_vm11 = vmpackc.low %vm11033_vm2, %vm11033_vm2  ;;  %vm11149_vm2 = vsmask.f32 256 }
  0x39   : >> { %7835 = vmatprep.subr.bf16.mxu1 %v8785_v52  ;;  %8075 = vmatprep.subr.bf16.mxu0 %v8786_v53  ;;  %v11035_v30 = vld [vmem:[#allocation15_spill] sm:$0xff]  ;;  %v11037_v31 = vld [vmem:[#allocation16_spill] sm:$0xff] }
  0x3a   : >> { %vm11036_vm4 = vnez %v11035_v30  ;;  %vm11038_vm5 = vnez %v11037_v31 }
  0x3b   : >> { %vm4183_vm14 = vmpackc.low %vm11036_vm4, %vm11036_vm4 }
  0x3c   : >> { %7836 = vmatpush3.bf16.msra.mxu1 %v8785_v52  ;;  %8076 = vmatpush3.bf16.msra.mxu0 %v8786_v53  ;;  %v8801_v52 = vld [vmem:[%s9021_s19 + $0x70] sm:$0xff]   ;;  %vm11161_vm4 = vmmov %vm11149_vm2 }
  0x3d   : >> { %7837 = vmatprep.subr.bf16.mxu1 %v8793_v25  ;;  %8077 = vmatprep.subr.bf16.mxu0 %v8794_v39  ;;  %v8802_v53 = vld [vmem:[%s9021_s19 + $0xf0] sm:$0xff]  }
  0x3e   : >> { %7702 = vmatmul.mubr.msk.bf16.gmra.mrb[4].mxu0 %vm1541_vm8, %v8733_v54  ;;  %7774 = vmatmul.mubr.msk.bf16.gmra.mrb[4].mxu1 %vm1541_vm8, %v8734_v55  ;;  %v8805_v54 = vld [vmem:[%s9021_s19 + $0x78] sm:$0xff]  }
  0x3f   : >> { %7705 = vmatprep.mubr.msk.bf16.mxu0 %vm1541_vm8, %v8735_v56  ;;  %7777 = vmatprep.mubr.msk.bf16.mxu1 %vm1541_vm8, %v8736_v57  ;;  %v8806_v55 = vld [vmem:[%s9021_s19 + $0xf8] sm:$0xff]  }
  0x40   : >> { %7838 = vmatpush3.bf16.msra.mxu1 %v8793_v25  ;;  %8078 = vmatpush3.bf16.msra.mxu0 %v8794_v39  ;;  %v8765_v56 = vld [vmem:[%s9133_s20 + $0x98] sm:$0xff]   ;;  %v8790_v25 = vld [vmem:[%s9133_s20 + $0x8e8] sm:$0xff]   ;;  %v8791_v39 = vld [vmem:[%s9133_s20 + $0xf0] sm:$0xff]  }
  0x41   : >> { %7839 = vmatprep.subr.bf16.mxu1 %v8795_v41  ;;  %8079 = vmatprep.subr.bf16.mxu0 %v8796_v42  ;;  %v8766_v57 = vld [vmem:[%s9133_s20 + $0x898] sm:$0xff]  }
  0x44   : >> { %7840 = vmatpush3.bf16.msra.mxu1 %v8795_v41  ;;  %8080 = vmatpush3.bf16.msra.mxu0 %v8796_v42  ;;  %v3865_v42 = vshll.u32 %v8919_v37, 16 }
  0x45   : >> { %7841 = vmatprep.subr.bf16.mxu1 %v8797_v44  ;;  %8081 = vmatprep.subr.bf16.mxu0 %v8798_v45 }
  0x46   : >> { %7706 = vmatmul.mubr.msk.bf16.gmra.mrb[8].mxu0 %vm1541_vm8, %v8737_v58  ;;  %7778 = vmatmul.mubr.msk.bf16.gmra.mrb[8].mxu1 %vm1541_vm8, %v8738_v59  ;;  %v8767_v58 = vld [vmem:[%s9133_s20 + $0xa0] sm:$0xff]  }
  0x47   : >> { %7709 = vmatprep.mubr.msk.bf16.mxu0 %vm1541_vm8, %v8739_v60  ;;  %7781 = vmatprep.mubr.msk.bf16.mxu1 %vm1541_vm8, %v8740_v61  ;;  %v8768_v59 = vld [vmem:[%s9133_s20 + $0x8a0] sm:$0xff]   ;;  %v8769_v60 = vld [vmem:[%s9133_s20 + $0xa8] sm:$0xff]  }
  0x48   : >> { %7842 = vmatpush3.bf16.msra.mxu1 %v8797_v44  ;;  %8082 = vmatpush3.bf16.msra.mxu0 %v8798_v45  ;;  %v8770_v61 = vld [vmem:[%s9133_s20 + $0x8a8] sm:$0xff]  }
  0x49   : >> { %7843 = vmatprep.subr.bf16.mxu1 %v8799_v48  ;;  %8083 = vmatprep.subr.bf16.mxu0 %v8800_v50 }
  0x4c   : >> { %7844 = vmatpush3.bf16.msra.mxu1 %v8799_v48  ;;  %8084 = vmatpush3.bf16.msra.mxu0 %v8800_v50  ;;  %v11023_v48 = vmov 0  ;;  %v3877_v50 = vshrl.u32 %v8911_v35, 16 }
  0x4d   : >> { %7845 = vmatprep.subr.bf16.mxu1 %v8801_v52  ;;  %8085 = vmatprep.subr.bf16.mxu0 %v8802_v53  ;;  %v11024_v48 = vsel %vm9293_vm15, 4294967295, %v11023_v48 }
  0x4e   : >> { %7710 = vmatmul.mubr.msk.bf16.gmra.mrb[12].mxu0 %vm1541_vm8, %v8741_v62  ;;  %7782 = vmatmul.mubr.msk.bf16.gmra.mrb[12].mxu1 %vm1541_vm8, %v8742_v63  ;;  %v8771_v62 = vld [vmem:[%s9133_s20 + $0xb0] sm:$0xff]   ;;  %11025 = vst [vmem:[#allocation24_spill] sm:$0xff] %v11024_v48 }
  0x4f   : >> { %7713 = vmatprep.mubr.msk.bf16.mxu0 %vm1541_vm8, %v8743_v0  ;;  %7785 = vmatprep.mubr.msk.bf16.mxu1 %vm1541_vm8, %v8744_v1  ;;  %v8772_v63 = vld [vmem:[%s9133_s20 + $0x8b0] sm:$0xff]   ;;  %v8773_v0 = vld [vmem:[%s9133_s20 + $0xb8] sm:$0xff]  }
  0x50   : >> { %7846 = vmatpush3.bf16.msra.mxu1 %v8801_v52  ;;  %8086 = vmatpush3.bf16.msra.mxu0 %v8802_v53  ;;  %v8774_v1 = vld [vmem:[%s9133_s20 + $0x8b8] sm:$0xff]  }
  0x51   : >> { %7847 = vmatprep.subr.bf16.mxu1 %v8805_v54  ;;  %8087 = vmatprep.subr.bf16.mxu0 %v8806_v55  ;;  %v8804_v52 = vld [vmem:[%s9133_s20 + $0x8f8] sm:$0xff]  }
  0x54   : >> { %7848 = vmatpush3.bf16.msra.mxu1 %v8805_v54  ;;  %8088 = vmatpush3.bf16.msra.mxu0 %v8806_v55  ;;  %v3872_v55 = vshll.u32 %v8915_v36, 16 }
  0x56   : >> { %7714 = vmatmul.mubr.msk.bf16.gmra.mrb[16].mxu0 %vm1541_vm8, %v8745_v2  ;;  %7786 = vmatmul.mubr.msk.bf16.gmra.mrb[16].mxu1 %vm1541_vm8, %v8746_v3  ;;  %v8777_v2 = vld [vmem:[%s9133_s20 + $0xc0] sm:$0xff]  }
  0x57   : >> { %7717 = vmatprep.mubr.msk.bf16.mxu0 %vm1541_vm8, %v8747_v4  ;;  %7789 = vmatprep.mubr.msk.bf16.mxu1 %vm1541_vm8, %v8748_v5  ;;  %v8778_v3 = vld [vmem:[%s9133_s20 + $0x8c0] sm:$0xff]   ;;  %v8779_v4 = vld [vmem:[%s9133_s20 + $0xc8] sm:$0xff]  }
  0x58   : >> { %v8780_v5 = vld [vmem:[%s9133_s20 + $0x8c8] sm:$0xff]  }
  0x5e   : >> { %7718 = vmatmul.mubr.msk.bf16.gmra.mrb[20].mxu0 %vm1541_vm8, %v8749_v7  ;;  %7790 = vmatmul.mubr.msk.bf16.gmra.mrb[20].mxu1 %vm1541_vm8, %v8750_v8  ;;  %v8781_v7 = vld [vmem:[%s9133_s20 + $0xd0] sm:$0xff]  }
  0x5f   : >> { %7721 = vmatprep.mubr.msk.bf16.mxu0 %vm1541_vm8, %v8751_v9  ;;  %7793 = vmatprep.mubr.msk.bf16.mxu1 %vm1541_vm8, %v8752_v10  ;;  %v8782_v8 = vld [vmem:[%s9133_s20 + $0x8d0] sm:$0xff]   ;;  %v8783_v9 = vld [vmem:[%s9133_s20 + $0xd8] sm:$0xff]  }
  0x60   : >> { %v8784_v10 = vld [vmem:[%s9133_s20 + $0x8d8] sm:$0xff]  }
  0x66   : >> { %7722 = vmatmul.mubr.msk.bf16.gmra.mrb[24].mxu0 %vm1541_vm8, %v8753_v11  ;;  %7794 = vmatmul.mubr.msk.bf16.gmra.mrb[24].mxu1 %vm1541_vm8, %v8754_v12  ;;  %v8787_v11 = vld [vmem:[%s9133_s20 + $0xe0] sm:$0xff]  }
  0x67   : >> { %7725 = vmatprep.mubr.msk.bf16.mxu0 %vm1541_vm8, %v8755_v21  ;;  %7797 = vmatprep.mubr.msk.bf16.mxu1 %vm1541_vm8, %v8756_v22  ;;  %v8788_v12 = vld [vmem:[%s9133_s20 + $0x8e0] sm:$0xff]  }
  0x68   : >> { %v9266_v21 = vld [vmem:[%s9021_s19] sm:$0xff]  }
  0x69   : >> { %v8808_v22 = vld [vmem:[%s9021_s19 + $0x100] sm:$0xff]   ;;  %7913 = vmatprep.subr.bf16.mxu1 %v9266_v21 }
  0x6a   : >> { %8153 = vmatprep.subr.bf16.mxu0 %v8808_v22 }
  0x6e   : >> { %7726 = vmatmul.mubr.msk.bf16.gmra.mrb[28].mxu0 %vm1541_vm8, %v8757_v23  ;;  %7798 = vmatmul.mubr.msk.bf16.gmra.mrb[28].mxu1 %vm1541_vm8, %v8758_v24  ;;  %v3862_v23 = vshrl.u32 %v8919_v37, 16  ;;  %v8789_v24 = vld [vmem:[%s9133_s20 + $0xe8] sm:$0xff]  }
  0x6f   : >> { %7729 = vmatprep.mubr.msk.bf16.mxu0 %vm1541_vm8, %v8759_v40  ;;  %7801 = vmatprep.mubr.msk.bf16.mxu1 %vm1541_vm8, %v8760_v43  ;;  %v8803_v40 = vld [vmem:[%s9133_s20 + $0x8f0] sm:$0xff]   ;;  %v8930_v43 = vmov 0  }
  0x70   : >> { %v3864_v41 = vrot.slane %v3862_v23, 7  ;;  %v4215_v44 = vsel %vm4151_vm10, 65537, %v8930_v43  ;;  %v9285_v45 = vsel %vm4152_vm12, 65537, %v8930_v43  ;;  %vm4175_vm12 = vmpackc.low %vm11034_vm3, %vm11034_vm3 }
  0x71   : >> { %vm11154_vm3 = vmmov %vm11149_vm2 }
  0x76   : >> { %7730 = vmatmul.mubr.msk.bf16.gmra.mrb[32].mxu0 %vm1541_vm8, %v8761_v46  ;;  %7802 = vmatmul.mubr.msk.bf16.gmra.mrb[32].mxu1 %vm1541_vm8, %v8762_v47  ;;  %v3867_v46 = vor.u32 %v3865_v42, %v3864_v41  ;;  %v3869_v47 = vshrl.u32 %v8915_v36, 16 }
  0x77   : >> { %7733 = vmatprep.mubr.msk.bf16.mxu0 %vm1541_vm8, %v8763_v49  ;;  %7805 = vmatprep.mubr.msk.bf16.mxu1 %vm1541_vm8, %v8764_v51  ;;  %v6907_v49 = vcombine.low %v4215_v44, %v9285_v45  ;;  %v8792_v51 = vld [vmem:[%s9133_s20 + $0xf8] sm:$0xff]  }
  0x78   : >> { %v4150_v53 = vsel %vm9293_vm15, 0, %v3867_v46  ;;  %v3871_v54 = vrot.slane %v3869_v47, 7 }
  0x79   : >> { %vm9304_vm9 = vcmp.eq.s16.totalorder %v6907_v49, 0 }
  0x7e   : >> { %7734 = vmatmul.mubr.msk.bf16.gmra.mrb[36].mxu0 %vm1541_vm8, %v8765_v56  ;;  %7806 = vmatmul.mubr.msk.bf16.gmra.mrb[36].mxu1 %vm1541_vm8, %v8766_v57  ;;  %v11026_v56 = vmov 0  ;;  %v3879_v57 = vrot.slane %v3877_v50, 7 }
  0x7f   : >> { %7737 = vmatprep.mubr.msk.bf16.mxu0 %vm1541_vm8, %v8767_v58  ;;  %7809 = vmatprep.mubr.msk.bf16.mxu1 %vm1541_vm8, %v8768_v59  ;;  %v11027_v56 = vsel %vm9304_vm9, 4294967295, %v11026_v56  ;;  %v3880_v58 = vshll.u32 %v8911_v35, 16  ;;  %v6908_v59 = vcombine.low %v9285_v45, %v9285_v45 }
  0x80   : >> { %11028 = vst [vmem:[#allocation25_spill] sm:$0xff] %v11027_v56 }
  0x81   : >> { %vm9316_vm10 = vcmp.eq.s16.totalorder %v6908_v59, 0 }
  0x86   : >> { %7738 = vmatmul.mubr.msk.bf16.gmra.mrb[40].mxu0 %vm1541_vm8, %v8769_v60  ;;  %7810 = vmatmul.mubr.msk.bf16.gmra.mrb[40].mxu1 %vm1541_vm8, %v8770_v61  ;;  %v3874_v60 = vor.u32 %v3872_v55, %v3871_v54  ;;  %v3885_v61 = vshrl.u32 %v8907_v34, 16  ;;  %v9365_v55 = vsel %vm4167_vm11, 65537, %v8930_v43  ;;  %vm4199_vm11 = vmpackc.low %vm11040_vm6, %vm11040_vm6 }
  0x87   : >> { %7741 = vmatprep.mubr.msk.bf16.mxu0 %vm1541_vm8, %v8771_v62  ;;  %7813 = vmatprep.mubr.msk.bf16.mxu1 %vm1541_vm8, %v8772_v63  ;;  %v3882_v62 = vor.u32 %v3880_v58, %v3879_v57  ;;  %vm11185_vm6 = vmmov %vm11149_vm2  ;;  %v7210_v63 = vld [vmem:[%s10686_s28] sm:$0xff]  }
  0x8e   : >> { %7742 = vmatmul.mubr.msk.bf16.gmra.mrb[44].mxu0 %vm1541_vm8, %v8773_v0  ;;  %7814 = vmatmul.mubr.msk.bf16.gmra.mrb[44].mxu1 %vm1541_vm8, %v8774_v1  ;;  %v3875_v0 = vsel %vm10911_vm13, %v3864_v41, %v3874_v60  ;;  %v9321_v1 = vrot.slane %v3885_v61, 7  ;;  %v9378_v60 = vsel %vm4175_vm12, 65537, %v8930_v43 }
  0x8f   : >> { %7745 = vmatprep.mubr.msk.bf16.mxu0 %vm1541_vm8, %v8777_v2  ;;  %7817 = vmatprep.mubr.msk.bf16.mxu1 %vm1541_vm8, %v8778_v3  ;;  %v3888_v2 = vshll.u32 %v8907_v34, 16  ;;  %v3883_v3 = vsel %vm10911_vm13, %v3871_v54, %v3882_v62 }
  0x96   : >> { %7746 = vmatmul.mubr.msk.bf16.gmra.mrb[48].mxu0 %vm1541_vm8, %v8779_v4  ;;  %7818 = vmatmul.mubr.msk.bf16.gmra.mrb[48].mxu1 %vm1541_vm8, %v8780_v5  ;;  %v8810_v4 = vld [vmem:[%s9021_s19 + $0x108] sm:$0xff]   ;;  %v3890_v5 = vor.u32 %v3888_v2, %v9321_v1  ;;  %v9381_v2 = vsel %vm4183_vm14, 65537, %v8930_v43  ;;  %vm4207_vm14 = vmpackc.low %vm9081_vm7, %vm9081_vm7 }
  0x97   : >> { %7749 = vmatprep.mubr.msk.bf16.mxu0 %vm1541_vm8, %v8781_v7  ;;  %7821 = vmatprep.mubr.msk.bf16.mxu1 %vm1541_vm8, %v8782_v8  ;;  %v8812_v8 = vld [vmem:[%s9021_s19 + $0x110] sm:$0xff]  }
  0x98   : >> { %v3891_v7 = vsel %vm10911_vm13, %v3879_v57, %v3890_v5 }
  0x9e   : >> { %7750 = vmatmul.mubr.msk.bf16.gmra.mrb[52].mxu0 %vm1541_vm8, %v8783_v9  ;;  %7822 = vmatmul.mubr.msk.bf16.gmra.mrb[52].mxu1 %vm1541_vm8, %v8784_v10  ;;  %v8814_v9 = vld [vmem:[%s9021_s19 + $0x118] sm:$0xff]   ;;  %v8816_v10 = vld [vmem:[%s9021_s19 + $0x120] sm:$0xff]  }
  0x9f   : >> { %7753 = vmatprep.mubr.msk.bf16.mxu0 %vm1541_vm8, %v8787_v11  ;;  %7825 = vmatprep.mubr.msk.bf16.mxu1 %vm1541_vm8, %v8788_v12  ;;  %v8818_v11 = vld [vmem:[%s9021_s19 + $0x128] sm:$0xff]   ;;  %v8820_v12 = vld [vmem:[%s9021_s19 + $0x130] sm:$0xff]  }
  0xa6   : >> { %7754 = vmatmul.mubr.msk.bf16.gmra.mrb[56].mxu0 %vm1541_vm8, %v8789_v24  ;;  %7826 = vmatmul.mubr.msk.bf16.gmra.mrb[56].mxu1 %vm1541_vm8, %v8790_v25 }
  0xa7   : >> { %7757 = vmatprep.mubr.msk.bf16.mxu0 %vm1541_vm8, %v8791_v39  ;;  %7829 = vmatprep.mubr.msk.bf16.mxu1 %vm1541_vm8, %v8803_v40 }
  0xae   : >> { %7758 = vmatmul.mubr.msk.bf16.gmra.mrb[60].mxu0 %vm1541_vm8, %v8792_v51  ;;  %7830 = vmatmul.mubr.msk.bf16.gmra.mrb[60].mxu1 %vm1541_vm8, %v8804_v52  ;;  %vm4159_vm8 = vmpackc.low %vm11032_vm1, %vm11032_vm1  ;;  %vm11132_vm1 = vsmask.f32 256 }
  0xaf   : >> { %8089 = vmatprep.mubr.msk.bf16.mxu0 %vm9304_vm9, %v4150_v53 }
  0xb6   : >> { %8090 = vmatmul.mubr.msk.bf16.vlgmr.msra.gmra.mrb[64].mxu0 %vm9316_vm10, %v3875_v0 }
  0xb7   : >> { %8093 = vmatprep.mubr.msk.bf16.mxu0 %vm9316_vm10, %v3883_v3  ;;  %8154 = vmatpush3.bf16.msra.mxu0 %v8808_v22  ;;  %v4223_v22 = vsel %vm4159_vm8, 65537, %v8930_v43  ;;  %vm4191_vm8 = vmpackc.low %vm11038_vm5, %vm11038_vm5 }
  0xb8   : >> { %8155 = vmatprep.subr.bf16.mxu0 %v8810_v4  ;;  %v6911_v49 = vcombine.low %v4223_v22, %v9285_v45  ;;  %vm11163_vm5 = vmmov %vm11149_vm2 }
  0xba   : >> { %vm9406_vm12 = vcmp.eq.s16.totalorder %v6911_v49, 0  ;;  %v9423_v49 = vsel %vm4199_vm11, 65537, %v8930_v43 }
  0xbb   : >> { %8156 = vmatpush3.bf16.msra.mxu0 %v8810_v4 }
  0xbc   : >> { %8157 = vmatprep.subr.bf16.mxu0 %v8812_v8 }
  0xbe   : >> { %8094 = vmatmul.mubr.msk.bf16.gmra.mrb[68].mxu0 %vm9316_vm10, %v3891_v7  ;;  %v9384_v7 = vsel %vm4191_vm8, 65537, %v8930_v43 }
  0xbf   : >> { %8158 = vmatpush3.bf16.msra.mxu0 %v8812_v8 }
  0xc0   : >> { %8159 = vmatprep.subr.bf16.mxu0 %v8814_v9 }
  0xc3   : >> { %8160 = vmatpush3.bf16.msra.mxu0 %v8814_v9 }
  0xc4   : >> { %8161 = vmatprep.subr.bf16.mxu0 %v8816_v10 }
  0xc7   : >> { %8162 = vmatpush3.bf16.msra.mxu0 %v8816_v10 }
  0xc8   : >> { %8163 = vmatprep.subr.bf16.mxu0 %v8818_v11 }
  0xcb   : >> { %8164 = vmatpush3.bf16.msra.mxu0 %v8818_v11 }
  0xcc   : >> { %8165 = vmatprep.subr.bf16.mxu0 %v8820_v12 }
  0xcf   : >> { %8166 = vmatpush3.bf16.msra.mxu0 %v8820_v12 }
 0x109   : >> { %v7699_v23 = vpop.f32.mrb[0].mxu0  ;;  %v7771_v24 = vpop.f32.mrb[0].mxu1 }
 0x10a   : >> { %v1685_v25 = vadd.f32 %v7699_v23, %v11005_v6  ;;  %v2393_v39 = vadd.f32 %v7771_v24, %v11005_v6  ;;  %v1676_v40 = vpop.f32.mrb[1].mxu0  ;;  %v2384_v41 = vpop.f32.mrb[1].mxu1 }
 0x10b   : >> { %v1677_v42 = vadd.f32 %v11005_v6, %v1676_v40  ;;  %v2385_v44 = vadd.f32 %v11005_v6, %v2384_v41  ;;  %v7700_v46 = vpop.f32.mrb[2].mxu0  ;;  %v7772_v47 = vpop.f32.mrb[2].mxu1 }
 0x10c   : >> { %v2641_v50 = vmax.f32 %v2393_v39, 0.0  ;;  %v1688_v51 = vadd.f32 %v7700_v46, %v11005_v6  ;;  %v2396_v52 = vadd.f32 %v7772_v47, %v11005_v6  ;;  %v1679_v53 = vpop.f32.mrb[3].mxu0  ;;  %v2387_v54 = vpop.f32.mrb[3].mxu1  ;;  %v1933_v61 = vmax.f32 %v1685_v25, 0.0  ;;  %v8809_v47 = vld [vmem:[%s9021_s19 + $0x8] sm:$0xff]  }
 0x10d   : >> { %v2639_v57 = vmax.f32 %v2385_v44, 0.0  ;;  %v1680_v58 = vadd.f32 %v11005_v6, %v1679_v53  ;;  %v2388_v59 = vadd.f32 %v11005_v6, %v2387_v54  ;;  %v1931_v3 = vmax.f32 %v1677_v42, 0.0 }
 0x10e   : >> { %v1934_v62 = vmax.f32 %v1688_v51, 0.0  ;;  %v2642_v0 = vmax.f32 %v2396_v52, 0.0  ;;  %v11042_v46 = vmov 0 }
 0x10f   : >> { %v1932_v4 = vmax.f32 %v1680_v58, 0.0  ;;  %v2640_v5 = vmax.f32 %v2388_v59, 0.0  ;;  %v11043_v46 = vsel %vm9406_vm12, 4294967295, %v11042_v46 }
 0x110   : >> { %v9386_v8 = vpack.c.bf16 %v1934_v62, %v1933_v61  ;;  %v9388_v9 = vpack.c.bf16 %v2642_v0, %v2641_v50  ;;  %11044 = vst [vmem:[#allocation28_spill] sm:$0xff] %v11043_v46 }
 0x111   : >> { %v9395_v11 = vpack.c.bf16 %v1932_v4, %v1931_v3  ;;  %v9397_v12 = vpack.c.bf16 %v2640_v5, %v2639_v57  ;;  %v7703_v22 = vpop.f32.mrb[4].mxu0  ;;  %v7775_v23 = vpop.f32.mrb[4].mxu1 }
 0x112   : >> { %11039 = vst [vmem:[#allocation26_spill] sm:$0xff] %v9388_v9  ;;  %v4865_v39 = vshrl.u32 %v9386_v8, 16  ;;  %v1701_v40 = vadd.f32 %v7703_v22, %v11005_v6  ;;  %v2409_v41 = vadd.f32 %v7775_v23, %v11005_v6  ;;  %v1692_v42 = vpop.f32.mrb[5].mxu0  ;;  %v2400_v44 = vpop.f32.mrb[5].mxu1 }
 0x113   : >> { %11041 = vst [vmem:[#allocation27_spill] sm:$0xff] %v9397_v12  ;;  %v1693_v51 = vadd.f32 %v11005_v6, %v1692_v42  ;;  %v2401_v52 = vadd.f32 %v11005_v6, %v2400_v44  ;;  %v7704_v53 = vpop.f32.mrb[6].mxu0  ;;  %v7776_v54 = vpop.f32.mrb[6].mxu1  ;;  %7849 = vmatprep.mubr.bf16.mxu1 %v9395_v11  ;;  %v3893_v57 = vshrl.u32 %v9397_v12, 16  ;;  %v4858_v59 = vshrl.u32 %v9395_v11, 16 }
 0x114   : >> { %v9425_v58 = vrot.slane %v4865_v39, 7  ;;  %v1937_v61 = vmax.f32 %v1701_v40, 0.0  ;;  %v1704_v62 = vadd.f32 %v7704_v53, %v11005_v6  ;;  %v1695_v0 = vpop.f32.mrb[7].mxu0  ;;  %v2403_v3 = vpop.f32.mrb[7].mxu1  ;;  %7850 = vmatmul.mubr.bf16.vlgmr.msra.gmra.mrb[64].mxu1 %v9386_v8  ;;  %v2645_v4 = vmax.f32 %v2409_v41, 0.0  ;;  %v8811_v53 = vld [vmem:[%s9021_s19 + $0x10] sm:$0xff]  }
 0x115   : >> { %v1935_v5 = vmax.f32 %v1693_v51, 0.0  ;;  %v2412_v22 = vadd.f32 %v7776_v54, %v11005_v6  ;;  %v1696_v23 = vadd.f32 %v11005_v6, %v1695_v0  ;;  %7914 = vmatpush3.bf16.msra.mxu1 %v9266_v21  ;;  %v2643_v39 = vmax.f32 %v2401_v52, 0.0 }
 0x116   : >> { %v1938_v40 = vmax.f32 %v1704_v62, 0.0  ;;  %v2404_v42 = vadd.f32 %v11005_v6, %v2403_v3  ;;  %v3895_v44 = vrot.slane %v3893_v57, 7  ;;  %7915 = vmatprep.subr.bf16.mxu1 %v8809_v47  ;;  %v3896_v54 = vshll.u32 %v9397_v12, 16 }
 0x117   : >> { %v2646_v41 = vmax.f32 %v2412_v22, 0.0  ;;  %v1936_v51 = vmax.f32 %v1696_v23, 0.0  ;;  %v3901_v0 = vshrl.u32 %v9388_v9, 16  ;;  %v9445_v52 = vsel %vm4207_vm14, 65537, %v8930_v43 }
 0x118   : >> { %v9440_v50 = vpack.c.bf16 %v1938_v40, %v1937_v61  ;;  %v2644_v21 = vmax.f32 %v2404_v42, 0.0  ;;  %v4868_v57 = vshll.u32 %v9386_v8, 16  ;;  %v9452_v24 = vor.u32 %v3896_v54, %v3895_v44  ;;  %v8822_v61 = vld [vmem:[%s9021_s19 + $0x138] sm:$0xff]  }
 0x119   : >> { %v9448_v62 = vpack.c.bf16 %v2646_v41, %v2645_v4  ;;  %v9450_v3 = vpack.c.bf16 %v1936_v51, %v1935_v5  ;;  %v7707_v22 = vpop.f32.mrb[8].mxu0  ;;  %v7779_v23 = vpop.f32.mrb[8].mxu1  ;;  %7916 = vmatpush3.bf16.msra.mxu1 %v8809_v47  ;;  %v9458_v10 = vrot.slane %v3901_v0, 7  ;;  %v3904_v8 = vshll.u32 %v9388_v9, 16  ;;  %v8813_v4 = vld [vmem:[%s9021_s19 + $0x18] sm:$0xff]   ;;  %8167 = vmatprep.subr.bf16.mxu0 %v8822_v61  ;;  %v8823_v9 = vld [vmem:[%s9021_s19 + $0x80] sm:$0xff]  }
 0x11a   : >> { %11047 = vst [vmem:[#allocation30_spill] sm:$0xff] %v9452_v24  ;;  %v9455_v40 = vpack.c.bf16 %v2644_v21, %v2643_v39  ;;  %v1717_v42 = vadd.f32 %v7707_v22, %v11005_v6  ;;  %v1708_v25 = vpop.f32.mrb[9].mxu0  ;;  %v2416_v43 = vpop.f32.mrb[9].mxu1  ;;  %7917 = vmatprep.subr.bf16.mxu1 %v8811_v53  ;;  %v9463_v5 = vor.u32 %v4868_v57, %v9425_v58  ;;  %v9469_v54 = vrot.slane %v4858_v59, 7 }
 0x11b   : >> { %11046 = vst [vmem:[#allocation29_spill] sm:$0xff] %v9448_v62  ;;  %v2425_v41 = vadd.f32 %v7779_v23, %v11005_v6  ;;  %v7708_v51 = vpop.f32.mrb[10].mxu0  ;;  %v7780_v47 = vpop.f32.mrb[10].mxu1  ;;  %7853 = vmatprep.mubr.bf16.mxu1 %v9450_v3  ;;  %v4881_v0 = vshrl.u32 %v9440_v50, 16  ;;  %v1709_v21 = vadd.f32 %v11005_v6, %v1708_v25  ;;  %v2417_v22 = vadd.f32 %v11005_v6, %v2416_v43 }
 0x11c   : >> { %11048 = vst [vmem:[#allocation31_spill] sm:$0xff] %v9455_v40  ;;  %v3899_v57 = vsel %vm10911_vm13, %v9321_v1, %v9452_v24  ;;  %v1711_v23 = vpop.f32.mrb[11].mxu0  ;;  %v2419_v13 = vpop.f32.mrb[11].mxu1  ;;  %7854 = vmatmul.mubr.bf16.gmra.mrb[68].mxu1 %v9440_v50  ;;  %8168 = vmatpush3.bf16.msra.mxu0 %v8822_v61  ;;  %v4873_v59 = vshrl.u32 %v9450_v3, 16  ;;  %v1941_v14 = vmax.f32 %v1717_v42, 0.0  ;;  %v1720_v25 = vadd.f32 %v7708_v51, %v11005_v6  ;;  %v8815_v61 = vld [vmem:[%s9021_s19 + $0x20] sm:$0xff]  }
 0x11d   : >> { %8097 = vmatprep.mubr.msk.bf16.mxu0 %vm9406_vm12, %v3899_v57  ;;  %7918 = vmatpush3.bf16.msra.mxu1 %v8811_v53  ;;  %v2649_v43 = vmax.f32 %v2425_v41, 0.0  ;;  %v2428_v1 = vadd.f32 %v7780_v47, %v11005_v6  ;;  %v3906_v15 = vor.u32 %v3904_v8, %v9458_v10  ;;  %v1712_v16 = vadd.f32 %v11005_v6, %v1711_v23 }
 0x11e   : >> { %7919 = vmatprep.subr.bf16.mxu1 %v8813_v4  ;;  %v2647_v17 = vmax.f32 %v2417_v22, 0.0  ;;  %v1942_v39 = vmax.f32 %v1720_v25, 0.0  ;;  %v2420_v18 = vadd.f32 %v11005_v6, %v2419_v13  ;;  %v3909_v42 = vshrl.u32 %v9455_v40, 16 }
 0x11f   : >> { %v1939_v19 = vmax.f32 %v1709_v21, 0.0  ;;  %v2650_v57 = vmax.f32 %v2428_v1, 0.0  ;;  %v9490_v51 = vsel %vm10911_vm13, %v3895_v44, %v3906_v15  ;;  %v1940_v53 = vmax.f32 %v1712_v16, 0.0 }
 0x120   : >> { %11049 = vst [vmem:[#allocation32_spill] sm:$0xff] %v9490_v51  ;;  %v9492_v41 = vpack.c.bf16 %v1942_v39, %v1941_v14  ;;  %8098 = vmatmul.mubr.msk.bf16.gmra.mrb[72].mxu0 %vm9316_vm10, %v9490_v51  ;;  %v2648_v8 = vmax.f32 %v2420_v18, 0.0  ;;  %v3911_v23 = vrot.slane %v3909_v42, 7  ;;  %v3912_v13 = vshll.u32 %v9455_v40, 16 }
 0x121   : >> { %v7711_v47 = vpop.f32.mrb[12].mxu0  ;;  %v7783_v22 = vpop.f32.mrb[12].mxu1  ;;  %7920 = vmatpush3.bf16.msra.mxu1 %v8813_v4  ;;  %v9498_v21 = vpack.c.bf16 %v2650_v57, %v2649_v43  ;;  %v9500_v25 = vpack.c.bf16 %v1940_v53, %v1939_v19  ;;  %v3917_v44 = vshrl.u32 %v9448_v62, 16  ;;  %v9504_v39 = vrot.slane %v4881_v0, 7  ;;  %v8817_v57 = vld [vmem:[%s9021_s19 + $0x28] sm:$0xff]  }
 0x122   : >> { %v2441_v15 = vadd.f32 %v7783_v22, %v11005_v6  ;;  %v1724_v14 = vpop.f32.mrb[13].mxu0  ;;  %v2432_v16 = vpop.f32.mrb[13].mxu1  ;;  %7921 = vmatprep.subr.bf16.mxu1 %v8815_v61  ;;  %v9506_v18 = vrot.slane %v4873_v59, 7  ;;  %v9509_v42 = vpack.c.bf16 %v2648_v8, %v2647_v17  ;;  %v4897_v19 = vshrl.u32 %v9492_v41, 16 }
 0x123   : >> { %11050 = vst [vmem:[#allocation33_spill] sm:$0xff] %v9498_v21  ;;  %v7712_v4 = vpop.f32.mrb[14].mxu0  ;;  %v7784_v43 = vpop.f32.mrb[14].mxu1  ;;  %v1733_v22 = vadd.f32 %v7711_v47, %v11005_v6  ;;  %7857 = vmatprep.mubr.bf16.mxu1 %v9500_v25  ;;  %v3920_v0 = vshll.u32 %v9448_v62, 16  ;;  %v4889_v27 = vshrl.u32 %v9500_v25, 16  ;;  %v1725_v17 = vadd.f32 %v11005_v6, %v1724_v14 }
 0x124   : >> { %11051 = vst [vmem:[#allocation34_spill] sm:$0xff] %v9509_v42  ;;  %v1727_v26 = vpop.f32.mrb[15].mxu0  ;;  %v2435_v59 = vpop.f32.mrb[15].mxu1  ;;  %v2433_v8 = vadd.f32 %v11005_v6, %v2432_v16  ;;  %v3914_v1 = vor.u32 %v3912_v13, %v3911_v23  ;;  %7858 = vmatmul.mubr.bf16.gmra.mrb[72].mxu1 %v9492_v41  ;;  %v2653_v28 = vmax.f32 %v2441_v15, 0.0  ;;  %v1736_v53 = vadd.f32 %v7712_v4, %v11005_v6 }
 0x125   : >> { %v2444_v47 = vadd.f32 %v7784_v43, %v11005_v6  ;;  %v9523_v29 = vrot.slane %v3917_v44, 7  ;;  %7922 = vmatpush3.bf16.msra.mxu1 %v8815_v61  ;;  %v1728_v14 = vadd.f32 %v11005_v6, %v1727_v26  ;;  %v2436_v13 = vadd.f32 %v11005_v6, %v2435_v59  ;;  %v8819_v26 = vld [vmem:[%s9021_s19 + $0x30] sm:$0xff]  }
 0x126   : >> { %v2651_v30 = vmax.f32 %v2433_v8, 0.0  ;;  %v9527_v31 = vsel %vm10911_vm13, %v9458_v10, %v3914_v1  ;;  %7923 = vmatprep.subr.bf16.mxu1 %v8817_v57  ;;  %v1945_v16 = vmax.f32 %v1733_v22, 0.0  ;;  %v1946_v15 = vmax.f32 %v1736_v53, 0.0 }
 0x127   : >> { %11052 = vst [vmem:[#allocation35_spill] sm:$0xff] %v9527_v31  ;;  %8101 = vmatprep.mubr.msk.bf16.mxu0 %vm9316_vm10, %v9527_v31  ;;  %v2654_v4 = vmax.f32 %v2444_v47, 0.0  ;;  %v3922_v44 = vor.u32 %v3920_v0, %v9523_v29  ;;  %v11053_v61 = vcombine.low %v9365_v55, %v9285_v45  ;;  %v11054_v10 = vmov 0 }
 0x128   : >> { %v1943_v1 = vmax.f32 %v1725_v17, 0.0  ;;  %v1944_v43 = vmax.f32 %v1728_v14, 0.0  ;;  %v2652_v22 = vmax.f32 %v2436_v13, 0.0  ;;  %v3925_v32 = vshrl.u32 %v9509_v42, 16  ;;  %v8824_v17 = vld [vmem:[%s9021_s19 + $0x140] sm:$0xff]  }
 0x129   : >> { %vm9538_vm8 = vcmp.eq.s16.totalorder %v11053_v61, 0  ;;  %v7715_v59 = vpop.f32.mrb[16].mxu0  ;;  %v7787_v8 = vpop.f32.mrb[16].mxu1  ;;  %v9544_v53 = vpack.c.bf16 %v1946_v15, %v1945_v16  ;;  %v9546_v47 = vpack.c.bf16 %v2654_v4, %v2653_v28  ;;  %v9549_v0 = vsel %vm10911_vm13, %v3911_v23, %v3922_v44  ;;  %7924 = vmatpush3.bf16.msra.mxu1 %v8817_v57  ;;  %8233 = vmatprep.subr.bf16.mxu0 %v8824_v17 }
 0x12a   : >> { %v11055_v10 = vsel %vm9538_vm8, 4294967295, %v11054_v10  ;;  %11058 = vst [vmem:[#allocation38_spill] sm:$0xff] %v9549_v0  ;;  %v1749_v55 = vadd.f32 %v7715_v59, %v11005_v6  ;;  %v1740_v61 = vpop.f32.mrb[17].mxu0  ;;  %v2448_v33 = vpop.f32.mrb[17].mxu1  ;;  %8102 = vmatmul.mubr.msk.bf16.gmra.mrb[76].mxu0 %vm9316_vm10, %v9549_v0  ;;  %v9556_v14 = vpack.c.bf16 %v1944_v43, %v1943_v1  ;;  %v9558_v13 = vpack.c.bf16 %v2652_v22, %v2651_v30  ;;  %v8821_v1 = vld [vmem:[%s9021_s19 + $0x38] sm:$0xff]  }
 0x12b   : >> { %11056 = vst [vmem:[#allocation36_spill] sm:$0xff] %v11055_v10  ;;  %11057 = vst [vmem:[#allocation37_spill] sm:$0xff] %v9546_v47  ;;  %v2457_v28 = vadd.f32 %v7787_v8, %v11005_v6  ;;  %v7716_v16 = vpop.f32.mrb[18].mxu0  ;;  %v7788_v23 = vpop.f32.mrb[18].mxu1  ;;  %v3933_v15 = vshrl.u32 %v9498_v21, 16  ;;  %v9562_v4 = vrot.slane %v4897_v19, 7  ;;  %v2449_v44 = vadd.f32 %v11005_v6, %v2448_v33  ;;  %7925 = vmatprep.subr.bf16.mxu1 %v8819_v26 }
 0x12c   : >> { %11059 = vst [vmem:[#allocation39_spill] sm:$0xff] %v9558_v13  ;;  %v3928_v59 = vshll.u32 %v9509_v42, 16  ;;  %v1743_v38 = vpop.f32.mrb[19].mxu0  ;;  %v2451_v20 = vpop.f32.mrb[19].mxu1  ;;  %v9568_v30 = vrot.slane %v4889_v27, 7  ;;  %v4913_v43 = vshrl.u32 %v9544_v53, 16  ;;  %v1741_v8 = vadd.f32 %v11005_v6, %v1740_v61  ;;  %7861 = vmatprep.mubr.bf16.mxu1 %v9556_v14 }
 0x12d   : >> { %v1949_v22 = vmax.f32 %v1749_v55, 0.0  ;;  %v4905_v19 = vshrl.u32 %v9556_v14, 16  ;;  %v2657_v57 = vmax.f32 %v2457_v28, 0.0  ;;  %v3927_v33 = vrot.slane %v3925_v32, 7  ;;  %7862 = vmatmul.mubr.bf16.gmra.mrb[76].mxu1 %v9544_v53 }
 0x12e   : >> { %v1752_v0 = vadd.f32 %v7716_v16, %v11005_v6  ;;  %v2655_v31 = vmax.f32 %v2449_v44, 0.0  ;;  %v2460_v27 = vadd.f32 %v7788_v23, %v11005_v6  ;;  %v3935_v17 = vrot.slane %v3933_v15, 7  ;;  %7926 = vmatpush3.bf16.msra.mxu1 %v8819_v26 }
 0x12f   : >> { %v3936_v51 = vshll.u32 %v9498_v21, 16  ;;  %v3930_v55 = vor.u32 %v3928_v59, %v3927_v33  ;;  %v1744_v24 = vadd.f32 %v11005_v6, %v1743_v38  ;;  %v2452_v42 = vadd.f32 %v11005_v6, %v2451_v20  ;;  %7927 = vmatprep.subr.bf16.mxu1 %v8821_v1 }
 0x130   : >> { %v1950_v61 = vmax.f32 %v1752_v0, 0.0  ;;  %v1947_v32 = vmax.f32 %v1741_v8, 0.0  ;;  %v2658_v28 = vmax.f32 %v2460_v27, 0.0  ;;  %v3941_v44 = vshrl.u32 %v9558_v13, 16 }
 0x131   : >> { %v3938_v16 = vor.u32 %v3936_v51, %v3935_v17  ;;  %v7719_v62 = vpop.f32.mrb[20].mxu0  ;;  %v7791_v40 = vpop.f32.mrb[20].mxu1  ;;  %v9584_v23 = vsel %vm10911_vm13, %v9523_v29, %v3930_v55  ;;  %v1948_v0 = vmax.f32 %v1744_v24, 0.0  ;;  %v2656_v15 = vmax.f32 %v2452_v42, 0.0 }
 0x132   : >> { %11060 = vst [vmem:[#allocation40_spill] sm:$0xff] %v9584_v23  ;;  %v9586_v26 = vpack.c.bf16 %v1950_v61, %v1949_v22  ;;  %v1756_v38 = vpop.f32.mrb[21].mxu0  ;;  %v2464_v59 = vpop.f32.mrb[21].mxu1  ;;  %8105 = vmatprep.mubr.msk.bf16.mxu0 %vm9538_vm8, %v9584_v23  ;;  %v9591_v20 = vpack.c.bf16 %v2658_v28, %v2657_v57  ;;  %v1765_v8 = vadd.f32 %v7719_v62, %v11005_v6  ;;  %v3944_v57 = vshll.u32 %v9558_v13, 16 }
 0x133   : >> { %v9594_v51 = vsel %vm10911_vm13, %v3927_v33, %v3938_v16  ;;  %v2473_v29 = vadd.f32 %v7791_v40, %v11005_v6  ;;  %v7720_v27 = vpop.f32.mrb[22].mxu0  ;;  %v7792_v22 = vpop.f32.mrb[22].mxu1  ;;  %v9602_v42 = vpack.c.bf16 %v1948_v0, %v1947_v32  ;;  %v9604_v55 = vpack.c.bf16 %v2656_v15, %v2655_v31  ;;  %7928 = vmatpush3.bf16.msra.mxu1 %v8821_v1 }
 0x134   : >> { %11061 = vst [vmem:[#allocation41_spill] sm:$0xff] %v9586_v26  ;;  %11062 = vst [vmem:[#allocation42_spill] sm:$0xff] %v9591_v20  ;;  %8106 = vmatmul.mubr.msk.bf16.gmra.mrb[80].mxu0 %vm9316_vm10, %v9594_v51  ;;  %v1759_v33 = vpop.f32.mrb[23].mxu0  ;;  %v2467_v61 = vpop.f32.mrb[23].mxu1  ;;  %v9607_v62 = vrot.slane %v4913_v43, 7  ;;  %v1757_v28 = vadd.f32 %v11005_v6, %v1756_v38  ;;  %v2465_v16 = vadd.f32 %v11005_v6, %v2464_v59  ;;  %7993 = vmatprep.subr.bf16.mxu1 %v8823_v9 }
 0x135   : >> { %11063 = vst [vmem:[#allocation43_spill] sm:$0xff] %v9594_v51  ;;  %11064 = vst [vmem:[#allocation44_spill] sm:$0xff] %v9602_v42  ;;  %v9612_v24 = vrot.slane %v4905_v19, 7  ;;  %v4929_v32 = vshrl.u32 %v9586_v26, 16  ;;  %v1953_v31 = vmax.f32 %v1765_v8, 0.0  ;;  %v3943_v0 = vrot.slane %v3941_v44, 7  ;;  %7865 = vmatprep.mubr.bf16.mxu1 %v9602_v42 }
 0x136   : >> { %11065 = vst [vmem:[#allocation45_spill] sm:$0xff] %v9604_v55  ;;  %v2661_v15 = vmax.f32 %v2473_v29, 0.0  ;;  %v1951_v51 = vmax.f32 %v1757_v28, 0.0  ;;  %v1768_v1 = vadd.f32 %v7720_v27, %v11005_v6  ;;  %v2476_v43 = vadd.f32 %v7792_v22, %v11005_v6  ;;  %7866 = vmatmul.mubr.bf16.gmra.mrb[80].mxu1 %v9586_v26 }
 0x137   : >> { %v2659_v38 = vmax.f32 %v2465_v16, 0.0  ;;  %v3946_v40 = vor.u32 %v3944_v57, %v3943_v0  ;;  %v3949_v9 = vshrl.u32 %v9546_v47, 16  ;;  %v3952_v19 = vshll.u32 %v9546_v47, 16 }
 0x138   : >> { %v1954_v59 = vmax.f32 %v1768_v1, 0.0  ;;  %v2662_v23 = vmax.f32 %v2476_v43, 0.0  ;;  %v1760_v44 = vadd.f32 %v11005_v6, %v1759_v33  ;;  %v2468_v8 = vadd.f32 %v11005_v6, %v2467_v61 }
 0x139   : >> { %v7723_v29 = vpop.f32.mrb[24].mxu0  ;;  %v7795_v28 = vpop.f32.mrb[24].mxu1  ;;  %v9624_v27 = vsel %vm10911_vm13, %v3935_v17, %v3946_v40  ;;  %v3951_v22 = vrot.slane %v3949_v9, 7  ;;  %v11067_v1 = vcombine.low %v9378_v60, %v9285_v45  ;;  %v11068_v43 = vmov 0 }
 0x13a   : >> { %11066 = vst [vmem:[#allocation46_spill] sm:$0xff] %v9624_v27  ;;  %v1781_v13 = vadd.f32 %v7723_v29, %v11005_v6  ;;  %v2489_v57 = vadd.f32 %v7795_v28, %v11005_v6  ;;  %v1772_v16 = vpop.f32.mrb[25].mxu0  ;;  %v2480_v21 = vpop.f32.mrb[25].mxu1  ;;  %8109 = vmatprep.mubr.msk.bf16.mxu0 %vm9316_vm10, %v9624_v27  ;;  %v9638_v17 = vpack.c.bf16 %v1954_v59, %v1953_v31  ;;  %v1952_v61 = vmax.f32 %v1760_v44, 0.0 }
 0x13b   : >> { %vm9631_vm11 = vcmp.eq.s16.totalorder %v11067_v1, 0  ;;  %v9640_v33 = vpack.c.bf16 %v2662_v23, %v2661_v15  ;;  %v2660_v40 = vmax.f32 %v2468_v8, 0.0  ;;  %v7724_v9 = vpop.f32.mrb[26].mxu0  ;;  %v7796_v29 = vpop.f32.mrb[26].mxu1  ;;  %v9642_v28 = vrot.slane %v4929_v32, 7 }
 0x13c   : >> { %v11069_v43 = vsel %vm9631_vm11, 4294967295, %v11068_v43  ;;  %11071 = vst [vmem:[#allocation48_spill] sm:$0xff] %v9638_v17  ;;  %v3954_v1 = vor.u32 %v3952_v19, %v3951_v22  ;;  %v1773_v47 = vadd.f32 %v11005_v6, %v1772_v16  ;;  %v1775_v10 = vpop.f32.mrb[27].mxu0  ;;  %v2483_v12 = vpop.f32.mrb[27].mxu1  ;;  %v4921_v46 = vshrl.u32 %v9602_v42, 16 }
 0x13d   : >> { %11070 = vst [vmem:[#allocation47_spill] sm:$0xff] %v11069_v43  ;;  %11072 = vst [vmem:[#allocation49_spill] sm:$0xff] %v9640_v33  ;;  %v9648_v59 = vpack.c.bf16 %v1952_v61, %v1951_v51  ;;  %v9650_v23 = vpack.c.bf16 %v2660_v40, %v2659_v38  ;;  %v1957_v32 = vmax.f32 %v1781_v13, 0.0  ;;  %v2481_v44 = vadd.f32 %v11005_v6, %v2480_v21 }
 0x13e   : >> { %11073 = vst [vmem:[#allocation50_spill] sm:$0xff] %v9642_v28  ;;  %v9653_v15 = vsel %vm10911_vm13, %v3943_v0, %v3954_v1  ;;  %v3957_v19 = vshrl.u32 %v9604_v55, 16  ;;  %v4945_v8 = vshrl.u32 %v9638_v17, 16  ;;  %v2665_v16 = vmax.f32 %v2489_v57, 0.0 }
 0x13f   : >> { %11074 = vst [vmem:[#allocation51_spill] sm:$0xff] %v9648_v59  ;;  %11075 = vst [vmem:[#allocation52_spill] sm:$0xff] %v9650_v23  ;;  %8110 = vmatmul.mubr.msk.bf16.gmra.mrb[84].mxu0 %vm9316_vm10, %v9653_v15  ;;  %v1955_v60 = vmax.f32 %v1773_v47, 0.0  ;;  %v3960_v51 = vshll.u32 %v9604_v55, 16  ;;  %7869 = vmatprep.mubr.bf16.mxu1 %v9648_v59  ;;  %v4937_v0 = vshrl.u32 %v9648_v59, 16  ;;  %v1784_v13 = vadd.f32 %v7724_v9, %v11005_v6 }
 0x140   : >> { %11076 = vst [vmem:[#allocation53_spill] sm:$0xff] %v9653_v15  ;;  %v3959_v38 = vrot.slane %v3957_v19, 7  ;;  %v2492_v21 = vadd.f32 %v7796_v29, %v11005_v6  ;;  %7870 = vmatmul.mubr.bf16.gmra.mrb[84].mxu1 %v9638_v17  ;;  %v2663_v61 = vmax.f32 %v2481_v44, 0.0  ;;  %v3965_v40 = vshrl.u32 %v9591_v20, 16 }
 0x141   : >> { %v3968_v1 = vshll.u32 %v9591_v20, 16  ;;  %v1776_v47 = vadd.f32 %v11005_v6, %v1775_v10  ;;  %v7727_v57 = vpop.f32.mrb[28].mxu0  ;;  %v7799_v31 = vpop.f32.mrb[28].mxu1  ;;  %v1958_v27 = vmax.f32 %v1784_v13, 0.0  ;;  %v2484_v19 = vadd.f32 %v11005_v6, %v2483_v12 }
 0x142   : >> { %v3962_v15 = vor.u32 %v3960_v51, %v3959_v38  ;;  %v2666_v55 = vmax.f32 %v2492_v21, 0.0  ;;  %v1788_v34 = vpop.f32.mrb[29].mxu0  ;;  %v2496_v9 = vpop.f32.mrb[29].mxu1  ;;  %v9671_v35 = vrot.slane %v3965_v40, 7  ;;  %v1797_v44 = vadd.f32 %v7727_v57, %v11005_v6 }
 0x143   : >> { %v1956_v29 = vmax.f32 %v1776_v47, 0.0  ;;  %v2505_v36 = vadd.f32 %v7799_v31, %v11005_v6  ;;  %v7728_v26 = vpop.f32.mrb[30].mxu0  ;;  %v7800_v20 = vpop.f32.mrb[30].mxu1  ;;  %v9678_v28 = vpack.c.bf16 %v1958_v27, %v1957_v32  ;;  %v2664_v13 = vmax.f32 %v2484_v19, 0.0 }
 0x144   : >> { %v9676_v10 = vsel %vm10911_vm13, %v3951_v22, %v3962_v15  ;;  %v9680_v51 = vpack.c.bf16 %v2666_v55, %v2665_v16  ;;  %v1791_v12 = vpop.f32.mrb[31].mxu0  ;;  %v2499_v21 = vpop.f32.mrb[31].mxu1  ;;  %v9682_v42 = vrot.slane %v4921_v46, 7  ;;  %v3970_v31 = vor.u32 %v3968_v1, %v9671_v35 }
 0x145   : >> { %11077 = vst [vmem:[#allocation54_spill] sm:$0xff] %v9676_v10  ;;  %11078 = vst [vmem:[#allocation55_spill] sm:$0xff] %v9678_v28  ;;  %8113 = vmatprep.mubr.msk.bf16.mxu0 %vm9631_vm11, %v9676_v10  ;;  %v9689_v47 = vpack.c.bf16 %v1956_v29, %v1955_v60  ;;  %v9691_v22 = vrot.slane %v4945_v8, 7  ;;  %v9694_v27 = vpack.c.bf16 %v2664_v13, %v2663_v61  ;;  %v9697_v46 = vrot.slane %v4937_v0, 7 }
 0x146   : >> { %11079 = vst [vmem:[#allocation56_spill] sm:$0xff] %v9680_v51  ;;  %11080 = vst [vmem:[#allocation57_spill] sm:$0xff] %v9682_v42  ;;  %v1789_v15 = vadd.f32 %v11005_v6, %v1788_v34  ;;  %v9700_v32 = vsel %vm10911_vm13, %v3959_v38, %v3970_v31  ;;  %v1961_v16 = vmax.f32 %v1797_v44, 0.0  ;;  %v2497_v57 = vadd.f32 %v11005_v6, %v2496_v9 }
 0x147   : >> { %11081 = vst [vmem:[#allocation58_spill] sm:$0xff] %v9689_v47  ;;  %11082 = vst [vmem:[#allocation59_spill] sm:$0xff] %v9691_v22  ;;  %7873 = vmatprep.mubr.bf16.mxu1 %v9689_v47  ;;  %v4961_v60 = vshrl.u32 %v9678_v28, 16  ;;  %8114 = vmatmul.mubr.msk.bf16.gmra.mrb[88].mxu0 %vm9316_vm10, %v9700_v32  ;;  %v2669_v8 = vmax.f32 %v2505_v36, 0.0  ;;  %v3973_v61 = vshrl.u32 %v9650_v23, 16  ;;  %v3976_v34 = vshll.u32 %v9650_v23, 16 }
 0x148   : >> { %11083 = vst [vmem:[#allocation60_spill] sm:$0xff] %v9694_v27  ;;  %11084 = vst [vmem:[#allocation61_spill] sm:$0xff] %v9697_v46  ;;  %7874 = vmatmul.mubr.bf16.gmra.mrb[88].mxu1 %v9678_v28  ;;  %v4953_v0 = vshrl.u32 %v9689_v47, 16  ;;  %v1959_v38 = vmax.f32 %v1789_v15, 0.0  ;;  %v1800_v1 = vadd.f32 %v7728_v26, %v11005_v6  ;;  %v2508_v19 = vadd.f32 %v7800_v20, %v11005_v6 }
 0x149   : >> { %11085 = vst [vmem:[#allocation62_spill] sm:$0xff] %v9700_v32  ;;  %v7731_v9 = vpop.f32.mrb[32].mxu0  ;;  %v7803_v29 = vpop.f32.mrb[32].mxu1  ;;  %v3975_v44 = vrot.slane %v3973_v61, 7  ;;  %v3981_v13 = vshrl.u32 %v9640_v33, 16  ;;  %v3984_v36 = vshll.u32 %v9640_v33, 16  ;;  %v1792_v31 = vadd.f32 %v11005_v6, %v1791_v12 }
 0x14a   : >> { %v1804_v40 = vpop.f32.mrb[33].mxu0  ;;  %v2512_v55 = vpop.f32.mrb[33].mxu1  ;;  %v2667_v32 = vmax.f32 %v2497_v57, 0.0  ;;  %v1962_v10 = vmax.f32 %v1800_v1, 0.0  ;;  %v2670_v23 = vmax.f32 %v2508_v19, 0.0  ;;  %v2500_v15 = vadd.f32 %v11005_v6, %v2499_v21 }
 0x14b   : >> { %v7732_v43 = vpop.f32.mrb[34].mxu0  ;;  %v7804_v26 = vpop.f32.mrb[34].mxu1  ;;  %v3978_v17 = vor.u32 %v3976_v34, %v3975_v44  ;;  %v3983_v20 = vrot.slane %v3981_v13, 7  ;;  %v1960_v22 = vmax.f32 %v1792_v31, 0.0  ;;  %v1813_v61 = vadd.f32 %v7731_v9, %v11005_v6 }
 0x14c   : >> { %v1807_v59 = vpop.f32.mrb[35].mxu0  ;;  %v2515_v46 = vpop.f32.mrb[35].mxu1  ;;  %v9719_v42 = vpack.c.bf16 %v1962_v10, %v1961_v16  ;;  %v9721_v33 = vpack.c.bf16 %v2670_v23, %v2669_v8  ;;  %v2668_v12 = vmax.f32 %v2500_v15, 0.0  ;;  %v2521_v57 = vadd.f32 %v7803_v29, %v11005_v6 }
 0x14d   : >> { %v11088_v1 = vcombine.low %v9381_v2, %v9285_v45  ;;  %v11089_v21 = vmov 0  ;;  %v9734_v19 = vsel %vm10911_vm13, %v9671_v35, %v3978_v17  ;;  %v3986_v10 = vor.u32 %v3984_v36, %v3983_v20 }
 0x14e   : >> { %11086 = vst [vmem:[#allocation63_spill] sm:$0xff] %v9719_v42  ;;  %11087 = vst [vmem:[#allocation64_spill] sm:$0xff] %v9721_v33  ;;  %v9736_v16 = vpack.c.bf16 %v1960_v22, %v1959_v38  ;;  %v9738_v23 = vrot.slane %v4961_v60, 7  ;;  %8117 = vmatprep.mubr.msk.bf16.mxu0 %vm9316_vm10, %v9734_v19  ;;  %v9744_v2 = vpack.c.bf16 %v2668_v12, %v2667_v32  ;;  %v9747_v29 = vrot.slane %v4953_v0, 7 }
 0x14f   : >> { %vm9727_vm14 = vcmp.eq.s16.totalorder %v11088_v1, 0  ;;  %11092 = vst [vmem:[#allocation66_spill] sm:$0xff] %v9734_v19  ;;  %v1805_v9 = vadd.f32 %v11005_v6, %v1804_v40  ;;  %v9750_v35 = vsel %vm10911_vm13, %v3975_v44, %v3986_v10  ;;  %v1965_v17 = vmax.f32 %v1813_v61, 0.0 }
 0x150   : >> { %v11090_v21 = vsel %vm9727_vm14, 4294967295, %v11089_v21  ;;  %11093 = vst [vmem:[#allocation67_spill] sm:$0xff] %v9736_v16  ;;  %11094 = vst [vmem:[#allocation68_spill] sm:$0xff] %v9738_v23  ;;  %v2513_v22 = vadd.f32 %v11005_v6, %v2512_v55  ;;  %7877 = vmatprep.mubr.bf16.mxu1 %v9736_v16  ;;  %v4977_v60 = vshrl.u32 %v9719_v42, 16  ;;  %8118 = vmatmul.mubr.msk.bf16.gmra.mrb[92].mxu0 %vm9316_vm10, %v9750_v35  ;;  %v2673_v32 = vmax.f32 %v2521_v57, 0.0 }
 0x151   : >> { %11091 = vst [vmem:[#allocation65_spill] sm:$0xff] %v11090_v21  ;;  %11095 = vst [vmem:[#allocation69_spill] sm:$0xff] %v9744_v2  ;;  %v3989_v38 = vshrl.u32 %v9694_v27, 16  ;;  %v3992_v40 = vshll.u32 %v9694_v27, 16  ;;  %7878 = vmatmul.mubr.bf16.gmra.mrb[92].mxu1 %v9719_v42  ;;  %v7735_v0 = vpop.f32.mrb[36].mxu0  ;;  %v7807_v44 = vpop.f32.mrb[36].mxu1  ;;  %v1816_v36 = vadd.f32 %v7732_v43, %v11005_v6  ;;  %v2524_v31 = vadd.f32 %v7804_v26, %v11005_v6 }
 0x152   : >> { %11096 = vst [vmem:[#allocation70_spill] sm:$0xff] %v9747_v29  ;;  %11097 = vst [vmem:[#allocation71_spill] sm:$0xff] %v9750_v35  ;;  %v4969_v13 = vshrl.u32 %v9736_v16, 16  ;;  %v1963_v55 = vmax.f32 %v1805_v9, 0.0  ;;  %v1820_v15 = vpop.f32.mrb[37].mxu0  ;;  %v2528_v61 = vpop.f32.mrb[37].mxu1  ;;  %v1808_v10 = vadd.f32 %v11005_v6, %v1807_v59  ;;  %v2516_v9 = vadd.f32 %v11005_v6, %v2515_v46 }
 0x153   : >> { %v3991_v12 = vrot.slane %v3989_v38, 7  ;;  %v3997_v57 = vshrl.u32 %v9680_v51, 16  ;;  %v4000_v1 = vshll.u32 %v9680_v51, 16  ;;  %v7736_v34 = vpop.f32.mrb[38].mxu0  ;;  %v7808_v8 = vpop.f32.mrb[38].mxu1  ;;  %v2671_v35 = vmax.f32 %v2513_v22, 0.0 }
 0x154   : >> { %v1966_v19 = vmax.f32 %v1816_v36, 0.0  ;;  %v2674_v27 = vmax.f32 %v2524_v31, 0.0  ;;  %v1823_v28 = vpop.f32.mrb[39].mxu0  ;;  %v2531_v43 = vpop.f32.mrb[39].mxu1  ;;  %v1964_v47 = vmax.f32 %v1808_v10, 0.0  ;;  %v1829_v38 = vadd.f32 %v7735_v0, %v11005_v6 }
 0x155   : >> { %v3994_v23 = vor.u32 %v3992_v40, %v3991_v12  ;;  %v3999_v26 = vrot.slane %v3997_v57, 7  ;;  %v2672_v51 = vmax.f32 %v2516_v9, 0.0  ;;  %v2537_v59 = vadd.f32 %v7807_v44, %v11005_v6 }
 0x156   : >> { %v9769_v29 = vpack.c.bf16 %v1966_v19, %v1965_v17  ;;  %v9771_v37 = vpack.c.bf16 %v2674_v27, %v2673_v32  ;;  %v9778_v31 = vpack.c.bf16 %v1964_v47, %v1963_v55  ;;  %v9780_v40 = vrot.slane %v4977_v60, 7 }
 0x157   : >> { %v9776_v36 = vsel %vm10911_vm13, %v3983_v20, %v3994_v23  ;;  %v4002_v46 = vor.u32 %v4000_v1, %v3999_v26  ;;  %v9786_v27 = vpack.c.bf16 %v2672_v51, %v2671_v35  ;;  %v1821_v19 = vadd.f32 %v11005_v6, %v1820_v15 }
 0x158   : >> { %11098 = vst [vmem:[#allocation72_spill] sm:$0xff] %v9769_v29  ;;  %11099 = vst [vmem:[#allocation73_spill] sm:$0xff] %v9771_v37  ;;  %8121 = vmatprep.mubr.msk.bf16.mxu0 %vm9727_vm14, %v9776_v36  ;;  %v9789_v17 = vrot.slane %v4969_v13, 7  ;;  %v1969_v23 = vmax.f32 %v1829_v38, 0.0  ;;  %v2529_v47 = vadd.f32 %v11005_v6, %v2528_v61  ;;  %7881 = vmatprep.mubr.bf16.mxu1 %v9778_v31  ;;  %v4993_v0 = vshrl.u32 %v9769_v29, 16 }
 0x159   : >> { %11100 = vst [vmem:[#allocation74_spill] sm:$0xff] %v9776_v36  ;;  %11101 = vst [vmem:[#allocation75_spill] sm:$0xff] %v9778_v31  ;;  %v9792_v20 = vsel %vm10911_vm13, %v3991_v12, %v4002_v46  ;;  %v7739_v60 = vpop.f32.mrb[40].mxu0  ;;  %v7811_v32 = vpop.f32.mrb[40].mxu1  ;;  %v2677_v51 = vmax.f32 %v2537_v59, 0.0  ;;  %v4005_v35 = vshrl.u32 %v9744_v2, 16  ;;  %7882 = vmatmul.mubr.bf16.gmra.mrb[96].mxu1 %v9769_v29  ;;  %v1832_v12 = vadd.f32 %v7736_v34, %v11005_v6 }
 0x15a   : >> { %11102 = vst [vmem:[#allocation76_spill] sm:$0xff] %v9780_v40  ;;  %11103 = vst [vmem:[#allocation77_spill] sm:$0xff] %v9786_v27  ;;  %8122 = vmatmul.mubr.msk.bf16.gmra.mrb[96].mxu0 %vm9316_vm10, %v9792_v20  ;;  %v4008_v44 = vshll.u32 %v9744_v2, 16  ;;  %v1836_v13 = vpop.f32.mrb[41].mxu0  ;;  %v2544_v55 = vpop.f32.mrb[41].mxu1  ;;  %v4985_v15 = vshrl.u32 %v9778_v31, 16  ;;  %v2540_v1 = vadd.f32 %v7808_v8, %v11005_v6  ;;  %v1824_v22 = vadd.f32 %v11005_v6, %v1823_v28 }
 0x15b   : >> { %11104 = vst [vmem:[#allocation78_spill] sm:$0xff] %v9789_v17  ;;  %11105 = vst [vmem:[#allocation79_spill] sm:$0xff] %v9792_v20  ;;  %v1967_v61 = vmax.f32 %v1821_v19, 0.0  ;;  %v7740_v10 = vpop.f32.mrb[42].mxu0  ;;  %v7812_v9 = vpop.f32.mrb[42].mxu1  ;;  %v4007_v38 = vrot.slane %v4005_v35, 7  ;;  %v2532_v19 = vadd.f32 %v11005_v6, %v2531_v43  ;;  %v1845_v8 = vadd.f32 %v7739_v60, %v11005_v6 }
 0x15c   : >> { %v4013_v59 = vshrl.u32 %v9721_v33, 16  ;;  %v4016_v46 = vshll.u32 %v9721_v33, 16  ;;  %v1839_v57 = vpop.f32.mrb[43].mxu0  ;;  %v2547_v20 = vpop.f32.mrb[43].mxu1  ;;  %v2675_v36 = vmax.f32 %v2529_v47, 0.0  ;;  %v1970_v2 = vmax.f32 %v1832_v12, 0.0 }
 0x15d   : >> { %v2678_v21 = vmax.f32 %v2540_v1, 0.0  ;;  %v4010_v42 = vor.u32 %v4008_v44, %v4007_v38  ;;  %v1968_v40 = vmax.f32 %v1824_v22, 0.0  ;;  %v2676_v17 = vmax.f32 %v2532_v19, 0.0 }
 0x15e   : >> { %v4015_v34 = vrot.slane %v4013_v59, 7  ;;  %v9811_v16 = vpack.c.bf16 %v1970_v2, %v1969_v23  ;;  %v2553_v33 = vadd.f32 %v7811_v32, %v11005_v6  ;;  %v11108_v28 = vcombine.low %v9384_v7, %v9285_v45 }
 0x15f   : >> { %v9813_v35 = vpack.c.bf16 %v2678_v21, %v2677_v51  ;;  %v11109_v47 = vmov 0  ;;  %v9825_v22 = vsel %vm11112_vm0, %v3999_v26, %v4010_v42  ;;  %v9827_v2 = vpack.c.bf16 %v1968_v40, %v1967_v61 }
 0x160   : >> { %11106 = vst [vmem:[#allocation80_spill] sm:$0xff] %v9811_v16  ;;  %vm9819_vm13 = vcmp.eq.s16.totalorder %v11108_v28, 0  ;;  %11113 = vst [vmem:[#allocation83_spill] sm:$0xff] %v9825_v22  ;;  %v4018_v60 = vor.u32 %v4016_v46, %v4015_v34  ;;  %v9829_v21 = vrot.slane %v4993_v0, 7  ;;  %8125 = vmatprep.mubr.msk.bf16.mxu0 %vm9316_vm10, %v9825_v22  ;;  %v9835_v7 = vpack.c.bf16 %v2676_v17, %v2675_v36 }
 0x161   : >> { %11107 = vst [vmem:[#allocation81_spill] sm:$0xff] %v9813_v35  ;;  %v11110_v47 = vsel %vm9819_vm13, 4294967295, %v11109_v47  ;;  %11114 = vst [vmem:[#allocation84_spill] sm:$0xff] %v9827_v2  ;;  %v1837_v32 = vadd.f32 %v11005_v6, %v1836_v13  ;;  %v7743_v51 = vpop.f32.mrb[44].mxu0  ;;  %v7815_v44 = vpop.f32.mrb[44].mxu1  ;;  %v9838_v12 = vrot.slane %v4985_v15, 7  ;;  %v2545_v40 = vadd.f32 %v11005_v6, %v2544_v55  ;;  %7885 = vmatprep.mubr.bf16.mxu1 %v9827_v2 }
 0x162   : >> { %11111 = vst [vmem:[#allocation82_spill] sm:$0xff] %v11110_v47  ;;  %11115 = vst [vmem:[#allocation85_spill] sm:$0xff] %v9829_v21  ;;  %v9841_v42 = vsel %vm11112_vm0, %v4007_v38, %v4018_v60  ;;  %v1973_v26 = vmax.f32 %v1845_v8, 0.0  ;;  %v1852_v0 = vpop.f32.mrb[45].mxu0  ;;  %v2560_v61 = vpop.f32.mrb[45].mxu1  ;;  %v5009_v1 = vshrl.u32 %v9811_v16, 16  ;;  %7886 = vmatmul.mubr.bf16.gmra.mrb[100].mxu1 %v9811_v16  ;;  %v1848_v46 = vadd.f32 %v7740_v10, %v11005_v6 }
 0x163   : >> { %11116 = vst [vmem:[#allocation86_spill] sm:$0xff] %v9835_v7  ;;  %11117 = vst [vmem:[#allocation87_spill] sm:$0xff] %v9838_v12  ;;  %8126 = vmatmul.mubr.msk.bf16.gmra.mrb[100].mxu0 %vm9316_vm10, %v9841_v42  ;;  %v2681_v36 = vmax.f32 %v2553_v33, 0.0  ;;  %v4021_v17 = vshrl.u32 %v9786_v27, 16  ;;  %v4024_v13 = vshll.u32 %v9786_v27, 16  ;;  %v7744_v15 = vpop.f32.mrb[46].mxu0  ;;  %v2556_v19 = vadd.f32 %v7812_v9, %v11005_v6 }
 0x164   : >> { %11118 = vst [vmem:[#allocation88_spill] sm:$0xff] %v9841_v42  ;;  %v7816_v38 = vpop.f32.mrb[46].mxu1  ;;  %v5001_v55 = vshrl.u32 %v9827_v2, 16  ;;  %v1971_v59 = vmax.f32 %v1837_v32, 0.0  ;;  %v1855_v8 = vpop.f32.mrb[47].mxu0  ;;  %v4029_v33 = vshrl.u32 %v9771_v37, 16  ;;  %v1840_v23 = vadd.f32 %v11005_v6, %v1839_v57 }
 0x165   : >> { %v2563_v28 = vpop.f32.mrb[47].mxu1  ;;  %v4023_v60 = vrot.slane %v4021_v17, 7  ;;  %v4032_v43 = vshll.u32 %v9771_v37, 16  ;;  %v2679_v42 = vmax.f32 %v2545_v40, 0.0  ;;  %v1974_v22 = vmax.f32 %v1848_v46, 0.0 }
 0x166   : >> { %v2682_v27 = vmax.f32 %v2556_v19, 0.0  ;;  %v2548_v29 = vadd.f32 %v11005_v6, %v2547_v20  ;;  %v4031_v32 = vrot.slane %v4029_v33, 7  ;;  %v1972_v31 = vmax.f32 %v1840_v23, 0.0 }
 0x167   : >> { %v4026_v21 = vor.u32 %v4024_v13, %v4023_v60  ;;  %v1861_v10 = vadd.f32 %v7743_v51, %v11005_v6  ;;  %v9860_v9 = vpack.c.bf16 %v1974_v22, %v1973_v26  ;;  %v2569_v56 = vadd.f32 %v7815_v44, %v11005_v6 }
 0x168   : >> { %v9862_v12 = vpack.c.bf16 %v2682_v27, %v2681_v36  ;;  %v2680_v17 = vmax.f32 %v2548_v29, 0.0  ;;  %v4034_v40 = vor.u32 %v4032_v43, %v4031_v32  ;;  %v9869_v46 = vpack.c.bf16 %v1972_v31, %v1971_v59 }
 0x169   : >> { %11119 = vst [vmem:[#allocation89_spill] sm:$0xff] %v9860_v9  ;;  %v9867_v57 = vsel %vm11112_vm0, %v4015_v34, %v4026_v21  ;;  %v7747_v20 = vpop.f32.mrb[48].mxu0  ;;  %v7819_v13 = vpop.f32.mrb[48].mxu1  ;;  %v9871_v23 = vrot.slane %v5009_v1, 7  ;;  %v1853_v27 = vadd.f32 %v11005_v6, %v1852_v0  ;;  %v9880_v21 = vrot.slane %v5001_v55, 7 }
 0x16a   : >> { %11120 = vst [vmem:[#allocation90_spill] sm:$0xff] %v9862_v12  ;;  %11121 = vst [vmem:[#allocation91_spill] sm:$0xff] %v9867_v57  ;;  %8129 = vmatprep.mubr.msk.bf16.mxu0 %vm9819_vm13, %v9867_v57  ;;  %v9877_v29 = vpack.c.bf16 %v2680_v17, %v2679_v42  ;;  %v1868_v51 = vpop.f32.mrb[49].mxu0  ;;  %v2576_v34 = vpop.f32.mrb[49].mxu1  ;;  %v9883_v31 = vsel %vm11112_vm0, %v4023_v60, %v4034_v40  ;;  %v1977_v43 = vmax.f32 %v1861_v10, 0.0  ;;  %7889 = vmatprep.mubr.bf16.mxu1 %v9869_v46 }
 0x16b   : >> { %11122 = vst [vmem:[#allocation92_spill] sm:$0xff] %v9869_v46  ;;  %11123 = vst [vmem:[#allocation93_spill] sm:$0xff] %v9871_v23  ;;  %v2561_v44 = vadd.f32 %v11005_v6, %v2560_v61  ;;  %v7748_v26 = vpop.f32.mrb[50].mxu0  ;;  %v7820_v1 = vpop.f32.mrb[50].mxu1  ;;  %v5025_v36 = vshrl.u32 %v9860_v9, 16  ;;  %8130 = vmatmul.mubr.msk.bf16.gmra.mrb[104].mxu0 %vm9316_vm10, %v9883_v31  ;;  %v2685_v42 = vmax.f32 %v2569_v56, 0.0  ;;  %7890 = vmatmul.mubr.bf16.gmra.mrb[104].mxu1 %v9860_v9 }
 0x16c   : >> { %11124 = vst [vmem:[#allocation94_spill] sm:$0xff] %v9877_v29  ;;  %11125 = vst [vmem:[#allocation95_spill] sm:$0xff] %v9883_v31  ;;  %v4037_v0 = vshrl.u32 %v9835_v7, 16  ;;  %v4040_v55 = vshll.u32 %v9835_v7, 16  ;;  %v1871_v59 = vpop.f32.mrb[51].mxu0  ;;  %v2579_v19 = vpop.f32.mrb[51].mxu1  ;;  %v1864_v33 = vadd.f32 %v7744_v15, %v11005_v6  ;;  %v2572_v10 = vadd.f32 %v7816_v38, %v11005_v6 }
 0x16d   : >> { %v5017_v61 = vshrl.u32 %v9869_v46, 16  ;;  %v1975_v60 = vmax.f32 %v1853_v27, 0.0  ;;  %v4045_v40 = vshrl.u32 %v9813_v35, 16  ;;  %v4048_v56 = vshll.u32 %v9813_v35, 16 }
 0x16e   : >> { %v4039_v17 = vrot.slane %v4037_v0, 7  ;;  %v1856_v37 = vadd.f32 %v11005_v6, %v1855_v8  ;;  %v2683_v22 = vmax.f32 %v2561_v44, 0.0  ;;  %v1978_v31 = vmax.f32 %v1864_v33, 0.0 }
 0x16f   : >> { %v2686_v57 = vmax.f32 %v2572_v10, 0.0  ;;  %v2564_v7 = vadd.f32 %v11005_v6, %v2563_v28  ;;  %v4047_v16 = vrot.slane %v4045_v40, 7  ;;  %v1877_v27 = vadd.f32 %v7747_v20, %v11005_v6 }
 0x170   : >> { %v4042_v47 = vor.u32 %v4040_v55, %v4039_v17  ;;  %v1976_v23 = vmax.f32 %v1856_v37, 0.0  ;;  %v9902_v15 = vpack.c.bf16 %v1978_v31, %v1977_v43  ;;  %v2585_v2 = vadd.f32 %v7819_v13, %v11005_v6 }
 0x171   : >> { %v9904_v38 = vpack.c.bf16 %v2686_v57, %v2685_v42  ;;  %v2684_v0 = vmax.f32 %v2564_v7, 0.0  ;;  %v11128_v8 = vcombine.low %v9423_v49, %v9285_v45  ;;  %v11129_v44 = vmov 0  ;;  %v7751_v28 = vpop.f32.mrb[52].mxu0  ;;  %v7823_v55 = vpop.f32.mrb[52].mxu1 }
 0x172   : >> { %11126 = vst [vmem:[#allocation96_spill] sm:$0xff] %v9902_v15  ;;  %v9916_v20 = vsel %vm11132_vm1, %v4031_v32, %v4042_v47  ;;  %v4050_v31 = vor.u32 %v4048_v56, %v4047_v16  ;;  %v9918_v57 = vpack.c.bf16 %v1976_v23, %v1975_v60  ;;  %v1884_v7 = vpop.f32.mrb[53].mxu0  ;;  %v2592_v43 = vpop.f32.mrb[53].mxu1  ;;  %v9920_v13 = vrot.slane %v5025_v36, 7 }
 0x173   : >> { %11127 = vst [vmem:[#allocation97_spill] sm:$0xff] %v9904_v38  ;;  %vm9910_vm0 = vcmp.eq.s16.totalorder %v11128_v8, 0  ;;  %11133 = vst [vmem:[#allocation99_spill] sm:$0xff] %v9916_v20  ;;  %8133 = vmatprep.mubr.msk.bf16.mxu0 %vm9316_vm10, %v9916_v20  ;;  %v9926_v42 = vpack.c.bf16 %v2684_v0, %v2683_v22  ;;  %v1869_v33 = vadd.f32 %v11005_v6, %v1868_v51  ;;  %v9929_v10 = vpop.f32.mrb[54].mxu0  ;;  %v9931_v47 = vpop.f32.mrb[54].mxu1  ;;  %v9933_v32 = vrot.slane %v5017_v61, 7 }
 0x174   : >> { %v11130_v44 = vsel %vm9910_vm0, 4294967295, %v11129_v44  ;;  %11134 = vst [vmem:[#allocation100_spill] sm:$0xff] %v9918_v57  ;;  %11135 = vst [vmem:[#allocation101_spill] sm:$0xff] %v9920_v13  ;;  %v9936_v23 = vsel %vm11132_vm1, %v4039_v17, %v4050_v31  ;;  %v1981_v36 = vmax.f32 %v1877_v27, 0.0  ;;  %v2577_v60 = vadd.f32 %v11005_v6, %v2576_v34  ;;  %7893 = vmatprep.mubr.bf16.mxu1 %v9918_v57  ;;  %v9940_v40 = vpop.f32.mrb[55].mxu0  ;;  %v9942_v22 = vpop.f32.mrb[55].mxu1 }
 0x175   : >> { %11131 = vst [vmem:[#allocation98_spill] sm:$0xff] %v11130_v44  ;;  %11136 = vst [vmem:[#allocation102_spill] sm:$0xff] %v9926_v42  ;;  %v5041_v51 = vshrl.u32 %v9902_v15, 16  ;;  %8134 = vmatmul.mubr.msk.bf16.gmra.mrb[108].mxu0 %vm9316_vm10, %v9936_v23  ;;  %v2689_v61 = vmax.f32 %v2585_v2, 0.0  ;;  %v4053_v56 = vshrl.u32 %v9877_v29, 16  ;;  %v4056_v17 = vshll.u32 %v9877_v29, 16  ;;  %7894 = vmatmul.mubr.bf16.gmra.mrb[108].mxu1 %v9902_v15 }
 0x176   : >> { %11137 = vst [vmem:[#allocation103_spill] sm:$0xff] %v9933_v32  ;;  %11138 = vst [vmem:[#allocation104_spill] sm:$0xff] %v9936_v23  ;;  %v5033_v34 = vshrl.u32 %v9918_v57, 16  ;;  %v1979_v27 = vmax.f32 %v1869_v33, 0.0  ;;  %v1880_v0 = vadd.f32 %v7748_v26, %v11005_v6  ;;  %v2588_v8 = vadd.f32 %v7820_v1, %v11005_v6 }
 0x177   : >> { %v4055_v31 = vrot.slane %v4053_v56, 7  ;;  %v4061_v37 = vshrl.u32 %v9862_v12, 16  ;;  %v4064_v49 = vshll.u32 %v9862_v12, 16  ;;  %v1872_v2 = vadd.f32 %v11005_v6, %v1871_v59 }
 0x178   : >> { %v2687_v23 = vmax.f32 %v2577_v60, 0.0  ;;  %v1982_v20 = vmax.f32 %v1880_v0, 0.0  ;;  %v2690_v35 = vmax.f32 %v2588_v8, 0.0  ;;  %v2580_v29 = vadd.f32 %v11005_v6, %v2579_v19 }
 0x179   : >> { %v4058_v9 = vor.u32 %v4056_v17, %v4055_v31  ;;  %v9958_v13 = vrot.slane %v4061_v37, 7  ;;  %v1980_v33 = vmax.f32 %v1872_v2, 0.0  ;;  %v1893_v26 = vadd.f32 %v7751_v28, %v11005_v6  ;;  %v7755_v46 = vpop.f32.mrb[56].mxu0  ;;  %v7827_v1 = vpop.f32.mrb[56].mxu1 }
 0x17a   : >> { %v9961_v56 = vpack.c.bf16 %v1982_v20, %v1981_v36  ;;  %v9963_v32 = vpack.c.bf16 %v2690_v35, %v2689_v61  ;;  %v2688_v12 = vmax.f32 %v2580_v29, 0.0  ;;  %v2601_v59 = vadd.f32 %v7823_v55, %v11005_v6  ;;  %v9966_v60 = vpop.f32.mrb[57].mxu0  ;;  %v9968_v0 = vpop.f32.mrb[57].mxu1 }
 0x17b   : >> { %v9972_v37 = vsel %vm11132_vm1, %v4047_v16, %v4058_v9  ;;  %v4066_v28 = vor.u32 %v4064_v49, %v9958_v13  ;;  %v9975_v17 = vpack.c.bf16 %v1980_v33, %v1979_v27  ;;  %v9977_v20 = vpop.f32.mrb[58].mxu0  ;;  %v9979_v35 = vpop.f32.mrb[58].mxu1  ;;  %v9981_v29 = vrot.slane %v5041_v51, 7 }
 0x17c   : >> { %11139 = vst [vmem:[#allocation105_spill] sm:$0xff] %v9961_v56  ;;  %11140 = vst [vmem:[#allocation106_spill] sm:$0xff] %v9963_v32  ;;  %8137 = vmatprep.mubr.msk.bf16.mxu0 %vm9910_vm0, %v9972_v37  ;;  %v9987_v36 = vpack.c.bf16 %v2688_v12, %v2687_v23  ;;  %v1885_v16 = vadd.f32 %v11005_v6, %v1884_v7  ;;  %v9990_v9 = vpop.f32.mrb[59].mxu0  ;;  %v9992_v49 = vpop.f32.mrb[59].mxu1  ;;  %v9994_v61 = vrot.slane %v5033_v34, 7  ;;  %v1985_v51 = vmax.f32 %v1893_v26, 0.0 }
 0x17d   : >> { %11141 = vst [vmem:[#allocation107_spill] sm:$0xff] %v9972_v37  ;;  %11142 = vst [vmem:[#allocation108_spill] sm:$0xff] %v9981_v29  ;;  %v9997_v27 = vsel %vm11132_vm1, %v4055_v31, %v4066_v28  ;;  %v2593_v8 = vadd.f32 %v11005_v6, %v2592_v43  ;;  %7897 = vmatprep.mubr.bf16.mxu1 %v9975_v17  ;;  %v5057_v2 = vshrl.u32 %v9961_v56, 16  ;;  %v2693_v12 = vmax.f32 %v2601_v59, 0.0 }
 0x17e   : >> { %11143 = vst [vmem:[#allocation109_spill] sm:$0xff] %v9987_v36  ;;  %11144 = vst [vmem:[#allocation110_spill] sm:$0xff] %v9997_v27  ;;  %8138 = vmatmul.mubr.msk.bf16.gmra.mrb[112].mxu0 %vm9316_vm10, %v9997_v27  ;;  %v4069_v7 = vshrl.u32 %v9926_v42, 16  ;;  %v4072_v23 = vshll.u32 %v9926_v42, 16  ;;  %7898 = vmatmul.mubr.bf16.gmra.mrb[112].mxu1 %v9961_v56  ;;  %v5049_v34 = vshrl.u32 %v9975_v17, 16  ;;  %v1983_v31 = vmax.f32 %v1885_v16, 0.0 }
 0x17f   : >> { %v1896_v43 = vadd.f32 %v9929_v10, %v11005_v6  ;;  %v2604_v33 = vadd.f32 %v9931_v47, %v11005_v6  ;;  %v4077_v28 = vshrl.u32 %v9904_v38, 16  ;;  %v4080_v59 = vshll.u32 %v9904_v38, 16 }
 0x180   : >> { %v4071_v26 = vrot.slane %v4069_v7, 7  ;;  %v1888_v19 = vadd.f32 %v11005_v6, %v9940_v40  ;;  %v2691_v55 = vmax.f32 %v2593_v8, 0.0  ;;  %v2596_v16 = vadd.f32 %v11005_v6, %v9942_v22 }
 0x181   : >> { %v1986_v27 = vmax.f32 %v1896_v43, 0.0  ;;  %v2694_v37 = vmax.f32 %v2604_v33, 0.0  ;;  %v7759_v42 = vpop.f32.mrb[60].mxu0  ;;  %v10019_v44 = vpop.f32.mrb[60].mxu1  ;;  %v4079_v15 = vrot.slane %v4077_v28, 7  ;;  %v1909_v7 = vadd.f32 %v7755_v46, %v11005_v6 }
 0x182   : >> { %v4074_v10 = vor.u32 %v4072_v23, %v4071_v26  ;;  %v1984_v47 = vmax.f32 %v1888_v19, 0.0  ;;  %v1916_v29 = vpop.f32.mrb[61].mxu0  ;;  %v10022_v57 = vpop.f32.mrb[61].mxu1  ;;  %v2692_v8 = vmax.f32 %v2596_v16, 0.0  ;;  %v2617_v43 = vadd.f32 %v7827_v1, %v11005_v6 }
 0x183   : >> { %v10024_v38 = vpack.c.bf16 %v1986_v27, %v1985_v51  ;;  %v10026_v40 = vpack.c.bf16 %v2694_v37, %v2693_v12  ;;  %v11146_v22 = vcombine.low %v9445_v52, %v9285_v45  ;;  %v10036_v19 = vpop.f32.mrb[62].mxu0  ;;  %v10038_v46 = vpop.f32.mrb[62].mxu1  ;;  %v4082_v27 = vor.u32 %v4080_v59, %v4079_v15 }
 0x184   : >> { %v10043_v37 = vsel %vm11149_vm2, %v9958_v13, %v4074_v10  ;;  %v10045_v51 = vpack.c.bf16 %v1984_v47, %v1983_v31  ;;  %v10047_v1 = vpop.f32.mrb[63].mxu0  ;;  %v10049_v45 = vpop.f32.mrb[63].mxu1  ;;  %v10051_v52 = vrot.slane %v5057_v2, 7  ;;  %v10057_v28 = vpack.c.bf16 %v2692_v8, %v2691_v55 }
 0x185   : >> { %11145 = vst [vmem:[#allocation111_spill] sm:$0xff] %v10026_v40  ;;  %vm10032_vm1 = vcmp.eq.s16.totalorder %v11146_v22, 0  ;;  %11150 = vst [vmem:[#allocation112_spill] sm:$0xff] %v10043_v37  ;;  %8141 = vmatprep.mubr.msk.bf16.mxu0 %vm9316_vm10, %v10043_v37  ;;  %v1901_v13 = vadd.f32 %v11005_v6, %v9966_v60  ;;  %v10061_v59 = vrot.slane %v5049_v34, 7  ;;  %v10064_v31 = vsel %vm11149_vm2, %v4071_v26, %v4082_v27 }
 0x186   : >> { %11151 = vst [vmem:[#allocation113_spill] sm:$0xff] %v10051_v52  ;;  %11152 = vst [vmem:[#allocation114_spill] sm:$0xff] %v10064_v31  ;;  %v1989_v16 = vmax.f32 %v1909_v7, 0.0  ;;  %v2609_v2 = vadd.f32 %v11005_v6, %v9968_v0  ;;  %7901 = vmatprep.mubr.bf16.mxu1 %v10045_v51  ;;  %v5073_v10 = vshrl.u32 %v10024_v38, 16  ;;  %8142 = vmatmul.mubr.msk.bf16.gmra.mrb[116].mxu0 %vm9316_vm10, %v10064_v31  ;;  %v2697_v55 = vmax.f32 %v2617_v43, 0.0 }
 0x187   : >> { %v4085_v60 = vshrl.u32 %v9987_v36, 16  ;;  %v4088_v34 = vshll.u32 %v9987_v36, 16  ;;  %7902 = vmatmul.mubr.bf16.gmra.mrb[116].mxu1 %v10024_v38  ;;  %v5065_v26 = vshrl.u32 %v10045_v51, 16  ;;  %v1987_v47 = vmax.f32 %v1901_v13, 0.0 }
 0x188   : >> { %v1912_v0 = vadd.f32 %v9977_v20, %v11005_v6  ;;  %v2620_v7 = vadd.f32 %v9979_v35, %v11005_v6  ;;  %v4093_v22 = vshrl.u32 %v9963_v32, 16  ;;  %v4096_v43 = vshll.u32 %v9963_v32, 16 }
 0x189   : >> { %v4087_v8 = vrot.slane %v4085_v60, 7  ;;  %v1904_v27 = vadd.f32 %v11005_v6, %v9990_v9  ;;  %v2695_v23 = vmax.f32 %v2609_v2, 0.0  ;;  %v2612_v13 = vadd.f32 %v11005_v6, %v9992_v49 }
 0x18a   : >> { %v1990_v12 = vmax.f32 %v1912_v0, 0.0  ;;  %v2698_v31 = vmax.f32 %v2620_v7, 0.0  ;;  %v4095_v36 = vrot.slane %v4093_v22, 7  ;;  %v1925_v56 = vadd.f32 %v7759_v42, %v11005_v6 }
 0x18b   : >> { %v4090_v37 = vor.u32 %v4088_v34, %v4087_v8  ;;  %v1988_v20 = vmax.f32 %v1904_v27, 0.0  ;;  %v2696_v52 = vmax.f32 %v2612_v13, 0.0  ;;  %v1917_v32 = vadd.f32 %v11005_v6, %v1916_v29  ;;  %v11197_v13 = vld [vmem:[#allocation76_spill] sm:$0xff] }
 0x18c   : >> { %v10088_v35 = vpack.c.bf16 %v1990_v12, %v1989_v16  ;;  %v10090_v60 = vpack.c.bf16 %v2698_v31, %v2697_v55   ;;  %v4098_v0 = vor.u32 %v4096_v43, %v4095_v36  ;;  %v10099_v49 = vrot.slane %v5073_v10, 7 }
 0x18d   : >> { %v10095_v2 = vsel %vm11149_vm2, %v4079_v15, %v4090_v37  ;;  %v10097_v7 = vpack.c.bf16 %v1988_v20, %v1987_v47  ;;  %v10101_v34 = vrot.slane %v5065_v26, 7  ;;  %v10112_v37 = vpack.c.bf16 %v2696_v52, %v2695_v23  }
 0x18e   : >> { %11153 = vst [vmem:[#allocation115_spill] sm:$0xff] %v10095_v2  ;;  %8145 = vmatprep.mubr.msk.bf16.mxu0 %vm10032_vm1, %v10095_v2  ;;  %v5089_v29 = vshrl.u32 %v10088_v35, 16  ;;  %v10109_v12 = vsel %vm11154_vm3, %v4087_v8, %v4098_v0  ;;  %v1993_v31 = vmax.f32 %v1925_v56, 0.0  ;;  %v1991_v10 = vmax.f32 %v1917_v32, 0.0  ;;  %vm11159_vm3 = vmmov %vm11149_vm2  ;;  %v11205_v2 = vld [vmem:[#allocation72_spill] sm:$0xff] }
 0x18f   : >> { %11155 = vst [vmem:[#allocation116_spill] sm:$0xff] %v10109_v12  ;;  %v5081_v15 = vshrl.u32 %v10097_v7, 16  ;;  %7905 = vmatprep.mubr.bf16.mxu1 %v10097_v7  ;;  %8146 = vmatmul.mubr.msk.bf16.gmra.mrb[120].mxu0 %vm9316_vm10, %v10109_v12  ;;  %v4101_v55 = vshrl.u32 %v10057_v28, 16  ;;  %v4104_v26 = vshll.u32 %v10057_v28, 16  ;;  %v1928_v52 = vadd.f32 %v10036_v19, %v11005_v6  ;;  %v11204_v12 = vld [vmem:[#allocation85_spill] sm:$0xff] }
 0x190   : >> { %7906 = vmatmul.mubr.bf16.gmra.mrb[120].mxu1 %v10088_v35  ;;  %v10122_v47 = vrot.slane %v5089_v29, 7  ;;  %v4109_v22 = vshrl.u32 %v10026_v40, 16  ;;  %v4112_v32 = vshll.u32 %v10026_v40, 16  ;;  %v1920_v43 = vadd.f32 %v11005_v6, %v10047_v1 }
 0x191   : >> { %v10124_v23 = vrot.slane %v5081_v15, 7  ;;  %v4103_v8 = vrot.slane %v4101_v55, 7  ;;  %v5596_v27 = vshrl.u32 %v10112_v37, 16  ;;  %v1994_v20 = vmax.f32 %v1928_v52, 0.0 }
 0x192   : >> { %v4861_v0 = vshll.u32 %v9395_v11, 16  ;;  %v10136_v15 = vrot.slane %v4109_v22, 7  ;;  %v1992_v16 = vmax.f32 %v1920_v43, 0.0  ;;  %v11156_v19 = vshll.u32 %v9450_v3, 16 }
 0x193   : >> { %v4106_v29 = vor.u32 %v4104_v26, %v4103_v8  ;;  %v10141_v56 = vpack.c.bf16 %v1994_v20, %v1993_v31  ;;  %v11157_v1 = vshll.u32 %v9440_v50, 16  ;;  %v11158_v52 = vshll.u32 %v9500_v25, 16  ;;  %v11207_v20 = vld [vmem:[#allocation84_spill] sm:$0xff] }
 0x194   : >> { %v4878_v55 = vor.u32 %v11156_v19, %v9506_v18  ;;  %v4863_v9 = vor.u32 %v4861_v0, %v9469_v54  ;;  %v4114_v22 = vor.u32 %v4112_v32, %v10136_v15  ;;  %v10154_v43 = vpack.c.bf16 %v1992_v16, %v1991_v10  ;;  %v11169_v0 = vld [vmem:[#allocation22_spill] sm:$0xff]  ;;  %v11171_v19 = vld [vmem:[#allocation44_spill] sm:$0xff] }
 0x195   : >> { %v4886_v42 = vor.u32 %v11157_v1, %v9504_v39  ;;  %v4894_v11 = vor.u32 %v11158_v52, %v9568_v30  ;;  %v10151_v26 = vsel %vm11159_vm3, %v4095_v36, %v4106_v29  ;;  %v10158_v31 = vrot.slane %v5596_v27, 7  ;;  %vm11162_vm3 = vmmov %vm11149_vm2  ;;  %v11170_v29 = vld [vmem:[#allocation57_spill] sm:$0xff]  ;;  %v11173_v1 = vld [vmem:[#allocation50_spill] sm:$0xff] }
 0x196   : >> { %11160 = vst [vmem:[#allocation117_spill] sm:$0xff] %v10151_v26  ;;  %v4879_v3 = vsel %vm11149_vm2, %v9425_v58, %v4878_v55  ;;  %8149 = vmatprep.mubr.msk.bf16.mxu0 %vm9316_vm10, %v10151_v26  ;;  %v5105_v50 = vshrl.u32 %v10141_v56, 16  ;;  %v4871_v25 = vsel %vm11161_vm4, %v9469_v54, %v9463_v5  ;;  %v10172_v16 = vsel %vm11163_vm5, %v4103_v8, %v4114_v22  ;;  %v11174_v52 = vld [vmem:[#allocation41_spill] sm:$0xff]  ;;  %vm11179_vm4 = vmmov %vm11149_vm2  ;;  %v11202_v26 = vld [vmem:[#allocation75_spill] sm:$0xff] }
 0x197   : >> { %v10169_v36 = vsel %vm11162_vm3, %v9506_v18, %v4886_v42  ;;  %11164 = vst [vmem:[#allocation118_spill] sm:$0xff] %v10172_v16  ;;  %v5097_v58 = vshrl.u32 %v10154_v43, 16  ;;  %v5144_v10 = vsel %vm9293_vm15, 0, %v4863_v9  ;;  %7909 = vmatprep.mubr.bf16.mxu1 %v10154_v43  ;;  %v10180_v32 = vsel %vm11149_vm2, %v9504_v39, %v4894_v11  ;;  %8150 = vmatmul.mubr.msk.bf16.gmra.mrb[124].mxu0 %vm9316_vm10, %v10172_v16  ;;  %v11176_v22 = vld [vmem:[#allocation61_spill] sm:$0xff]  ;;  %vm11180_vm5 = vmmov %vm11149_vm2  ;;  %v11198_v16 = vld [vmem:[#allocation63_spill] sm:$0xff] }
 0x198   : >> { %v10182_v27 = vrot.slane %v5105_v50, 7  ;;  %7910 = vmatmul.mubr.bf16.gmra.mrb[124].mxu1 %v10141_v56  ;;  %v11165_v5 = vshll.u32 %v9492_v41, 16  ;;  %v11166_v18 = vshll.u32 %v9556_v14, 16  ;;  %v11167_v39 = vshll.u32 %v9544_v53, 16  ;;  %8169 = vmatprep.mubr.msk.bf16.mxu0 %vm9304_vm9, %v5144_v10  ;;  %v11177_v50 = vld [vmem:[#allocation51_spill] sm:$0xff]  ;;  %vm11181_vm3 = vmmov %vm11149_vm2 }
 0x199   : >> { %v10197_v8 = vrot.slane %v5097_v58, 7  ;;  %7929 = vmatprep.mubr.bf16.mxu1 %v11169_v0  ;;  %v11172_v55 = vshll.u32 %v11171_v19, 16  ;;  %v11175_v11 = vshll.u32 %v11174_v52, 16  ;;  %v11183_v0 = vld [vmem:[#allocation48_spill] sm:$0xff] }
 0x19a   : >> { %v4902_v54 = vor.u32 %v11165_v5, %v9562_v4  ;;  %v4910_v9 = vor.u32 %v11166_v18, %v9612_v24  ;;  %v4918_v42 = vor.u32 %v11167_v39, %v9607_v62  ;;  %v11178_v5 = vshll.u32 %v11177_v50, 16  ;;  %v11182_v39 = vld [vmem:[#allocation59_spill] sm:$0xff] }
 0x19b   : >> { %v4926_v41 = vor.u32 %v11172_v55, %v11170_v29  ;;  %v4934_v14 = vor.u32 %v11175_v11, %v11173_v1  ;;  %v11184_v19 = vshll.u32 %v11183_v0, 16  ;;  %v11194_v0 = vld [vmem:[#allocation78_spill] sm:$0xff] }
 0x19c   : >> { %v4942_v53 = vor.u32 %v11178_v5, %v11176_v22  ;;  %v10213_v58 = vsel %vm11179_vm4, %v9568_v30, %v4902_v54  ;;  %v10217_v10 = vsel %vm11180_vm5, %v9562_v4, %v4910_v9  ;;  %v10221_v18 = vsel %vm11181_vm3, %v9612_v24, %v4918_v42  ;;  %vm11186_vm4 = vmmov %vm11149_vm2  ;;  %v11187_v24 = vld [vmem:[#allocation70_spill] sm:$0xff] }
 0x19d   : >> { %v4950_v55 = vor.u32 %v11184_v19, %v11182_v39  ;;  %v10228_v52 = vsel %vm11149_vm2, %v9607_v62, %v4926_v41  ;;  %v10232_v30 = vsel %vm11185_vm6, %v11170_v29, %v4934_v14  ;;  %v11188_v54 = vld [vmem:[#allocation58_spill] sm:$0xff]  ;;  %vm11190_vm5 = vmmov %vm11149_vm2  ;;  %v11191_v62 = vld [vmem:[#allocation68_spill] sm:$0xff] }
 0x19e   : >> { %v10236_v4 = vsel %vm11186_vm4, %v11173_v1, %v4942_v53  ;;  %v11189_v9 = vshll.u32 %v11188_v54, 16  ;;  %v11192_v41 = vld [vmem:[#allocation55_spill] sm:$0xff]  ;;  %v11199_v1 = vshll.u32 %v11198_v16, 16  ;;  %vm11200_vm6 = vmmov %vm11149_vm2 }
 0x19f   : >> { %v10243_v11 = vsel %vm11190_vm5, %v11176_v22, %v4950_v55  ;;  %v11193_v50 = vshll.u32 %v11192_v41, 16  ;;  %v11195_v29 = vld [vmem:[#allocation67_spill] sm:$0xff]  ;;  %v11203_v22 = vshll.u32 %v11202_v26, 16  ;;  %v11206_v41 = vshll.u32 %v11205_v2, 16  ;;  %vm11209_vm3 = vmmov %vm11149_vm2  ;;  %8170 = vmatmul.mubr.msk.bf16.vlgmr.msra.gmra.mrb[64].mxu0 %vm9316_vm10, %v4871_v25 }
 0x1a0   : >> { %v4958_v42 = vor.u32 %v11189_v9, %v11187_v24  ;;  %v11196_v14 = vshll.u32 %v11195_v29, 16  ;;  %v4982_v53 = vor.u32 %v11199_v1, %v11197_v13  ;;  %v11201_v9 = vld [vmem:[#allocation87_spill] sm:$0xff]  ;;  %v11208_v29 = vshll.u32 %v11207_v20, 16  ;;  %vm11210_vm4 = vmmov %vm11149_vm2  ;;  %8173 = vmatprep.mubr.msk.bf16.mxu0 %vm9316_vm10, %v4879_v3  ;;  %v8827_v3 = vld [vmem:[%s9021_s19 + $0x90] sm:$0xff]  }
 0x1a1   : >> { %v4966_v5 = vor.u32 %v11193_v50, %v11191_v62  ;;  %v4990_v55 = vor.u32 %v11203_v22, %v11201_v9  ;;  %v4998_v50 = vor.u32 %v11206_v41, %v11204_v12  ;;  %v2633_v2 = vadd.f32 %v10019_v44, %v11005_v6  ;;  %v8826_v1 = vld [vmem:[%s9021_s19 + $0x148] sm:$0xff]   ;;  %vm11211_vm5 = vmmov %vm11149_vm2  ;;  %v11214_v44 = vld [vmem:[#allocation21_spill] sm:$0xff] }
 0x1a2   : >> { %v4974_v19 = vor.u32 %v11196_v14, %v11194_v0  ;;  %v10256_v54 = vsel %vm11200_vm6, %v11182_v39, %v4958_v42  ;;  %v5006_v14 = vor.u32 %v11208_v29, %v9880_v21  ;;  %v10277_v26 = vsel %vm11210_vm4, %v11194_v0, %v4982_v53  ;;  %v8825_v42 = vld [vmem:[%s9021_s19 + $0x88] sm:$0xff]   ;;  %vm11212_vm6 = vmmov %vm11149_vm2  ;;  %7930 = vmatmul.mubr.bf16.vlgmr.msra.gmra.mrb[64].mxu1 %v11214_v44  ;;  %v11215_v0 = vld [vmem:[#allocation93_spill] sm:$0xff] }
 0x1a3   : >> { %v10269_v16 = vsel %vm11209_vm3, %v11187_v24, %v4966_v5  ;;  %v10285_v20 = vsel %vm11211_vm5, %v11197_v13, %v4990_v55  ;;  %v10289_v24 = vsel %vm11212_vm6, %v11201_v9, %v4998_v50  ;;  %vm11213_vm3 = vmmov %vm11149_vm2  ;;  %v2625_v5 = vadd.f32 %v11005_v6, %v10022_v57  ;;  %v11218_v55 = vld [vmem:[#allocation103_spill] sm:$0xff]  ;;  %v8839_v57 = vld [vmem:[%s9021_s19 + $0x80] sm:$0xff]  }
 0x1a4   : >> { %v10273_v39 = vsel %vm11149_vm2, %v11191_v62, %v4974_v19  ;;  %v10293_v62 = vsel %vm11213_vm3, %v11204_v12, %v5006_v14  ;;  %v2701_v13 = vmax.f32 %v2633_v2, 0.0  ;;  %v11216_v19 = vld [vmem:[#allocation80_spill] sm:$0xff]  ;;  %v2636_v22 = vadd.f32 %v10038_v46, %v11005_v6  ;;  %7994 = vmatpush3.bf16.msra.mxu1 %v8839_v57  ;;  %v11221_v14 = vld [vmem:[#allocation101_spill] sm:$0xff]  ;;  %vm11227_vm4 = vmmov %vm11149_vm2 }
 0x1a5   : >> { %v11217_v53 = vshll.u32 %v11216_v19, 16  ;;  %v11219_v12 = vld [vmem:[#allocation92_spill] sm:$0xff]  ;;  %v2699_v25 = vmax.f32 %v2625_v5, 0.0  ;;  %v2628_v29 = vadd.f32 %v11005_v6, %v10049_v45  ;;  %v11222_v2 = vld [vmem:[#allocation89_spill] sm:$0xff]  ;;  %7995 = vmatprep.subr.bf16.mxu1 %v8825_v42  ;;  %vm11231_vm5 = vmmov %vm11149_vm2 }
 0x1a6   : >> { %v11220_v41 = vshll.u32 %v11219_v12, 16  ;;  %v11223_v44 = vshll.u32 %v11222_v2, 16  ;;  %v11224_v46 = vld [vmem:[#allocation100_spill] sm:$0xff]  ;;  %v8840_v12 = vld [vmem:[%s9021_s19 + $0x140] sm:$0xff]   ;;  %v2702_v5 = vmax.f32 %v2636_v22, 0.0  ;;  %vm11232_vm6 = vmmov %vm11149_vm2 }
 0x1a7   : >> { %v5014_v9 = vor.u32 %v11217_v53, %v11215_v0  ;;  %v11225_v53 = vshll.u32 %v11224_v46, 16  ;;  %8234 = vmatpush3.bf16.msra.mxu0 %v8840_v12  ;;  %v11228_v2 = vld [vmem:[#allocation108_spill] sm:$0xff]  ;;  %vm11234_vm3 = vmmov %vm11149_vm2 }
 0x1a8   : >> { %v5022_v50 = vor.u32 %v11220_v41, %v11218_v55  ;;  %v5030_v19 = vor.u32 %v11223_v44, %v11221_v14  ;;  %v11226_v41 = vld [vmem:[#allocation20_spill] sm:$0xff]  ;;  %8235 = vmatprep.subr.bf16.mxu0 %v8826_v1  ;;  %v10345_v22 = vpack.c.bf16 %v2702_v5, %v2701_v13   ;;  %7996 = vmatpush3.bf16.msra.mxu1 %v8825_v42  ;;  %v11240_v13 = vshll.u32 %v10097_v7, 16 }
 0x1a9   : >> { %v5038_v40 = vor.u32 %v11225_v53, %v9994_v61  ;;  %7933 = vmatprep.mubr.bf16.mxu1 %v11226_v41  ;;  %v10324_v57 = vsel %vm11149_vm2, %v9880_v21, %v5014_v9  ;;  %v11229_v44 = vld [vmem:[#allocation96_spill] sm:$0xff]  ;;  %v2700_v53 = vmax.f32 %v2628_v29, 0.0  ;;  %v11236_v29 = vld [vmem:[#allocation105_spill] sm:$0xff]  ;;  %7997 = vmatprep.subr.bf16.mxu1 %v8827_v3 }
 0x1aa   : >> { %v10328_v45 = vsel %vm11227_vm4, %v11215_v0, %v5022_v50  ;;  %v11230_v6 = vshll.u32 %v11229_v44, 16  ;;  %v8828_v46 = vld [vmem:[%s9021_s19 + $0x150] sm:$0xff]   ;;  %v10336_v12 = vsel %vm11231_vm5, %v11218_v55, %v5030_v19  ;;  %v11233_v0 = vshll.u32 %v9975_v17, 16  ;;  %v11235_v50 = vld [vmem:[#allocation113_spill] sm:$0xff]  ;;  %vm11241_vm4 = vmmov %vm11149_vm2  ;;  %8174 = vmatmul.mubr.msk.bf16.gmra.mrb[68].mxu0 %vm9316_vm10, %v10169_v36 }
 0x1ab   : >> { %v10340_v21 = vsel %vm11232_vm6, %v11221_v14, %v5038_v40  ;;  %v11237_v41 = vshll.u32 %v11236_v29, 16  ;;  %v11238_v40 = vshll.u32 %v10045_v51, 16  ;;  %v10357_v19 = vpack.c.bf16 %v2700_v53, %v2699_v25   ;;  %8236 = vmatpush3.bf16.msra.mxu0 %v8826_v1  ;;  %vm11242_vm5 = vmmov %vm11149_vm2  ;;  %8177 = vmatprep.mubr.msk.bf16.mxu0 %vm9406_vm12, %v10180_v32  ;;  %v8832_v29 = vld [vmem:[%s9021_s19 + $0x160] sm:$0xff]  }
 0x1ac   : >> { %v5046_v48 = vor.u32 %v11230_v6, %v11228_v2  ;;  %v5054_v9 = vor.u32 %v11233_v0, %v10061_v59  ;;  %v5086_v5 = vor.u32 %v11240_v13, %v10124_v23  ;;  %v5108_v44 = vshll.u32 %v10141_v56, 16  ;;  %8237 = vmatprep.subr.bf16.mxu0 %v8828_v46  ;;  %vm11243_vm6 = vmmov %vm11149_vm2  ;;  %7998 = vmatpush3.bf16.msra.mxu1 %v8827_v3  ;;  %v11262_v13 = vld [vmem:[#allocation45_spill] sm:$0xff]  ;;  %v11296_v0 = vld [vmem:[#allocation54_spill] sm:$0xff] }
 0x1ad   : >> { %v5062_v55 = vor.u32 %v11237_v41, %v11235_v50  ;;  %v5070_v14 = vor.u32 %v11238_v40, %v10101_v34  ;;  %v5100_v51 = vshll.u32 %v10154_v43, 16  ;;  %v11246_v43 = vshll.u32 %v10088_v35, 16  ;;  %v8836_v41 = vld [vmem:[%s9021_s19 + $0x170] sm:$0xff]   ;;  %v11255_v40 = vld [vmem:[#allocation29_spill] sm:$0xff] }
 0x1ae   : >> { %v10349_v6 = vsel %vm11234_vm3, %v9994_v61, %v5046_v48  ;;  %v10361_v17 = vsel %vm11149_vm2, %v11228_v2, %v5054_v9  ;;  %v11239_v48 = vshll.u32 %v10024_v38, 16  ;;  %v8829_v38 = vld [vmem:[%s9021_s19 + $0x98] sm:$0xff]   ;;  %vm11244_vm3 = vmmov %vm11149_vm2  ;;  %v11249_v36 = vshll.u32 %v10112_v37, 16 }
 0x1af   : >> { %v10373_v42 = vsel %vm11241_vm4, %v10061_v59, %v5062_v55  ;;  %v10377_v25 = vsel %vm11242_vm5, %v11235_v50, %v5070_v14  ;;  %v8830_v2 = vld [vmem:[%s9021_s19 + $0x158] sm:$0xff]   ;;  %v10387_v56 = vsel %vm11244_vm3, %v10099_v49, %v5086_v5  ;;  %v11245_v59 = vld [vmem:[#allocation19_spill] sm:$0xff]  ;;  %v5094_v1 = vor.u32 %v11246_v43, %v10122_v47  ;;  %8238 = vmatpush3.bf16.msra.mxu0 %v8828_v46  ;;  %vm11250_vm4 = vmmov %vm11149_vm2 }
 0x1b0   : >> { %v5078_v61 = vor.u32 %v11239_v48, %v10099_v49  ;;  %7934 = vmatmul.mubr.bf16.gmra.mrb[68].mxu1 %v11245_v59  ;;  %v5102_v53 = vor.u32 %v5100_v51, %v10197_v8  ;;  %v11248_v49 = vld [vmem:[#allocation27_spill] sm:$0xff]  ;;  %v5601_v9 = vor.u32 %v11249_v36, %v10158_v31  ;;  %vm11251_vm5 = vmmov %vm11149_vm2  ;;  %7999 = vmatprep.subr.bf16.mxu1 %v8829_v38  ;;  %v8831_v50 = vld [vmem:[%s9021_s19 + $0xa0] sm:$0xff]   ;;  %v5620_v43 = vshrl.u32 %v10345_v22, 16 }
 0x1b1   : >> { %7937 = vmatprep.mubr.bf16.mxu1 %v11248_v49  ;;  %v10407_v35 = vsel %vm11149_vm2, %v10124_v23, %v5094_v1  ;;  %8239 = vmatprep.subr.bf16.mxu0 %v8830_v2  ;;  %v8834_v23 = vld [vmem:[%s9021_s19 + $0x168] sm:$0xff]   ;;  %v8835_v46 = vld [vmem:[%s9021_s19 + $0xb0] sm:$0xff]   ;;  %v8837_v55 = vld [vmem:[%s9021_s19 + $0xb8] sm:$0xff]  }
 0x1b2   : >> { %v10383_v7 = vsel %vm11243_vm6, %v10101_v34, %v5078_v61  ;;  %v5110_v34 = vor.u32 %v5108_v44, %v10182_v27  ;;  %v10411_v27 = vsel %vm11250_vm4, %v10122_v47, %v5102_v53  ;;  %vm11252_vm6 = vmmov %vm11149_vm2  ;;  %8000 = vmatpush3.bf16.msra.mxu1 %v8829_v38  ;;  %v8833_v47 = vld [vmem:[%s9021_s19 + $0xa8] sm:$0xff]   ;;  %8178 = vmatmul.mubr.msk.bf16.gmra.mrb[72].mxu0 %vm9316_vm10, %v10213_v58  ;;  %v8838_v58 = vld [vmem:[%s9021_s19 + $0x178] sm:$0xff]   ;;  %v5612_v44 = vshrl.u32 %v10357_v19, 16 }
 0x1b3   : >> { %v10421_v3 = vsel %vm11252_vm6, %v10136_v15, %v5601_v9  ;;  %8240 = vmatpush3.bf16.msra.mxu0 %v8830_v2  ;;  %8001 = vmatprep.subr.bf16.mxu1 %v8831_v50  ;;  %v11254_v15 = vld [vmem:[#allocation31_spill] sm:$0xff]  ;;  %v11257_v14 = vld [vmem:[#allocation34_spill] sm:$0xff]  ;;  %v11258_v48 = vld [vmem:[#allocation33_spill] sm:$0xff]  ;;  %v5615_v38 = vshll.u32 %v10357_v19, 16  ;;  %v5622_v36 = vrot.slane %v5620_v43, 7  ;;  %v5623_v9 = vshll.u32 %v10345_v22, 16 }
 0x1b4   : >> { %v10415_v32 = vsel %vm11251_vm5, %v10197_v8, %v5110_v34  ;;  %8241 = vmatprep.subr.bf16.mxu0 %v8832_v29  ;;  %v11253_v8 = vld [vmem:[#allocation26_spill] sm:$0xff]  ;;  %8181 = vmatprep.mubr.msk.bf16.mxu0 %vm9316_vm10, %v10217_v10  ;;  %v11267_v5 = vld [vmem:[#allocation60_spill] sm:$0xff]  ;;  %v11272_v59 = vld [vmem:[#allocation77_spill] sm:$0xff] }
 0x1b5   : >> { %v11270_v2 = vld [vmem:[#allocation64_spill] sm:$0xff]  ;;  %vm11273_vm3 = vmmov %vm11149_vm2  ;;  %v11300_v10 = vld [vmem:[#allocation74_spill] sm:$0xff] }
 0x1b6   : >> { %8002 = vmatpush3.bf16.msra.mxu1 %v8831_v50  ;;  %v11275_v50 = vld [vmem:[#allocation86_spill] sm:$0xff]  ;;  %vm11276_vm4 = vmmov %vm11149_vm2  ;;  %v11304_v61 = vld [vmem:[#allocation91_spill] sm:$0xff] }
 0x1b7   : >> { %8242 = vmatpush3.bf16.msra.mxu0 %v8832_v29  ;;  %8003 = vmatprep.subr.bf16.mxu1 %v8833_v47 }
 0x1b8   : >> { %7938 = vmatmul.mubr.bf16.gmra.mrb[72].mxu1 %v11253_v8  ;;  %8243 = vmatprep.subr.bf16.mxu0 %v8834_v23 }
 0x1b9   : >> { %7941 = vmatprep.mubr.bf16.mxu1 %v11254_v15 }
 0x1ba   : >> { %8004 = vmatpush3.bf16.msra.mxu1 %v8833_v47  ;;  %8182 = vmatmul.mubr.msk.bf16.gmra.mrb[76].mxu0 %vm9316_vm10, %v10221_v18  ;;  %v11259_v18 = vld [vmem:[#allocation39_spill] sm:$0xff]  ;;  %v11277_v47 = vld [vmem:[#allocation81_spill] sm:$0xff] }
 0x1bb   : >> { %8244 = vmatpush3.bf16.msra.mxu0 %v8834_v23  ;;  %8005 = vmatprep.subr.bf16.mxu1 %v8835_v46  ;;  %v11279_v23 = vld [vmem:[#allocation94_spill] sm:$0xff] }
 0x1bc   : >> { %8245 = vmatprep.subr.bf16.mxu0 %v8836_v41  ;;  %8185 = vmatprep.mubr.msk.bf16.mxu0 %vm9538_vm8, %v10228_v52  ;;  %v11260_v52 = vld [vmem:[#allocation37_spill] sm:$0xff] }
 0x1be   : >> { %8006 = vmatpush3.bf16.msra.mxu1 %v8835_v46  ;;  %v11281_v46 = vld [vmem:[#allocation102_spill] sm:$0xff] }
 0x1bf   : >> { %8246 = vmatpush3.bf16.msra.mxu0 %v8836_v41  ;;  %8007 = vmatprep.subr.bf16.mxu1 %v8837_v55  ;;  %v11287_v41 = vld [vmem:[#allocation111_spill] sm:$0xff] }
 0x1c0   : >> { %7942 = vmatmul.mubr.bf16.gmra.mrb[76].mxu1 %v11255_v40  ;;  %8247 = vmatprep.subr.bf16.mxu0 %v8838_v58 }
 0x1c1   : >> { %7945 = vmatprep.mubr.bf16.mxu1 %v11257_v14 }
 0x1c2   : >> { %8008 = vmatpush3.bf16.msra.mxu1 %v8837_v55  ;;  %8186 = vmatmul.mubr.msk.bf16.gmra.mrb[80].mxu0 %vm9316_vm10, %v10232_v30  ;;  %v11263_v30 = vld [vmem:[#allocation42_spill] sm:$0xff] }
 0x1c3   : >> { %8248 = vmatpush3.bf16.msra.mxu0 %v8838_v58  ;;  %8189 = vmatprep.mubr.msk.bf16.mxu0 %vm9316_vm10, %v10236_v4  ;;  %v11264_v4 = vld [vmem:[#allocation52_spill] sm:$0xff] }
 0x1c4   : >> { %v11292_v58 = vld [vmem:[#allocation40_spill] sm:$0xff] }
 0x1c8   : >> { %7946 = vmatmul.mubr.bf16.gmra.mrb[80].mxu1 %v11258_v48 }
 0x1c9   : >> { %7949 = vmatprep.mubr.bf16.mxu1 %v11259_v18 }
 0x1ca   : >> { %8190 = vmatmul.mubr.msk.bf16.gmra.mrb[84].mxu0 %vm9316_vm10, %v10243_v11  ;;  %v11265_v11 = vld [vmem:[#allocation49_spill] sm:$0xff] }
 0x1cb   : >> { %8193 = vmatprep.mubr.msk.bf16.mxu0 %vm9631_vm11, %v10256_v54  ;;  %v11308_v54 = vld [vmem:[#allocation107_spill] sm:$0xff] }
 0x1d0   : >> { %7950 = vmatmul.mubr.bf16.gmra.mrb[84].mxu1 %v11260_v52 }
 0x1d1   : >> { %7953 = vmatprep.mubr.bf16.mxu1 %v11262_v13 }
 0x1d2   : >> { %8194 = vmatmul.mubr.msk.bf16.gmra.mrb[88].mxu0 %vm9316_vm10, %v10269_v16  ;;  %v11268_v16 = vld [vmem:[#allocation56_spill] sm:$0xff] }
 0x1d3   : >> { %8197 = vmatprep.mubr.msk.bf16.mxu0 %vm9316_vm10, %v10273_v39  ;;  %v11269_v39 = vld [vmem:[#allocation69_spill] sm:$0xff] }
 0x1d8   : >> { %7954 = vmatmul.mubr.bf16.gmra.mrb[88].mxu1 %v11263_v30 }
 0x1d9   : >> { %7957 = vmatprep.mubr.bf16.mxu1 %v11264_v4 }
 0x1da   : >> { %8198 = vmatmul.mubr.msk.bf16.gmra.mrb[92].mxu0 %vm9316_vm10, %v10277_v26  ;;  %v5604_v26 = vshrl.u32 %v10090_v60, 16 }
 0x1db   : >> { %8201 = vmatprep.mubr.msk.bf16.mxu0 %vm9727_vm14, %v10285_v20  ;;  %v5607_v20 = vshll.u32 %v10090_v60, 16 }
 0x1dc   : >> { %v5606_v51 = vrot.slane %v5604_v26, 7  ;;  %v11312_v26 = vld [vmem:[#allocation115_spill] sm:$0xff] }
 0x1de   : >> { %v5609_v1 = vor.u32 %v5607_v20, %v5606_v51  ;;  %v11315_v20 = vld [vmem:[#allocation118_spill] sm:$0xff] }
 0x1e0   : >> { %7958 = vmatmul.mubr.bf16.gmra.mrb[92].mxu1 %v11265_v11  ;;  %v10500_v34 = vsel %vm11273_vm3, %v10158_v31, %v5609_v1  ;;  %v5625_v31 = vor.u32 %v5623_v9, %v5622_v36  ;;  %v11316_v1 = vld [vmem:[#allocation10_spill] sm:$0xff]  ;;  %v7337_v36 = vld [vmem:[%s10686_s28 + $0x8] sm:$0xff]  }
 0x1e1   : >> { %7961 = vmatprep.mubr.bf16.mxu1 %v11267_v5 }
 0x1e2   : >> { %8202 = vmatmul.mubr.msk.bf16.gmra.mrb[96].mxu0 %vm9316_vm10, %v10289_v24  ;;  %v5614_v24 = vrot.slane %v5612_v44, 7  ;;  %v11313_v44 = vld [vmem:[#allocation116_spill] sm:$0xff] }
 0x1e3   : >> { %8205 = vmatprep.mubr.msk.bf16.mxu0 %vm9316_vm10, %v10293_v62 }
 0x1e4   : >> { %v5617_v53 = vor.u32 %v5615_v38, %v5614_v24  ;;  %v10515_v29 = vsel %vm11276_vm4, %v5614_v24, %v5625_v31 }
 0x1e8   : >> { %7962 = vmatmul.mubr.bf16.gmra.mrb[96].mxu1 %v11268_v16 }
 0x1e9   : >> { %7965 = vmatprep.mubr.bf16.mxu1 %v11269_v39 }
 0x1ea   : >> { %8206 = vmatmul.mubr.msk.bf16.gmra.mrb[100].mxu0 %vm9316_vm10, %v10324_v57  ;;  %v10503_v57 = vsel %vm11149_vm2, %v5606_v51, %v5617_v53  ;;  %v11314_v51 = vld [vmem:[#allocation117_spill] sm:$0xff] }
 0x1eb   : >> { %8209 = vmatprep.mubr.msk.bf16.mxu0 %vm9819_vm13, %v10328_v45  ;;  %v11274_v45 = vld [vmem:[#allocation73_spill] sm:$0xff] }
 0x1f0   : >> { %7966 = vmatmul.mubr.bf16.gmra.mrb[100].mxu1 %v11270_v2 }
 0x1f1   : >> { %7969 = vmatprep.mubr.bf16.mxu1 %v11272_v59 }
 0x1f2   : >> { %8210 = vmatmul.mubr.msk.bf16.gmra.mrb[104].mxu0 %vm9316_vm10, %v10336_v12  ;;  %v7212_v12 = vunpack.c.h.bf16 %v7210_v63 }
 0x1f3   : >> { %8213 = vmatprep.mubr.msk.bf16.mxu0 %vm9316_vm10, %v10340_v21  ;;  %v11280_v21 = vld [vmem:[#allocation90_spill] sm:$0xff] }
 0x1f8   : >> { %7970 = vmatmul.mubr.bf16.gmra.mrb[104].mxu1 %v11274_v45 }
 0x1f9   : >> { %7973 = vmatprep.mubr.bf16.mxu1 %v11275_v50 }
 0x1fa   : >> { %8214 = vmatmul.mubr.msk.bf16.gmra.mrb[108].mxu0 %vm9316_vm10, %v10349_v6  ;;  %v11282_v6 = vld [vmem:[#allocation97_spill] sm:$0xff] }
 0x1fb   : >> { %8217 = vmatprep.mubr.msk.bf16.mxu0 %vm9910_vm0, %v10361_v17  ;;  %v11283_v17 = vld [vmem:[#allocation109_spill] sm:$0xff] }
 0x200   : >> { %7974 = vmatmul.mubr.bf16.gmra.mrb[108].mxu1 %v11277_v47 }
 0x201   : >> { %7977 = vmatprep.mubr.bf16.mxu1 %v11279_v23 }
 0x202   : >> { %8218 = vmatmul.mubr.msk.bf16.gmra.mrb[112].mxu0 %vm9316_vm10, %v10373_v42  ;;  %v11284_v42 = vld [vmem:[#allocation106_spill] sm:$0xff] }
 0x203   : >> { %8221 = vmatprep.mubr.msk.bf16.mxu0 %vm9316_vm10, %v10377_v25  ;;  %v11285_v25 = vld [vmem:[#allocation30_spill] sm:$0xff] }
 0x208   : >> { %7978 = vmatmul.mubr.bf16.gmra.mrb[112].mxu1 %v11280_v21 }
 0x209   : >> { %7981 = vmatprep.mubr.bf16.mxu1 %v11281_v46 }
 0x20a   : >> { %8222 = vmatmul.mubr.msk.bf16.gmra.mrb[116].mxu0 %vm9316_vm10, %v10383_v7 }
 0x20b   : >> { %8225 = vmatprep.mubr.msk.bf16.mxu0 %vm10032_vm1, %v10387_v56  ;;  %v5632_v56 = vsel %vm9293_vm15, 0, %v11285_v25 }
 0x210   : >> { %7982 = vmatmul.mubr.bf16.gmra.mrb[116].mxu1 %v11282_v6 }
 0x211   : >> { %7985 = vmatprep.mubr.bf16.mxu1 %v11283_v17 }
 0x212   : >> { %8226 = vmatmul.mubr.msk.bf16.gmra.mrb[120].mxu0 %vm9316_vm10, %v10407_v35  ;;  %v11289_v35 = vld [vmem:[#allocation32_spill] sm:$0xff] }
 0x213   : >> { %8229 = vmatprep.mubr.msk.bf16.mxu0 %vm9316_vm10, %v10411_v27  ;;  %v11290_v27 = vld [vmem:[#allocation35_spill] sm:$0xff] }
 0x218   : >> { %7986 = vmatmul.mubr.bf16.gmra.mrb[120].mxu1 %v11284_v42 }
 0x219   : >> { %7989 = vmatprep.mubr.bf16.mxu1 %v10057_v28 }
 0x21a   : >> { %8230 = vmatmul.mubr.msk.bf16.gmra.mrb[124].mxu0 %vm9316_vm10, %v10415_v32  ;;  %v11291_v32 = vld [vmem:[#allocation38_spill] sm:$0xff] }
 0x21b   : >> { %8249 = vmatprep.mubr.msk.bf16.mxu0 %vm9304_vm9, %v5632_v56  ;;  %v7216_v56 = vunpack.c.h.bf16 %v7337_v36 }
 0x220   : >> { %7990 = vmatmul.mubr.bf16.gmra.mrb[124].mxu1 %v11287_v41 }
 0x221   : >> { %8009 = vmatprep.mubr.bf16.mxu1 %v11248_v49  ;;  %v11293_v49 = vld [vmem:[#allocation43_spill] sm:$0xff] }
 0x222   : >> { %8250 = vmatmul.mubr.msk.bf16.vlgmr.msra.gmra.mrb[64].mxu0 %vm9316_vm10, %v11289_v35 }
 0x223   : >> { %8253 = vmatprep.mubr.msk.bf16.mxu0 %vm9316_vm10, %v11290_v27 }
 0x228   : >> { %8010 = vmatmul.mubr.bf16.vlgmr.msra.gmra.mrb[64].mxu1 %v11253_v8  ;;  %v11294_v8 = vld [vmem:[#allocation46_spill] sm:$0xff] }
 0x229   : >> { %8013 = vmatprep.mubr.bf16.mxu1 %v11254_v15  ;;  %v11295_v15 = vld [vmem:[#allocation53_spill] sm:$0xff] }
 0x22a   : >> { %8254 = vmatmul.mubr.msk.bf16.gmra.mrb[68].mxu0 %vm9316_vm10, %v11291_v32 }
 0x22b   : >> { %8257 = vmatprep.mubr.msk.bf16.mxu0 %vm9406_vm12, %v11292_v58 }
 0x230   : >> { %8014 = vmatmul.mubr.bf16.gmra.mrb[68].mxu1 %v11255_v40  ;;  %v11297_v40 = vld [vmem:[#allocation62_spill] sm:$0xff] }
 0x231   : >> { %8017 = vmatprep.mubr.bf16.mxu1 %v11257_v14  ;;  %v11298_v14 = vld [vmem:[#allocation66_spill] sm:$0xff] }
 0x232   : >> { %8258 = vmatmul.mubr.msk.bf16.gmra.mrb[72].mxu0 %vm9316_vm10, %v11293_v49 }
 0x233   : >> { %8261 = vmatprep.mubr.msk.bf16.mxu0 %vm9316_vm10, %v11294_v8 }
 0x238   : >> { %8018 = vmatmul.mubr.bf16.gmra.mrb[72].mxu1 %v11258_v48  ;;  %v11299_v48 = vld [vmem:[#allocation71_spill] sm:$0xff] }
 0x239   : >> { %8021 = vmatprep.mubr.bf16.mxu1 %v11259_v18  ;;  %v11301_v18 = vld [vmem:[#allocation79_spill] sm:$0xff] }
 0x23a   : >> { %8262 = vmatmul.mubr.msk.bf16.gmra.mrb[76].mxu0 %vm9316_vm10, %v11295_v15 }
 0x23b   : >> { %8265 = vmatprep.mubr.msk.bf16.mxu0 %vm9538_vm8, %v11296_v0 }
 0x240   : >> { %8022 = vmatmul.mubr.bf16.gmra.mrb[76].mxu1 %v11260_v52  ;;  %v11302_v52 = vld [vmem:[#allocation83_spill] sm:$0xff] }
 0x241   : >> { %8025 = vmatprep.mubr.bf16.mxu1 %v11262_v13  ;;  %v11303_v13 = vld [vmem:[#allocation88_spill] sm:$0xff] }
 0x242   : >> { %8266 = vmatmul.mubr.msk.bf16.gmra.mrb[80].mxu0 %vm9316_vm10, %v11297_v40 }
 0x243   : >> { %8269 = vmatprep.mubr.msk.bf16.mxu0 %vm9316_vm10, %v11298_v14 }
 0x248   : >> { %8026 = vmatmul.mubr.bf16.gmra.mrb[80].mxu1 %v11263_v30  ;;  %v11305_v30 = vld [vmem:[#allocation95_spill] sm:$0xff] }
 0x249   : >> { %8029 = vmatprep.mubr.bf16.mxu1 %v11264_v4  ;;  %v11306_v4 = vld [vmem:[#allocation99_spill] sm:$0xff] }
 0x24a   : >> { %8270 = vmatmul.mubr.msk.bf16.gmra.mrb[84].mxu0 %vm9316_vm10, %v11299_v48 }
 0x24b   : >> { %8273 = vmatprep.mubr.msk.bf16.mxu0 %vm9631_vm11, %v11300_v10 }
 0x250   : >> { %8030 = vmatmul.mubr.bf16.gmra.mrb[84].mxu1 %v11265_v11  ;;  %v11307_v11 = vld [vmem:[#allocation104_spill] sm:$0xff] }
 0x251   : >> { %8033 = vmatprep.mubr.bf16.mxu1 %v11267_v5  ;;  %v11309_v5 = vld [vmem:[#allocation110_spill] sm:$0xff] }
 0x252   : >> { %8274 = vmatmul.mubr.msk.bf16.gmra.mrb[88].mxu0 %vm9316_vm10, %v11301_v18  ;;  %v7339_v18 = vld [vmem:[%s10686_s28 + $0x18] sm:$0xff]  }
 0x253   : >> { %8277 = vmatprep.mubr.msk.bf16.mxu0 %vm9316_vm10, %v11302_v52 }
 0x258   : >> { %8034 = vmatmul.mubr.bf16.gmra.mrb[88].mxu1 %v11268_v16  ;;  %v11310_v16 = vld [vmem:[#allocation112_spill] sm:$0xff] }
 0x259   : >> { %8037 = vmatprep.mubr.bf16.mxu1 %v11269_v39  ;;  %v11311_v39 = vld [vmem:[#allocation114_spill] sm:$0xff] }
 0x25a   : >> { %8278 = vmatmul.mubr.msk.bf16.gmra.mrb[92].mxu0 %vm9316_vm10, %v11303_v13 }
 0x25b   : >> { %8281 = vmatprep.mubr.msk.bf16.mxu0 %vm9727_vm14, %v11304_v61 }
 0x260   : >> { %8038 = vmatmul.mubr.bf16.gmra.mrb[92].mxu1 %v11270_v2 }
 0x261   : >> { %8041 = vmatprep.mubr.bf16.mxu1 %v11272_v59 }
 0x262   : >> { %8282 = vmatmul.mubr.msk.bf16.gmra.mrb[96].mxu0 %vm9316_vm10, %v11305_v30 }
 0x263   : >> { %8285 = vmatprep.mubr.msk.bf16.mxu0 %vm9316_vm10, %v11306_v4 }
 0x268   : >> { %8042 = vmatmul.mubr.bf16.gmra.mrb[96].mxu1 %v11274_v45 }
 0x269   : >> { %8045 = vmatprep.mubr.bf16.mxu1 %v11275_v50 }
 0x26a   : >> { %8286 = vmatmul.mubr.msk.bf16.gmra.mrb[100].mxu0 %vm9316_vm10, %v11307_v11 }
 0x26b   : >> { %8289 = vmatprep.mubr.msk.bf16.mxu0 %vm9819_vm13, %v11308_v54 }
 0x270   : >> { %8046 = vmatmul.mubr.bf16.gmra.mrb[100].mxu1 %v11277_v47 }
 0x271   : >> { %8049 = vmatprep.mubr.bf16.mxu1 %v11279_v23 }
 0x272   : >> { %8290 = vmatmul.mubr.msk.bf16.gmra.mrb[104].mxu0 %vm9316_vm10, %v11309_v5 }
 0x273   : >> { %8293 = vmatprep.mubr.msk.bf16.mxu0 %vm9316_vm10, %v11310_v16  ;;  %v7223_v16 = vunpack.c.l.bf16 %v7339_v18 }
 0x278   : >> { %8050 = vmatmul.mubr.bf16.gmra.mrb[104].mxu1 %v11280_v21  ;;  %v7215_v21 = vunpack.c.l.bf16 %v7337_v36 }
 0x279   : >> { %8053 = vmatprep.mubr.bf16.mxu1 %v11281_v46 }
 0x27a   : >> { %8294 = vmatmul.mubr.msk.bf16.gmra.mrb[108].mxu0 %vm9316_vm10, %v11311_v39 }
 0x27b   : >> { %8297 = vmatprep.mubr.msk.bf16.mxu0 %vm9910_vm0, %v11312_v26 }
 0x280   : >> { %8054 = vmatmul.mubr.bf16.gmra.mrb[108].mxu1 %v11282_v6 }
 0x281   : >> { %8057 = vmatprep.mubr.bf16.mxu1 %v11283_v17 }
 0x282   : >> { %8298 = vmatmul.mubr.msk.bf16.gmra.mrb[112].mxu0 %vm9316_vm10, %v11313_v44 }
 0x283   : >> { %8301 = vmatprep.mubr.msk.bf16.mxu0 %vm9316_vm10, %v11314_v51 }
 0x288   : >> { %8058 = vmatmul.mubr.bf16.gmra.mrb[112].mxu1 %v11284_v42  ;;  %v7338_v42 = vld [vmem:[%s10686_s28 + $0x10] sm:$0xff]  }
 0x289   : >> { %8061 = vmatprep.mubr.bf16.mxu1 %v10057_v28  ;;  %v7219_v0 = vunpack.c.l.bf16 %v7338_v42  ;;  %v7220_v30 = vunpack.c.h.bf16 %v7338_v42 }
 0x28a   : >> { %8302 = vmatmul.mubr.msk.bf16.gmra.mrb[116].mxu0 %vm9316_vm10, %v11315_v20 }
 0x28b   : >> { %8305 = vmatprep.mubr.msk.bf16.mxu0 %vm10032_vm1, %v10421_v3 }
 0x290   : >> { %8062 = vmatmul.mubr.bf16.gmra.mrb[116].mxu1 %v11287_v41 }
 0x291   : >> { %8065 = vmatprep.mubr.bf16.mxu1 %v10112_v37 }
 0x292   : >> { %8306 = vmatmul.mubr.msk.bf16.gmra.mrb[120].mxu0 %vm9316_vm10, %v10500_v34 }
 0x293   : >> { %8309 = vmatprep.mubr.msk.bf16.mxu0 %vm9316_vm10, %v10503_v57 }
 0x298   : >> { %8066 = vmatmul.mubr.bf16.gmra.mrb[120].mxu1 %v10090_v60 }
 0x299   : >> { %8069 = vmatprep.mubr.bf16.mxu1 %v10357_v19 }
 0x29a   : >> { %8310 = vmatmul.mubr.msk.bf16.gmra.mrb[124].mxu0 %vm9316_vm10, %v10515_v29  ;;  %v7211_v29 = vunpack.c.l.bf16 %v7210_v63 }
 0x2a0   : >> { %8070 = vmatmul.mubr.bf16.gmra.mrb[124].mxu1 %v10345_v22 }
 0x2f5   : >> { %v8251_v33 = vpop.f32.mrb[64].mxu0 }
 0x2f6   : >> { %v5764_v3 = vpop.f32.mrb[65].mxu0 }
 0x2f7   : >> { %v8252_v2 = vpop.f32.mrb[66].mxu0 }
 0x2f8   : >> { %v5767_v43 = vpop.f32.mrb[67].mxu0 }
 0x2fb   : >> { %v8011_v28 = vpop.f32.mrb[64].mxu1 }
 0x2fc   : >> { %v8313_v24 = vadd.f32 %v8251_v33, %v8011_v28  ;;  %v3541_v38 = vpop.f32.mrb[65].mxu1  ;;  %v7340_v28 = vld [vmem:[%s10686_s28 + $0x20] sm:$0xff]  }
 0x2fd   : >> { %v8314_v62 = vadd.f32 %v5764_v3, %v3541_v38  ;;  %v8012_v59 = vpop.f32.mrb[66].mxu1  ;;  %v8255_v46 = vpop.f32.mrb[68].mxu0 }
 0x2fe   : >> { %v6091_v53 = vadd.f32 %v8313_v24, %v11316_v1  ;;  %v8315_v34 = vadd.f32 %v8252_v2, %v8012_v59  ;;  %v3544_v57 = vpop.f32.mrb[67].mxu1  ;;  %v5780_v25 = vpop.f32.mrb[69].mxu0  ;;  %v7224_v24 = vunpack.c.h.bf16 %v7339_v18 }
 0x2ff   : >> { %v6089_v9 = vadd.f32 %v8314_v62, %v11316_v1  ;;  %v8316_v45 = vadd.f32 %v5767_v43, %v3544_v57  ;;  %v8256_v27 = vpop.f32.mrb[70].mxu0 }
 0x300   : >> { %v6092_v50 = vadd.f32 %v8315_v34, %v11316_v1  ;;  %v6155_v23 = vmax.f32 %v6091_v53, 0.0  ;;  %v5783_v15 = vpop.f32.mrb[71].mxu0 }
 0x301   : >> { %v6153_v31 = vmax.f32 %v6089_v9, 0.0  ;;  %v6090_v47 = vadd.f32 %v8316_v45, %v11316_v1  ;;  %v7227_v9 = vunpack.c.l.bf16 %v7340_v28 }
 0x302   : >> { %v6156_v7 = vmax.f32 %v6092_v50, 0.0  ;;  %v6349_v8 = vmul.f32 %v7215_v21, %v6155_v23 }
 0x303   : >> { %v6154_v6 = vmax.f32 %v6090_v47, 0.0  ;;  %v8015_v17 = vpop.f32.mrb[68].mxu1  ;;  %v6347_v35 = vmul.f32 %v7211_v29, %v6153_v31  ;;  %v7341_v47 = vld [vmem:[%s10686_s28 + $0x28] sm:$0xff]  }
 0x304   : >> { %v8317_v41 = vadd.f32 %v8255_v46, %v8015_v17  ;;  %v3557_v55 = vpop.f32.mrb[69].mxu1  ;;  %v6350_v61 = vmul.f32 %v7216_v56, %v6156_v7  ;;  %v7228_v46 = vunpack.c.h.bf16 %v7340_v28  ;;  %v7231_v56 = vunpack.c.l.bf16 %v7341_v47 }
 0x305   : >> { %v6348_v32 = vmul.f32 %v7212_v12, %v6154_v6  ;;  %v8318_v58 = vadd.f32 %v5780_v25, %v3557_v55  ;;  %v8016_v49 = vpop.f32.mrb[70].mxu1  ;;  %v8259_v39 = vpop.f32.mrb[72].mxu0 }
 0x306   : >> { %v8319_v40 = vadd.f32 %v8256_v27, %v8016_v49  ;;  %v3560_v14 = vpop.f32.mrb[71].mxu1  ;;  %v6095_v10 = vadd.f32 %v8317_v41, %v11316_v1  ;;  %v5796_v3 = vpop.f32.mrb[73].mxu0 }
 0x307   : >> { %v6411_v48 = vadd.f32 %v6348_v32, %v6347_v35  ;;  %v6093_v52 = vadd.f32 %v8318_v58, %v11316_v1  ;;  %v8320_v13 = vadd.f32 %v5783_v15, %v3560_v14  ;;  %v8260_v59 = vpop.f32.mrb[74].mxu0  ;;  %v7342_v58 = vld [vmem:[%s10686_s28 + $0x30] sm:$0xff]   ;;  %v7232_v15 = vunpack.c.h.bf16 %v7341_v47 }
 0x308   : >> { %v6096_v54 = vadd.f32 %v8319_v40, %v11316_v1  ;;  %v6159_v26 = vmax.f32 %v6095_v10, 0.0  ;;  %v5799_v57 = vpop.f32.mrb[75].mxu0 }
 0x309   : >> { %v6412_v4 = vadd.f32 %v6411_v48, %v6349_v8  ;;  %v6157_v11 = vmax.f32 %v6093_v52, 0.0  ;;  %v6094_v5 = vadd.f32 %v8320_v13, %v11316_v1 }
 0x30a   : >> { %v6160_v43 = vmax.f32 %v6096_v54, 0.0  ;;  %v6353_v31 = vmul.f32 %v7223_v16, %v6159_v26  ;;  %v7343_v16 = vld [vmem:[%s10686_s28 + $0x38] sm:$0xff]  }
 0x30b   : >> { %v6351_v44 = vmul.f32 %v7219_v0, %v6157_v11  ;;  %v6413_v51 = vadd.f32 %v6412_v4, %v6350_v61  ;;  %v6158_v20 = vmax.f32 %v6094_v5, 0.0  ;;  %v8019_v33 = vpop.f32.mrb[72].mxu1 }
 0x30c   : >> { %v8321_v38 = vadd.f32 %v8259_v39, %v8019_v33  ;;  %v3573_v2 = vpop.f32.mrb[73].mxu1  ;;  %v6354_v6 = vmul.f32 %v7224_v24, %v6160_v43  ;;  %v7239_v24 = vunpack.c.l.bf16 %v7343_v16 }
 0x30d   : >> { %v6414_v62 = vadd.f32 %v6413_v51, %v6351_v44  ;;  %v6352_v53 = vmul.f32 %v7220_v30, %v6158_v20  ;;  %v8322_v63 = vadd.f32 %v5796_v3, %v3573_v2  ;;  %v8020_v34 = vpop.f32.mrb[74].mxu1  ;;  %v8263_v41 = vpop.f32.mrb[76].mxu0  ;;  %v7235_v30 = vunpack.c.l.bf16 %v7342_v58 }
 0x30e   : >> { %v6099_v36 = vadd.f32 %v8321_v38, %v11316_v1  ;;  %v8323_v45 = vadd.f32 %v8260_v59, %v8020_v34  ;;  %v3576_v50 = vpop.f32.mrb[75].mxu1  ;;  %v5812_v49 = vpop.f32.mrb[77].mxu0  ;;  %v7236_v51 = vunpack.c.h.bf16 %v7342_v58 }
 0x30f   : >> { %v6415_v29 = vadd.f32 %v6414_v62, %v6352_v53  ;;  %v6097_v12 = vadd.f32 %v8322_v63, %v11316_v1  ;;  %v8324_v23 = vadd.f32 %v5799_v57, %v3576_v50  ;;  %v8264_v48 = vpop.f32.mrb[78].mxu0  ;;  %v7344_v63 = vld [vmem:[%s10686_s28 + $0x40] sm:$0xff]   ;;  %v7240_v57 = vunpack.c.h.bf16 %v7343_v16 }
 0x310   : >> { %v6100_v21 = vadd.f32 %v8323_v45, %v11316_v1  ;;  %v6163_v7 = vmax.f32 %v6099_v36, 0.0  ;;  %v5815_v61 = vpop.f32.mrb[79].mxu0 }
 0x311   : >> { %v6416_v17 = vadd.f32 %v6415_v29, %v6353_v31  ;;  %v6161_v42 = vmax.f32 %v6097_v12, 0.0  ;;  %v6098_v25 = vadd.f32 %v8324_v23, %v11316_v1 }
 0x312   : >> { %v6164_v8 = vmax.f32 %v6100_v21, 0.0  ;;  %v6357_v13 = vmul.f32 %v7231_v56, %v6163_v7  ;;  %v7345_v7 = vld [vmem:[%s10686_s28 + $0x48] sm:$0xff]  }
 0x313   : >> { %v6355_v55 = vmul.f32 %v7227_v9, %v6161_v42  ;;  %v6417_v35 = vadd.f32 %v6416_v17, %v6354_v6  ;;  %v6162_v27 = vmax.f32 %v6098_v25, 0.0  ;;  %v8023_v32 = vpop.f32.mrb[76].mxu1 }
 0x314   : >> { %v8325_v0 = vadd.f32 %v8263_v41, %v8023_v32  ;;  %v3589_v40 = vpop.f32.mrb[77].mxu1  ;;  %v6358_v44 = vmul.f32 %v7232_v15, %v6164_v8  ;;  %v7247_v15 = vunpack.c.l.bf16 %v7345_v7 }
 0x315   : >> { %v6418_v14 = vadd.f32 %v6417_v35, %v6355_v55  ;;  %v6356_v10 = vmul.f32 %v7228_v46, %v6162_v27  ;;  %v8326_v18 = vadd.f32 %v5812_v49, %v3589_v40  ;;  %v8024_v52 = vpop.f32.mrb[78].mxu1  ;;  %v8267_v38 = vpop.f32.mrb[80].mxu0  ;;  %v7243_v46 = vunpack.c.l.bf16 %v7344_v63 }
 0x316   : >> { %v8327_v4 = vadd.f32 %v8264_v48, %v8024_v52  ;;  %v3592_v11 = vpop.f32.mrb[79].mxu1  ;;  %v6103_v5 = vadd.f32 %v8325_v0, %v11316_v1  ;;  %v5828_v34 = vpop.f32.mrb[81].mxu0  ;;  %v7244_v35 = vunpack.c.h.bf16 %v7344_v63 }
 0x317   : >> { %v6419_v54 = vadd.f32 %v6418_v14, %v6356_v10  ;;  %v6101_v39 = vadd.f32 %v8326_v18, %v11316_v1  ;;  %v8328_v26 = vadd.f32 %v5815_v61, %v3592_v11  ;;  %v8268_v50 = vpop.f32.mrb[82].mxu0  ;;  %v7346_v18 = vld [vmem:[%s10686_s28 + $0x50] sm:$0xff]   ;;  %v7248_v61 = vunpack.c.h.bf16 %v7345_v7 }
 0x318   : >> { %v6104_v28 = vadd.f32 %v8327_v4, %v11316_v1  ;;  %v6167_v2 = vmax.f32 %v6103_v5, 0.0  ;;  %v5831_v23 = vpop.f32.mrb[83].mxu0 }
 0x319   : >> { %v6420_v20 = vadd.f32 %v6419_v54, %v6357_v13  ;;  %v6165_v33 = vmax.f32 %v6101_v39, 0.0  ;;  %v6102_v3 = vadd.f32 %v8328_v26, %v11316_v1 }
 0x31a   : >> { %v6168_v31 = vmax.f32 %v6104_v28, 0.0  ;;  %v6361_v42 = vmul.f32 %v7239_v24, %v6167_v2  ;;  %v7347_v24 = vld [vmem:[%s10686_s28 + $0x58] sm:$0xff]  }
 0x31b   : >> { %v6359_v62 = vmul.f32 %v7235_v30, %v6165_v33  ;;  %v6421_v59 = vadd.f32 %v6420_v20, %v6358_v44  ;;  %v6166_v43 = vmax.f32 %v6102_v3, 0.0  ;;  %v8027_v53 = vpop.f32.mrb[80].mxu1 }
 0x31c   : >> { %v8329_v36 = vadd.f32 %v8267_v38, %v8027_v53  ;;  %v3605_v9 = vpop.f32.mrb[81].mxu1  ;;  %v6362_v27 = vmul.f32 %v7240_v57, %v6168_v31  ;;  %v7255_v57 = vunpack.c.l.bf16 %v7347_v24 }
 0x31d   : >> { %v6422_v45 = vadd.f32 %v6421_v59, %v6359_v62  ;;  %v6360_v29 = vmul.f32 %v7236_v51, %v6166_v43  ;;  %v8330_v47 = vadd.f32 %v5828_v34, %v3605_v9  ;;  %v8028_v12 = vpop.f32.mrb[82].mxu1  ;;  %v8271_v0 = vpop.f32.mrb[84].mxu0  ;;  %v7251_v51 = vunpack.c.l.bf16 %v7346_v18 }
 0x31e   : >> { %v6107_v21 = vadd.f32 %v8329_v36, %v11316_v1  ;;  %v8331_v6 = vadd.f32 %v8268_v50, %v8028_v12  ;;  %v3608_v17 = vpop.f32.mrb[83].mxu1  ;;  %v5844_v52 = vpop.f32.mrb[85].mxu0  ;;  %v7252_v59 = vunpack.c.h.bf16 %v7346_v18 }
 0x31f   : >> { %v6423_v25 = vadd.f32 %v6422_v45, %v6360_v29  ;;  %v6105_v56 = vadd.f32 %v8330_v47, %v11316_v1  ;;  %v8332_v41 = vadd.f32 %v5831_v23, %v3608_v17  ;;  %v8272_v54 = vpop.f32.mrb[86].mxu0  ;;  %v7348_v47 = vld [vmem:[%s10686_s28 + $0x60] sm:$0xff]   ;;  %v7256_v23 = vunpack.c.h.bf16 %v7347_v24 }
 0x320   : >> { %v6108_v55 = vadd.f32 %v8331_v6, %v11316_v1  ;;  %v6171_v8 = vmax.f32 %v6107_v21, 0.0  ;;  %v5847_v44 = vpop.f32.mrb[87].mxu0 }
 0x321   : >> { %v6424_v32 = vadd.f32 %v6423_v25, %v6361_v42  ;;  %v6169_v58 = vmax.f32 %v6105_v56, 0.0  ;;  %v6106_v49 = vadd.f32 %v8332_v41, %v11316_v1 }
 0x322   : >> { %v6172_v13 = vmax.f32 %v6108_v55, 0.0  ;;  %v6365_v26 = vmul.f32 %v7247_v15, %v6171_v8  ;;  %v7349_v8 = vld [vmem:[%s10686_s28 + $0x68] sm:$0xff]  }
 0x323   : >> { %v6363_v40 = vmul.f32 %v7243_v46, %v6169_v58  ;;  %v6425_v14 = vadd.f32 %v6424_v32, %v6362_v27  ;;  %v6170_v48 = vmax.f32 %v6106_v49, 0.0  ;;  %v8031_v10 = vpop.f32.mrb[84].mxu1 }
 0x324   : >> { %v8333_v30 = vadd.f32 %v8271_v0, %v8031_v10  ;;  %v3621_v4 = vpop.f32.mrb[85].mxu1  ;;  %v6366_v62 = vmul.f32 %v7248_v61, %v6172_v13  ;;  %v7263_v61 = vunpack.c.l.bf16 %v7349_v8 }
 0x325   : >> { %v6426_v11 = vadd.f32 %v6425_v14, %v6363_v40  ;;  %v6364_v5 = vmul.f32 %v7244_v35, %v6170_v48  ;;  %v8334_v16 = vadd.f32 %v5844_v52, %v3621_v4  ;;  %v8032_v39 = vpop.f32.mrb[86].mxu1  ;;  %v8275_v36 = vpop.f32.mrb[88].mxu0  ;;  %v7259_v35 = vunpack.c.l.bf16 %v7348_v47 }
 0x326   : >> { %v8335_v20 = vadd.f32 %v8272_v54, %v8032_v39  ;;  %v3624_v33 = vpop.f32.mrb[87].mxu1  ;;  %v6111_v3 = vadd.f32 %v8333_v30, %v11316_v1  ;;  %v5860_v12 = vpop.f32.mrb[89].mxu0  ;;  %v7260_v14 = vunpack.c.h.bf16 %v7348_v47 }
 0x327   : >> { %v6427_v28 = vadd.f32 %v6426_v11, %v6364_v5  ;;  %v6109_v38 = vadd.f32 %v8334_v16, %v11316_v1  ;;  %v8336_v2 = vadd.f32 %v5847_v44, %v3624_v33  ;;  %v8276_v17 = vpop.f32.mrb[90].mxu0  ;;  %v7350_v16 = vld [vmem:[%s10686_s28 + $0x70] sm:$0xff]   ;;  %v7264_v44 = vunpack.c.h.bf16 %v7349_v8 }
 0x328   : >> { %v6112_v63 = vadd.f32 %v8335_v20, %v11316_v1  ;;  %v6175_v9 = vmax.f32 %v6111_v3, 0.0  ;;  %v5863_v41 = vpop.f32.mrb[91].mxu0 }
 0x329   : >> { %v6428_v43 = vadd.f32 %v6427_v28, %v6365_v26  ;;  %v6173_v53 = vmax.f32 %v6109_v38, 0.0  ;;  %v6110_v34 = vadd.f32 %v8336_v2, %v11316_v1 }
 0x32a   : >> { %v6176_v42 = vmax.f32 %v6112_v63, 0.0  ;;  %v6369_v58 = vmul.f32 %v7255_v57, %v6175_v9  ;;  %v7351_v57 = vld [vmem:[%s10686_s28 + $0x78] sm:$0xff]  }
 0x32b   : >> { %v6367_v45 = vmul.f32 %v7251_v51, %v6173_v53  ;;  %v6429_v50 = vadd.f32 %v6428_v43, %v6366_v62  ;;  %v6174_v31 = vmax.f32 %v6110_v34, 0.0  ;;  %v8035_v29 = vpop.f32.mrb[88].mxu1 }
 0x32c   : >> { %v8337_v21 = vadd.f32 %v8275_v36, %v8035_v29  ;;  %v3637_v46 = vpop.f32.mrb[89].mxu1  ;;  %v6370_v48 = vmul.f32 %v7256_v23, %v6176_v42  ;;  %v7271_v23 = vunpack.c.l.bf16 %v7351_v57 }
 0x32d   : >> { %v6430_v6 = vadd.f32 %v6429_v50, %v6367_v45  ;;  %v6368_v25 = vmul.f32 %v7252_v59, %v6174_v31  ;;  %v8338_v7 = vadd.f32 %v5860_v12, %v3637_v46  ;;  %v8036_v56 = vpop.f32.mrb[90].mxu1  ;;  %v8279_v30 = vpop.f32.mrb[92].mxu0  ;;  %v7267_v59 = vunpack.c.l.bf16 %v7350_v16 }
 0x32e   : >> { %v6115_v55 = vadd.f32 %v8337_v21, %v11316_v1  ;;  %v8339_v27 = vadd.f32 %v8276_v17, %v8036_v56  ;;  %v3640_v32 = vpop.f32.mrb[91].mxu1  ;;  %v5876_v39 = vpop.f32.mrb[93].mxu0  ;;  %v7268_v50 = vunpack.c.h.bf16 %v7350_v16 }
 0x32f   : >> { %v6431_v49 = vadd.f32 %v6430_v6, %v6368_v25  ;;  %v6113_v15 = vadd.f32 %v8338_v7, %v11316_v1  ;;  %v8340_v0 = vadd.f32 %v5863_v41, %v3640_v32  ;;  %v8280_v28 = vpop.f32.mrb[94].mxu0  ;;  %v7352_v7 = vld [vmem:[%s10686_s28 + $0x80] sm:$0xff]   ;;  %v7272_v41 = vunpack.c.h.bf16 %v7351_v57 }
 0x330   : >> { %v6116_v40 = vadd.f32 %v8339_v27, %v11316_v1  ;;  %v6179_v13 = vmax.f32 %v6115_v55, 0.0  ;;  %v5879_v62 = vpop.f32.mrb[95].mxu0 }
 0x331   : >> { %v6432_v10 = vadd.f32 %v6431_v49, %v6369_v58  ;;  %v6177_v18 = vmax.f32 %v6113_v15, 0.0  ;;  %v6114_v52 = vadd.f32 %v8340_v0, %v11316_v1 }
 0x332   : >> { %v6180_v26 = vmax.f32 %v6116_v40, 0.0  ;;  %v6373_v2 = vmul.f32 %v7263_v61, %v6179_v13  ;;  %v7353_v13 = vld [vmem:[%s10686_s28 + $0x88] sm:$0xff]  }
 0x333   : >> { %v6371_v4 = vmul.f32 %v7259_v35, %v6177_v18  ;;  %v6433_v11 = vadd.f32 %v6432_v10, %v6370_v48  ;;  %v6178_v54 = vmax.f32 %v6114_v52, 0.0  ;;  %v8039_v5 = vpop.f32.mrb[92].mxu1 }
 0x334   : >> { %v8341_v51 = vadd.f32 %v8279_v30, %v8039_v5  ;;  %v3653_v20 = vpop.f32.mrb[93].mxu1  ;;  %v6374_v45 = vmul.f32 %v7264_v44, %v6180_v26  ;;  %v7279_v44 = vunpack.c.l.bf16 %v7353_v13 }
 0x335   : >> { %v6434_v33 = vadd.f32 %v6433_v11, %v6371_v4  ;;  %v6372_v3 = vmul.f32 %v7260_v14, %v6178_v54  ;;  %v8342_v24 = vadd.f32 %v5876_v39, %v3653_v20  ;;  %v8040_v38 = vpop.f32.mrb[94].mxu1  ;;  %v8283_v21 = vpop.f32.mrb[96].mxu0  ;;  %v7275_v14 = vunpack.c.l.bf16 %v7352_v7 }
 0x336   : >> { %v8343_v43 = vadd.f32 %v8280_v28, %v8040_v38  ;;  %v3656_v53 = vpop.f32.mrb[95].mxu1  ;;  %v6119_v34 = vadd.f32 %v8341_v51, %v11316_v1  ;;  %v5892_v56 = vpop.f32.mrb[97].mxu0  ;;  %v7276_v11 = vunpack.c.h.bf16 %v7352_v7 }
 0x337   : >> { %v6435_v63 = vadd.f32 %v6434_v33, %v6372_v3  ;;  %v6117_v36 = vadd.f32 %v8342_v24, %v11316_v1  ;;  %v8344_v9 = vadd.f32 %v5879_v62, %v3656_v53  ;;  %v8284_v32 = vpop.f32.mrb[98].mxu0  ;;  %v7354_v24 = vld [vmem:[%s10686_s28 + $0x90] sm:$0xff]   ;;  %v7280_v62 = vunpack.c.h.bf16 %v7353_v13 }
 0x338   : >> { %v6120_v47 = vadd.f32 %v8343_v43, %v11316_v1  ;;  %v6183_v46 = vmax.f32 %v6119_v34, 0.0  ;;  %v5895_v0 = vpop.f32.mrb[99].mxu0 }
 0x339   : >> { %v6436_v31 = vadd.f32 %v6435_v63, %v6373_v2  ;;  %v6181_v29 = vmax.f32 %v6117_v36, 0.0  ;;  %v6118_v12 = vadd.f32 %v8344_v9, %v11316_v1 }
 0x33a   : >> { %v6184_v58 = vmax.f32 %v6120_v47, 0.0  ;;  %v6377_v18 = vmul.f32 %v7271_v23, %v6183_v46  ;;  %v7355_v23 = vld [vmem:[%s10686_s28 + $0x98] sm:$0xff]  }
 0x33b   : >> { %v6375_v6 = vmul.f32 %v7267_v59, %v6181_v29  ;;  %v6437_v17 = vadd.f32 %v6436_v31, %v6374_v45  ;;  %v6182_v42 = vmax.f32 %v6118_v12, 0.0  ;;  %v8043_v25 = vpop.f32.mrb[96].mxu1 }
 0x33c   : >> { %v8345_v55 = vadd.f32 %v8283_v21, %v8043_v25  ;;  %v3669_v35 = vpop.f32.mrb[97].mxu1  ;;  %v6378_v54 = vmul.f32 %v7272_v41, %v6184_v58  ;;  %v7287_v41 = vunpack.c.l.bf16 %v7355_v23 }
 0x33d   : >> { %v6438_v27 = vadd.f32 %v6437_v17, %v6375_v6  ;;  %v6376_v49 = vmul.f32 %v7268_v50, %v6182_v42  ;;  %v8346_v8 = vadd.f32 %v5892_v56, %v3669_v35  ;;  %v8044_v15 = vpop.f32.mrb[98].mxu1  ;;  %v8287_v51 = vpop.f32.mrb[100].mxu0  ;;  %v7283_v50 = vunpack.c.l.bf16 %v7354_v24 }
 0x33e   : >> { %v6123_v40 = vadd.f32 %v8345_v55, %v11316_v1  ;;  %v8347_v48 = vadd.f32 %v8284_v32, %v8044_v15  ;;  %v3672_v10 = vpop.f32.mrb[99].mxu1  ;;  %v5908_v38 = vpop.f32.mrb[101].mxu0  ;;  %v7284_v17 = vunpack.c.h.bf16 %v7354_v24 }
 0x33f   : >> { %v6439_v52 = vadd.f32 %v6438_v27, %v6376_v49  ;;  %v6121_v61 = vadd.f32 %v8346_v8, %v11316_v1  ;;  %v8348_v30 = vadd.f32 %v5895_v0, %v3672_v10  ;;  %v8288_v63 = vpop.f32.mrb[102].mxu0  ;;  %v7356_v8 = vld [vmem:[%s10686_s28 + $0xa0] sm:$0xff]   ;;  %v7288_v0 = vunpack.c.h.bf16 %v7355_v23 }
 0x340   : >> { %v6124_v4 = vadd.f32 %v8347_v48, %v11316_v1  ;;  %v6187_v26 = vmax.f32 %v6123_v40, 0.0  ;;  %v5911_v45 = vpop.f32.mrb[103].mxu0 }
 0x341   : >> { %v6440_v5 = vadd.f32 %v6439_v52, %v6377_v18  ;;  %v6185_v16 = vmax.f32 %v6121_v61, 0.0  ;;  %v6122_v39 = vadd.f32 %v8348_v30, %v11316_v1 }
 0x342   : >> { %v6188_v2 = vmax.f32 %v6124_v4, 0.0  ;;  %v6381_v9 = vmul.f32 %v7279_v44, %v6187_v26  ;;  %v7357_v26 = vld [vmem:[%s10686_s28 + $0xa8] sm:$0xff]  }
 0x343   : >> { %v6379_v20 = vmul.f32 %v7275_v14, %v6185_v16  ;;  %v6441_v33 = vadd.f32 %v6440_v5, %v6378_v54  ;;  %v6186_v28 = vmax.f32 %v6122_v39, 0.0  ;;  %v8047_v3 = vpop.f32.mrb[100].mxu1 }
 0x344   : >> { %v8349_v59 = vadd.f32 %v8287_v51, %v8047_v3  ;;  %v3685_v43 = vpop.f32.mrb[101].mxu1  ;;  %v6382_v6 = vmul.f32 %v7280_v62, %v6188_v2  ;;  %v7295_v62 = vunpack.c.l.bf16 %v7357_v26 }
 0x345   : >> { %v6442_v53 = vadd.f32 %v6441_v33, %v6379_v20  ;;  %v6380_v34 = vmul.f32 %v7276_v11, %v6186_v28  ;;  %v8350_v57 = vadd.f32 %v5908_v38, %v3685_v43  ;;  %v8048_v36 = vpop.f32.mrb[102].mxu1  ;;  %v8291_v55 = vpop.f32.mrb[104].mxu0  ;;  %v7291_v11 = vunpack.c.l.bf16 %v7356_v8 }
 0x346   : >> { %v8351_v31 = vadd.f32 %v8288_v63, %v8048_v36  ;;  %v3688_v29 = vpop.f32.mrb[103].mxu1  ;;  %v6127_v12 = vadd.f32 %v8349_v59, %v11316_v1  ;;  %v5924_v15 = vpop.f32.mrb[105].mxu0  ;;  %v7292_v33 = vunpack.c.h.bf16 %v7356_v8 }
 0x347   : >> { %v6443_v47 = vadd.f32 %v6442_v53, %v6380_v34  ;;  %v6125_v21 = vadd.f32 %v8350_v57, %v11316_v1  ;;  %v8352_v46 = vadd.f32 %v5911_v45, %v3688_v29  ;;  %v8292_v10 = vpop.f32.mrb[106].mxu0  ;;  %v7358_v57 = vld [vmem:[%s10686_s28 + $0xb0] sm:$0xff]   ;;  %v7296_v45 = vunpack.c.h.bf16 %v7357_v26 }
 0x348   : >> { %v6128_v7 = vadd.f32 %v8351_v31, %v11316_v1  ;;  %v6191_v35 = vmax.f32 %v6127_v12, 0.0  ;;  %v5927_v30 = vpop.f32.mrb[107].mxu0 }
 0x349   : >> { %v6444_v42 = vadd.f32 %v6443_v47, %v6381_v9  ;;  %v6189_v25 = vmax.f32 %v6125_v21, 0.0  ;;  %v6126_v56 = vadd.f32 %v8352_v46, %v11316_v1 }
 0x34a   : >> { %v6192_v18 = vmax.f32 %v6128_v7, 0.0  ;;  %v6385_v16 = vmul.f32 %v7287_v41, %v6191_v35  ;;  %v7359_v41 = vld [vmem:[%s10686_s28 + $0xb8] sm:$0xff]  }
 0x34b   : >> { %v6383_v27 = vmul.f32 %v7283_v50, %v6189_v25  ;;  %v6445_v32 = vadd.f32 %v6444_v42, %v6382_v6  ;;  %v6190_v58 = vmax.f32 %v6126_v56, 0.0  ;;  %v8051_v49 = vpop.f32.mrb[104].mxu1 }
 0x34c   : >> { %v8353_v40 = vadd.f32 %v8291_v55, %v8051_v49  ;;  %v3701_v14 = vpop.f32.mrb[105].mxu1  ;;  %v6386_v28 = vmul.f32 %v7288_v0, %v6192_v18  ;;  %v7303_v0 = vunpack.c.l.bf16 %v7359_v41 }
 0x34d   : >> { %v6446_v48 = vadd.f32 %v6445_v32, %v6383_v27  ;;  %v6384_v52 = vmul.f32 %v7284_v17, %v6190_v58  ;;  %v8354_v13 = vadd.f32 %v5924_v15, %v3701_v14  ;;  %v8052_v61 = vpop.f32.mrb[106].mxu1  ;;  %v8295_v59 = vpop.f32.mrb[108].mxu0  ;;  %v7299_v17 = vunpack.c.l.bf16 %v7358_v57 }
 0x34e   : >> { %v6131_v4 = vadd.f32 %v8353_v40, %v11316_v1  ;;  %v8355_v54 = vadd.f32 %v8292_v10, %v8052_v61  ;;  %v3704_v5 = vpop.f32.mrb[107].mxu1  ;;  %v5940_v36 = vpop.f32.mrb[109].mxu0  ;;  %v7300_v32 = vunpack.c.h.bf16 %v7358_v57 }
 0x34f   : >> { %v6447_v39 = vadd.f32 %v6446_v48, %v6384_v52  ;;  %v6129_v44 = vadd.f32 %v8354_v13, %v11316_v1  ;;  %v8356_v51 = vadd.f32 %v5927_v30, %v3704_v5  ;;  %v8296_v47 = vpop.f32.mrb[110].mxu0  ;;  %v7360_v13 = vld [vmem:[%s10686_s28 + $0xc0] sm:$0xff]   ;;  %v7304_v30 = vunpack.c.h.bf16 %v7359_v41 }
 0x350   : >> { %v6132_v20 = vadd.f32 %v8355_v54, %v11316_v1  ;;  %v6195_v2 = vmax.f32 %v6131_v4, 0.0  ;;  %v5943_v6 = vpop.f32.mrb[111].mxu0 }
 0x351   : >> { %v6448_v3 = vadd.f32 %v6447_v39, %v6385_v16  ;;  %v6193_v24 = vmax.f32 %v6129_v44, 0.0  ;;  %v6130_v38 = vadd.f32 %v8356_v51, %v11316_v1 }
 0x352   : >> { %v6196_v9 = vmax.f32 %v6132_v20, 0.0  ;;  %v6389_v46 = vmul.f32 %v7295_v62, %v6195_v2  ;;  %v7361_v2 = vld [vmem:[%s10686_s28 + $0xc8] sm:$0xff]  }
 0x353   : >> { %v6387_v43 = vmul.f32 %v7291_v11, %v6193_v24  ;;  %v6449_v53 = vadd.f32 %v6448_v3, %v6386_v28  ;;  %v6194_v63 = vmax.f32 %v6130_v38, 0.0  ;;  %v8055_v34 = vpop.f32.mrb[108].mxu1 }
 0x354   : >> { %v8357_v50 = vadd.f32 %v8295_v59, %v8055_v34  ;;  %v3717_v31 = vpop.f32.mrb[109].mxu1  ;;  %v6390_v27 = vmul.f32 %v7296_v45, %v6196_v9  ;;  %v7311_v45 = vunpack.c.l.bf16 %v7361_v2 }
 0x355   : >> { %v6450_v29 = vadd.f32 %v6449_v53, %v6387_v43  ;;  %v6388_v12 = vmul.f32 %v7292_v33, %v6194_v63  ;;  %v8358_v23 = vadd.f32 %v5940_v36, %v3717_v31  ;;  %v8056_v21 = vpop.f32.mrb[110].mxu1  ;;  %v8299_v40 = vpop.f32.mrb[112].mxu0  ;;  %v7307_v33 = vunpack.c.l.bf16 %v7360_v13 }
 0x356   : >> { %v8359_v42 = vadd.f32 %v8296_v47, %v8056_v21  ;;  %v3720_v25 = vpop.f32.mrb[111].mxu1  ;;  %v6135_v56 = vadd.f32 %v8357_v50, %v11316_v1  ;;  %v5956_v61 = vpop.f32.mrb[113].mxu0  ;;  %v7308_v53 = vunpack.c.h.bf16 %v7360_v13 }
 0x357   : >> { %v6451_v7 = vadd.f32 %v6450_v29, %v6388_v12  ;;  %v6133_v55 = vadd.f32 %v8358_v23, %v11316_v1  ;;  %v8360_v35 = vadd.f32 %v5943_v6, %v3720_v25  ;;  %v8300_v5 = vpop.f32.mrb[114].mxu0  ;;  %v7362_v23 = vld [vmem:[%s10686_s28 + $0xd0] sm:$0xff]   ;;  %v7312_v6 = vunpack.c.h.bf16 %v7361_v2 }
 0x358   : >> { %v6136_v8 = vadd.f32 %v8359_v42, %v11316_v1  ;;  %v6199_v14 = vmax.f32 %v6135_v56, 0.0  ;;  %v5959_v51 = vpop.f32.mrb[115].mxu0 }
 0x359   : >> { %v6452_v58 = vadd.f32 %v6451_v7, %v6389_v46  ;;  %v6197_v49 = vmax.f32 %v6133_v55, 0.0  ;;  %v6134_v15 = vadd.f32 %v8360_v35, %v11316_v1 }
 0x35a   : >> { %v6200_v16 = vmax.f32 %v6136_v8, 0.0  ;;  %v6393_v24 = vmul.f32 %v7303_v0, %v6199_v14  ;;  %v7363_v0 = vld [vmem:[%s10686_s28 + $0xd8] sm:$0xff]  }
 0x35b   : >> { %v6391_v48 = vmul.f32 %v7299_v17, %v6197_v49  ;;  %v6453_v10 = vadd.f32 %v6452_v58, %v6390_v27  ;;  %v6198_v18 = vmax.f32 %v6134_v15, 0.0  ;;  %v8059_v52 = vpop.f32.mrb[112].mxu1 }
 0x35c   : >> { %v8361_v4 = vadd.f32 %v8299_v40, %v8059_v52  ;;  %v3733_v11 = vpop.f32.mrb[113].mxu1  ;;  %v6394_v63 = vmul.f32 %v7304_v30, %v6200_v16  ;;  %v7319_v30 = vunpack.c.l.bf16 %v7363_v0 }
 0x35d   : >> { %v6454_v54 = vadd.f32 %v6453_v10, %v6391_v48  ;;  %v6392_v39 = vmul.f32 %v7300_v32, %v6198_v18  ;;  %v8362_v26 = vadd.f32 %v5956_v61, %v3733_v11  ;;  %v8060_v44 = vpop.f32.mrb[114].mxu1  ;;  %v8303_v50 = vpop.f32.mrb[116].mxu0  ;;  %v7315_v32 = vunpack.c.l.bf16 %v7362_v23 }
 0x35e   : >> { %v6139_v20 = vadd.f32 %v8361_v4, %v11316_v1  ;;  %v8363_v28 = vadd.f32 %v8300_v5, %v8060_v44  ;;  %v3736_v3 = vpop.f32.mrb[115].mxu1  ;;  %v5972_v21 = vpop.f32.mrb[117].mxu0  ;;  %v7316_v10 = vunpack.c.h.bf16 %v7362_v23 }
 0x35f   : >> { %v6455_v38 = vadd.f32 %v6454_v54, %v6392_v39  ;;  %v6137_v62 = vadd.f32 %v8362_v26, %v11316_v1  ;;  %v8364_v59 = vadd.f32 %v5959_v51, %v3736_v3  ;;  %v8304_v7 = vpop.f32.mrb[118].mxu0  ;;  %v7364_v26 = vld [vmem:[%s10686_s28 + $0xe0] sm:$0xff]   ;;  %v7320_v51 = vunpack.c.h.bf16 %v7363_v0 }
 0x360   : >> { %v6140_v43 = vadd.f32 %v8363_v28, %v11316_v1  ;;  %v6203_v9 = vmax.f32 %v6139_v20, 0.0  ;;  %v5975_v27 = vpop.f32.mrb[119].mxu0 }
 0x361   : >> { %v6456_v34 = vadd.f32 %v6455_v38, %v6393_v24  ;;  %v6201_v57 = vmax.f32 %v6137_v62, 0.0  ;;  %v6138_v36 = vadd.f32 %v8364_v59, %v11316_v1 }
 0x362   : >> { %v6204_v46 = vmax.f32 %v6140_v43, 0.0  ;;  %v6397_v35 = vmul.f32 %v7311_v45, %v6203_v9  ;;  %v7365_v9 = vld [vmem:[%s10686_s28 + $0xe8] sm:$0xff]  }
 0x363   : >> { %v6395_v31 = vmul.f32 %v7307_v33, %v6201_v57  ;;  %v6457_v29 = vadd.f32 %v6456_v34, %v6394_v63  ;;  %v6202_v47 = vmax.f32 %v6138_v36, 0.0  ;;  %v8063_v12 = vpop.f32.mrb[116].mxu1 }
 0x364   : >> { %v8365_v17 = vadd.f32 %v8303_v50, %v8063_v12  ;;  %v3749_v42 = vpop.f32.mrb[117].mxu1  ;;  %v6398_v48 = vmul.f32 %v7312_v6, %v6204_v46  ;;  %v7327_v6 = vunpack.c.l.bf16 %v7365_v9 }
 0x365   : >> { %v6458_v25 = vadd.f32 %v6457_v29, %v6395_v31  ;;  %v6396_v56 = vmul.f32 %v7308_v53, %v6202_v47  ;;  %v8366_v41 = vadd.f32 %v5972_v21, %v3749_v42  ;;  %v8064_v55 = vpop.f32.mrb[118].mxu1  ;;  %v8307_v4 = vpop.f32.mrb[120].mxu0  ;;  %v7323_v53 = vunpack.c.l.bf16 %v7364_v26 }
 0x366   : >> { %v8367_v58 = vadd.f32 %v8304_v7, %v8064_v55  ;;  %v3752_v49 = vpop.f32.mrb[119].mxu1  ;;  %v6143_v15 = vadd.f32 %v8365_v17, %v11316_v1  ;;  %v5988_v44 = vpop.f32.mrb[121].mxu0  ;;  %v7324_v29 = vunpack.c.h.bf16 %v7364_v26 }
 0x367   : >> { %v6459_v8 = vadd.f32 %v6458_v25, %v6396_v56  ;;  %v6141_v40 = vadd.f32 %v8366_v41, %v11316_v1  ;;  %v8368_v14 = vadd.f32 %v5975_v27, %v3752_v49  ;;  %v8308_v3 = vpop.f32.mrb[122].mxu0  ;;  %v7366_v41 = vld [vmem:[%s10686_s28 + $0xf0] sm:$0xff]   ;;  %v7328_v27 = vunpack.c.h.bf16 %v7365_v9 }
 0x368   : >> { %v6144_v13 = vadd.f32 %v8367_v58, %v11316_v1  ;;  %v6207_v11 = vmax.f32 %v6143_v15, 0.0  ;;  %v5991_v59 = vpop.f32.mrb[123].mxu0 }
 0x369   : >> { %v6460_v18 = vadd.f32 %v6459_v8, %v6397_v35  ;;  %v6205_v52 = vmax.f32 %v6141_v40, 0.0  ;;  %v6142_v61 = vadd.f32 %v8368_v14, %v11316_v1 }
 0x36a   : >> { %v6208_v24 = vmax.f32 %v6144_v13, 0.0  ;;  %v6401_v57 = vmul.f32 %v7319_v30, %v6207_v11  ;;  %v7367_v30 = vld [vmem:[%s10686_s28 + $0xf8] sm:$0xff]  }
 0x36b   : >> { %v6399_v54 = vmul.f32 %v7315_v32, %v6205_v52  ;;  %v6461_v5 = vadd.f32 %v6460_v18, %v6398_v48  ;;  %v6206_v16 = vmax.f32 %v6142_v61, 0.0  ;;  %v8067_v39 = vpop.f32.mrb[120].mxu1 }
 0x36c   : >> { %v8369_v20 = vadd.f32 %v8307_v4, %v8067_v39  ;;  %v3765_v33 = vpop.f32.mrb[121].mxu1  ;;  %v6402_v47 = vmul.f32 %v7320_v51, %v6208_v24  ;;  %v7335_v51 = vunpack.c.l.bf16 %v7367_v30 }
 0x36d   : >> { %v6462_v28 = vadd.f32 %v6461_v5, %v6399_v54  ;;  %v6400_v38 = vmul.f32 %v7316_v10, %v6206_v16  ;;  %v8370_v2 = vadd.f32 %v5988_v44, %v3765_v33  ;;  %v8068_v62 = vpop.f32.mrb[122].mxu1  ;;  %v8311_v17 = vpop.f32.mrb[124].mxu0  ;;  %v7331_v10 = vunpack.c.l.bf16 %v7366_v41 }
 0x36e   : >> { %v6147_v43 = vadd.f32 %v8369_v20, %v11316_v1  ;;  %v8371_v63 = vadd.f32 %v8308_v3, %v8068_v62  ;;  %v3768_v34 = vpop.f32.mrb[123].mxu1  ;;  %v6004_v55 = vpop.f32.mrb[125].mxu0  ;;  %v7332_v5 = vunpack.c.h.bf16 %v7366_v41 }
 0x36f   : >> { %v6463_v36 = vadd.f32 %v6462_v28, %v6400_v38  ;;  %v6145_v45 = vadd.f32 %v8370_v2, %v11316_v1  ;;  %v8372_v50 = vadd.f32 %v5991_v59, %v3768_v34  ;;  %v8312_v8 = vpop.f32.mrb[126].mxu0  ;;  %v7336_v2 = vunpack.c.h.bf16 %v7367_v30 }
 0x370   : >> { %v6148_v31 = vadd.f32 %v8371_v63, %v11316_v1  ;;  %v6211_v46 = vmax.f32 %v6147_v43, 0.0  ;;  %v6007_v48 = vpop.f32.mrb[127].mxu0 }
 0x371   : >> { %v6464_v12 = vadd.f32 %v6463_v36, %v6401_v57  ;;  %v6209_v23 = vmax.f32 %v6145_v45, 0.0  ;;  %v6146_v21 = vadd.f32 %v8372_v50, %v11316_v1  ;;  %v11317_v57 = vld [vmem:[#allocation23_spill] sm:$0xff]  ;;  %v11320_v36 = vmov %v10090_v60 }
 0x372   : >> { %v6212_v35 = vmax.f32 %v6148_v31, 0.0  ;;  %v6405_v14 = vmul.f32 %v7327_v6, %v6211_v46 }
 0x373   : >> { %v6403_v42 = vmul.f32 %v7323_v53, %v6209_v23  ;;  %v6465_v25 = vadd.f32 %v6464_v12, %v6402_v47  ;;  %v6210_v7 = vmax.f32 %v6146_v21, 0.0  ;;  %v8071_v56 = vpop.f32.mrb[124].mxu1 }
 0x374   : >> { %v8373_v32 = vadd.f32 %v8311_v17, %v8071_v56  ;;  %v3781_v58 = vpop.f32.mrb[125].mxu1  ;;  %v6406_v54 = vmul.f32 %v7328_v27, %v6212_v35  ;;  %v11319_v35 = vmov %v10357_v19 }
 0x375   : >> { %v6466_v49 = vadd.f32 %v6465_v25, %v6403_v42  ;;  %v6404_v15 = vmul.f32 %v7324_v29, %v6210_v7  ;;  %v8374_v0 = vadd.f32 %v6004_v55, %v3781_v58  ;;  %v8072_v40 = vpop.f32.mrb[126].mxu1 }
 0x376   : >> { %v8375_v18 = vadd.f32 %v8312_v8, %v8072_v40  ;;  %v3784_v52 = vpop.f32.mrb[127].mxu1  ;;  %v6151_v61 = vadd.f32 %v8373_v32, %v11316_v1 }
 0x377   : >> { %v6467_v13 = vadd.f32 %v6466_v49, %v6404_v15  ;;  %v6149_v4 = vadd.f32 %v8374_v0, %v11316_v1  ;;  %v8376_v11 = vadd.f32 %v6007_v48, %v3784_v52 }
 0x378   : >> { %v6152_v26 = vadd.f32 %v8375_v18, %v11316_v1  ;;  %v6215_v20 = vmax.f32 %v6151_v61, 0.0 }
 0x379   : >> { %v6468_v16 = vadd.f32 %v6467_v13, %v6405_v14  ;;  %v6213_v39 = vmax.f32 %v6149_v4, 0.0  ;;  %v6150_v44 = vadd.f32 %v8376_v11, %v11316_v1 }
 0x37a   : >> { %v6216_v38 = vmax.f32 %v6152_v26, 0.0  ;;  %v6409_v59 = vmul.f32 %v7335_v51, %v6215_v20 }
 0x37b   : >> { %v6407_v33 = vmul.f32 %v7331_v10, %v6213_v39  ;;  %v6469_v28 = vadd.f32 %v6468_v16, %v6406_v54  ;;  %v6214_v3 = vmax.f32 %v6150_v44, 0.0 }
 0x37c   : >> { %v6410_v53 = vmul.f32 %v7336_v2, %v6216_v38 }
 0x37d   : >> { %v6470_v24 = vadd.f32 %v6469_v28, %v6407_v33  ;;  %v6408_v62 = vmul.f32 %v7332_v5, %v6214_v3 }
 0x37f   : >> { %v6471_v43 = vadd.f32 %v6470_v24, %v6408_v62 }
 0x381   : >> { %v6472_v63 = vadd.f32 %v6471_v43, %v6409_v59  ;;  %1278 = sbr.rel (!%p1276_p8) target bundleno = 34 (0x22), region = 104 }
 0x383   : >> { %v6473_v34 = vadd.f32 %v6472_v63, %v6410_v53 }
 0x385   : >> { %v6474_v9 = vadd.f32 %v11317_v57, %v6473_v34   ;;  %v11318_v34 = vmov %v10345_v22 }
 0x387   : >> { %v11321_v38 = vmov %v6474_v9  ;;  %6475 = vst [vmem:[%s9088_s14] sm:$0xff] (%p1276_p8), %v6474_v9 }
 0x388 PF: > { %s16_s25 = sadd.s32 1, %s8903_s25   ;;  %s11322_s21 = smov %s8895_s23 }
 0x389   : > { %p13_p9 = scmp.ge.s32.totalorder %s16_s25, 6   ;;  %s11323_s22 = smov %s8899_s24 }
 0x38a   : > { %s11324_s23 = smov %s11327_s26  ;;  %s11325_s24 = smov %s11331_s27 }
 0x38b   :  { %15 = sbr.rel (!%p13_p9) target bundleno = 3 (0x3), region = 115 }

</bundles_post_ra>
